<compile_context>
chip_gen: v6e
topology: v6e:2x2x1
jax: 0.10.0
libtpu: 0.0.40
codegen_flags: <defaults>
</compile_context>

<pallas_src>
import math

import jax
import jax.numpy as jnp
from jax.experimental import pallas as pl
from jax.experimental.pallas import tpu as pltpu


def _pam_kernel(x_ref, xq_ref, xta_ref, wqa_ref, wka_ref, wkb_ref, wva_ref, o_ref):
    """One (batch b, query-block i) step of the position attention module.

    x_ref   : (1, C+1, HW)  features + ones row (all key positions)
    xq_ref  : (1, C+1, TI)  features + ones row (this query block)
    xta_ref : (1, HW, C+1)  transposed features + ones column
    wqa_ref : (1, C+1)      [w_q | b_q]
    wka_ref : (1, C+1)      [w_k | b_k]
    wkb_ref : (C+1, 1)      [w_k | b_k]^T (column form for the energy matmul)
    wva_ref : (C+1, C+1)    [[gamma*w_v | gamma*b_v], [0 ... 0 | 1]]
    o_ref   : (1, C, TI)    gamma * attention output for this query block
    """
    xa = x_ref[0]           # (C+1, HW), last row == 1
    xta = xta_ref[0]        # (HW, C+1), last col == 1

    # Fused 1x1-conv projections (biases ride on the ones row/column).
    # va rows 0..C-1 = gamma * value projection, row C = all ones (denominator).
    va = jnp.dot(wva_ref[...], xa, preferred_element_type=jnp.float32)        # (C+1, HW)
    k_row = jnp.dot(wka_ref[...], xa, preferred_element_type=jnp.float32)     # (1, HW)
    q = jnp.dot(wqa_ref[...], xq_ref[0], preferred_element_type=jnp.float32)  # (1, TI)

    # Exact per-query max of energy e[i, j] = q_i * k_j from two lane reductions
    # of k; no (HW, TI) reduction and e never has to be live before the shift.
    kmax = jnp.max(k_row, axis=1, keepdims=True)    # (1, 1)
    kmin = jnp.min(k_row, axis=1, keepdims=True)    # (1, 1)
    m = jnp.maximum(q * kmax, q * kmin)             # (1, TI)

    # Transposed energy e[j, i] = k_j * q_i as one lane-dense MXU matmul:
    # (HW, C+1) @ (C+1, TI); the tiny (C+1, TI) operand is a vreg outer product.
    e = jnp.dot(xta, wkb_ref[...] * q, preferred_element_type=jnp.float32)    # (HW, TI)
    p = jnp.exp(e - m)                              # unnormalized softmax numerators

    # acc[:C] = (gamma*V) @ P  (unnormalized output); acc[C] = column sums of P
    # (softmax denominator) thanks to the ones row of va.
    acc = jnp.dot(va, p, preferred_element_type=jnp.float32)                  # (C+1, TI)
    c = acc.shape[0] - 1
    inv_l = pl.reciprocal(acc[c:, :], approx=True)  # (1, TI), EUP slot
    o_ref[0] = acc[:c, :] * inv_l                   # lane-dense (C, TI) store


def pam_forward(x, params):
    """PAM_Module.forward: x (B, C, H, W) -> gamma * positional-attention output."""
    x = x.astype(jnp.float32)
    B, C, H, W = x.shape
    HW = H * W

    xf = x.reshape(B, C, HW)
    xfa = jnp.concatenate([xf, jnp.ones((B, 1, HW), jnp.float32)], axis=1)   # (B, C+1, HW)
    xta = jnp.concatenate([jnp.transpose(xf, (0, 2, 1)),
                           jnp.ones((B, HW, 1), jnp.float32)], axis=-1)      # (B, HW, C+1)

    # Fold the 1x1-conv biases and gamma into augmented weights (no scalar args).
    wq = params["wq"].reshape(1, C).astype(jnp.float32)
    wk = params["wk"].reshape(1, C).astype(jnp.float32)
    wv = params["wv"].reshape(C, C).astype(jnp.float32)
    bq = params["bq"].reshape(1, 1).astype(jnp.float32)
    bk = params["bk"].reshape(1, 1).astype(jnp.float32)
    bv = params["bv"].reshape(C, 1).astype(jnp.float32)
    gamma = params["gamma"].reshape(1, 1).astype(jnp.float32)

    wqa = jnp.concatenate([wq, bq], axis=1)                                   # (1, C+1)
    wka = jnp.concatenate([wk, bk], axis=1)                                   # (1, C+1)
    wkb = jnp.transpose(wka)                                                  # (C+1, 1)
    denom_row = jnp.concatenate([jnp.zeros((1, C), jnp.float32),
                                 jnp.ones((1, 1), jnp.float32)], axis=1)
    wva = jnp.concatenate([gamma * jnp.concatenate([wv, bv], axis=1),
                           denom_row], axis=0)                                # (C+1, C+1)

    # Tile the query-position axis: small live intermediates and B*HW/TI
    # independent grid steps for pipelining / megacore sharding.
    if HW % 256 == 0:
        TI = 256
    elif HW % 128 == 0:
        TI = 128
    else:
        TI = HW
    grid = (B, HW // TI)

    out = pl.pallas_call(
        _pam_kernel,
        out_shape=jax.ShapeDtypeStruct((B, C, HW), jnp.float32),
        grid=grid,
        in_specs=[
            pl.BlockSpec((1, C + 1, HW), lambda b, i: (b, 0, 0)),    # all key positions
            pl.BlockSpec((1, C + 1, TI), lambda b, i: (b, 0, i)),    # this query block
            pl.BlockSpec((1, HW, C + 1), lambda b, i: (b, 0, 0)),    # transposed features
            pl.BlockSpec((1, C + 1), lambda b, i: (0, 0)),           # [w_q | b_q]
            pl.BlockSpec((1, C + 1), lambda b, i: (0, 0)),           # [w_k | b_k]
            pl.BlockSpec((C + 1, 1), lambda b, i: (0, 0)),           # [w_k | b_k]^T
            pl.BlockSpec((C + 1, C + 1), lambda b, i: (0, 0)),       # value weights (+denom row)
        ],
        out_specs=pl.BlockSpec((1, C, TI), lambda b, i: (b, 0, i)),
        compiler_params=pltpu.CompilerParams(
            dimension_semantics=("parallel", "parallel")),
    )(xfa, xfa, xta, wqa, wka, wkb, wva)

    return out.reshape(B, C, H, W)


def pam_reference(x, params):
    """Pure-JAX reference of PAM_Module.forward (self-check only)."""
    B, C, H, W = x.shape
    HW = H * W
    hp = jax.lax.Precision.HIGHEST
    xf = x.reshape(B, C, HW).astype(jnp.float32)
    wq = params["wq"].reshape(1, C)
    wk = params["wk"].reshape(1, C)
    wv = params["wv"].reshape(C, C)
    q = jnp.einsum("oc,bcn->bon", wq, xf, precision=hp) + params["bq"][None, :, None]
    k = jnp.einsum("oc,bcn->bon", wk, xf, precision=hp) + params["bk"][None, :, None]
    v = jnp.einsum("oc,bcn->bon", wv, xf, precision=hp) + params["bv"][None, :, None]
    energy = jnp.einsum("bci,bcj->bij", q, k, precision=hp)       # (B, HW, HW)
    att = jax.nn.softmax(energy, axis=-1)
    out = jnp.einsum("bcj,bij->bci", v, att, precision=hp)        # (B, C, HW)
    return (params["gamma"][0] * out).reshape(B, C, H, W)


if __name__ == "__main__":
    C = 8
    keys = jax.random.split(jax.random.PRNGKey(0), 8)
    params = {
        "wq": jax.random.normal(keys[0], (1, C, 1, 1), jnp.float32) / math.sqrt(C),
        "bq": 0.1 * jax.random.normal(keys[1], (1,), jnp.float32),
        "wk": jax.random.normal(keys[2], (1, C, 1, 1), jnp.float32) / math.sqrt(C),
        "bk": 0.1 * jax.random.normal(keys[3], (1,), jnp.float32),
        "wv": jax.random.normal(keys[4], (C, C, 1, 1), jnp.float32) / math.sqrt(C),
        "bv": 0.1 * jax.random.normal(keys[5], (C,), jnp.float32),
        # NOTE: torch's __init__ sets gamma = zeros(1) (output identically 0);
        # use a nonzero value so the attention path is actually exercised.
        "gamma": jnp.ones((1,), jnp.float32),
    }
    x = jax.random.normal(keys[6], (2, C, 32, 32), jnp.float32)

    fwd = jax.jit(pam_forward)
    out = jax.block_until_ready(fwd(x, params))

    assert out.shape == x.shape, out.shape
    assert bool(jnp.all(jnp.isfinite(out)))

    ref = pam_reference(x, params)
    assert bool(jnp.allclose(out, ref, rtol=2e-2, atol=2e-3)), (
        float(jnp.max(jnp.abs(out - ref))))
    print("KERNEL_OK")
</pallas_src>

<mosaic_0001>
module attributes {stable_mosaic.version = 11 : i64} {
  func.func @_pam_kernel(%arg0: i32, %arg1: i32, %arg2: memref<1x9x1024xf32, #tpu.memory_space<vmem>>, %arg3: memref<1x9x256xf32, #tpu.memory_space<vmem>>, %arg4: memref<1x1024x9xf32, #tpu.memory_space<vmem>>, %arg5: memref<1x9xf32, #tpu.memory_space<vmem>>, %arg6: memref<1x9xf32, #tpu.memory_space<vmem>>, %arg7: memref<9x1xf32, #tpu.memory_space<vmem>>, %arg8: memref<9x9xf32, #tpu.memory_space<vmem>>, %arg9: memref<1x8x256xf32, #tpu.memory_space<vmem>>) attributes {dimension_semantics = [#tpu.dimension_semantics<parallel>, #tpu.dimension_semantics<parallel>], iteration_bounds = array<i64: 2, 4>, scalar_prefetch = 0 : i64, scratch_operands = 0 : i64, tpu.core_type = #tpu.core_type<tc>, window_params = [{transform_indices = @transform_0, window_bounds = array<i64: 1, 9, 1024>}, {transform_indices = @transform_1, window_bounds = array<i64: 1, 9, 256>}, {transform_indices = @transform_2, window_bounds = array<i64: 1, 1024, 9>}, {pipeline_mode = #tpu.pipeline_mode<synchronous>, transform_indices = @transform_3, window_bounds = array<i64: 1, 9>}, {pipeline_mode = #tpu.pipeline_mode<synchronous>, transform_indices = @transform_4, window_bounds = array<i64: 1, 9>}, {pipeline_mode = #tpu.pipeline_mode<synchronous>, transform_indices = @transform_5, window_bounds = array<i64: 9, 1>}, {pipeline_mode = #tpu.pipeline_mode<synchronous>, transform_indices = @transform_6, window_bounds = array<i64: 9, 9>}, {transform_indices = @transform_7, window_bounds = array<i64: 1, 8, 256>}]} {
    %c0 = arith.constant 0 : index
    %c0_0 = arith.constant 0 : index
    %c0_1 = arith.constant 0 : index
    %0 = vector.load %arg2[%c0, %c0_0, %c0_1] : memref<1x9x1024xf32, #tpu.memory_space<vmem>>, vector<1x9x1024xf32>
    %1 = vector.shape_cast %0 : vector<1x9x1024xf32> to vector<9x1024xf32>
    %c0_2 = arith.constant 0 : index
    %c0_3 = arith.constant 0 : index
    %c0_4 = arith.constant 0 : index
    %2 = vector.load %arg4[%c0_2, %c0_3, %c0_4] : memref<1x1024x9xf32, #tpu.memory_space<vmem>>, vector<1x1024x9xf32>
    %3 = vector.shape_cast %2 : vector<1x1024x9xf32> to vector<1024x9xf32>
    %c0_5 = arith.constant 0 : index
    %c0_6 = arith.constant 0 : index
    %4 = vector.load %arg8[%c0_5, %c0_6] : memref<9x9xf32, #tpu.memory_space<vmem>>, vector<9x9xf32>
    %cst = arith.constant dense<0.000000e+00> : vector<9x1024xf32>
    %5 = tpu.matmul %4, %1, %cst {dimension_numbers = #tpu.dot_dimension_numbers<[1], [0], [0], [1], [0, 0, 1, 1], [], []>} : vector<9x9xf32>, vector<9x1024xf32>, vector<9x1024xf32> -> vector<9x1024xf32>
    %c0_7 = arith.constant 0 : index
    %c0_8 = arith.constant 0 : index
    %6 = vector.load %arg6[%c0_7, %c0_8] : memref<1x9xf32, #tpu.memory_space<vmem>>, vector<1x9xf32>
    %cst_9 = arith.constant dense<0.000000e+00> : vector<1x1024xf32>
    %7 = tpu.matmul %6, %1, %cst_9 {dimension_numbers = #tpu.dot_dimension_numbers<[1], [0], [0], [1], [0, 0, 1, 1], [], []>} : vector<1x9xf32>, vector<9x1024xf32>, vector<1x1024xf32> -> vector<1x1024xf32>
    %c0_10 = arith.constant 0 : index
    %c0_11 = arith.constant 0 : index
    %8 = vector.load %arg5[%c0_10, %c0_11] : memref<1x9xf32, #tpu.memory_space<vmem>>, vector<1x9xf32>
    %c0_12 = arith.constant 0 : index
    %c0_13 = arith.constant 0 : index
    %c0_14 = arith.constant 0 : index
    %9 = vector.load %arg3[%c0_12, %c0_13, %c0_14] : memref<1x9x256xf32, #tpu.memory_space<vmem>>, vector<1x9x256xf32>
    %10 = vector.shape_cast %9 : vector<1x9x256xf32> to vector<9x256xf32>
    %cst_15 = arith.constant dense<0.000000e+00> : vector<1x256xf32>
    %11 = tpu.matmul %8, %10, %cst_15 {dimension_numbers = #tpu.dot_dimension_numbers<[1], [0], [0], [1], [0, 0, 1, 1], [], []>} : vector<1x9xf32>, vector<9x256xf32>, vector<1x256xf32> -> vector<1x256xf32>
    %cst_16 = arith.constant dense<0xFF800000> : vector<1xf32>
    %12 = vector.multi_reduction <maximumf>, %7, %cst_16 [1] : vector<1x1024xf32> to vector<1xf32>
    %13 = vector.shape_cast %12 : vector<1xf32> to vector<1x1xf32>
    %cst_17 = arith.constant dense<0x7F800000> : vector<1xf32>
    %14 = vector.multi_reduction <minimumf>, %7, %cst_17 [1] : vector<1x1024xf32> to vector<1xf32>
    %15 = vector.shape_cast %14 : vector<1xf32> to vector<1x1xf32>
    %16 = vector.broadcast %13 : vector<1x1xf32> to vector<1x256xf32>
    %17 = arith.mulf %11, %16 : vector<1x256xf32>
    %18 = vector.broadcast %15 : vector<1x1xf32> to vector<1x256xf32>
    %19 = arith.mulf %11, %18 : vector<1x256xf32>
    %20 = arith.maximumf %17, %19 : vector<1x256xf32>
    %c0_18 = arith.constant 0 : index
    %c0_19 = arith.constant 0 : index
    %21 = vector.load %arg7[%c0_18, %c0_19] : memref<9x1xf32, #tpu.memory_space<vmem>>, vector<9x1xf32>
    %22 = vector.broadcast %21 : vector<9x1xf32> to vector<9x256xf32>
    %23 = vector.broadcast %11 : vector<1x256xf32> to vector<9x256xf32>
    %24 = arith.mulf %22, %23 : vector<9x256xf32>
    %cst_20 = arith.constant dense<0.000000e+00> : vector<1024x256xf32>
    %25 = tpu.matmul %3, %24, %cst_20 {dimension_numbers = #tpu.dot_dimension_numbers<[1], [0], [0], [1], [0, 0, 1, 1], [], []>} : vector<1024x9xf32>, vector<9x256xf32>, vector<1024x256xf32> -> vector<1024x256xf32>
    %26 = vector.broadcast %20 : vector<1x256xf32> to vector<1024x256xf32>
    %27 = arith.subf %25, %26 : vector<1024x256xf32>
    %28 = math.exp %27 : vector<1024x256xf32>
    %cst_21 = arith.constant dense<0.000000e+00> : vector<9x256xf32>
    %29 = tpu.matmul %5, %28, %cst_21 {dimension_numbers = #tpu.dot_dimension_numbers<[1], [0], [0], [1], [0, 0, 1, 1], [], []>} : vector<9x1024xf32>, vector<1024x256xf32>, vector<9x256xf32> -> vector<9x256xf32>
    %30 = vector.extract_strided_slice %29 {offsets = [8, 0], sizes = [1, 256], strides = [1, 1]} : vector<9x256xf32> to vector<1x256xf32>
    %31 = tpu.reciprocal %30 {approx = true} : vector<1x256xf32> -> vector<1x256xf32>
    %32 = vector.extract_strided_slice %29 {offsets = [0, 0], sizes = [8, 256], strides = [1, 1]} : vector<9x256xf32> to vector<8x256xf32>
    %33 = vector.broadcast %31 : vector<1x256xf32> to vector<8x256xf32>
    %34 = arith.mulf %32, %33 : vector<8x256xf32>
    %c0_22 = arith.constant 0 : index
    %c0_23 = arith.constant 0 : index
    %c0_24 = arith.constant 0 : index
    %35 = vector.load %arg9[%c0_22, %c0_23, %c0_24] : memref<1x8x256xf32, #tpu.memory_space<vmem>>, vector<1x8x256xf32>
    %36 = vector.shape_cast %35 : vector<1x8x256xf32> to vector<8x256xf32>
    %37 = vector.shape_cast %34 : vector<8x256xf32> to vector<1x8x256xf32>
    tpu.vector_store %arg9[%c0_22, %c0_23, %c0_24], %37 {strides = array<i32>} : memref<1x8x256xf32, #tpu.memory_space<vmem>>, vector<1x8x256xf32>,
    return
  }
  func.func @transform_0(%arg0: i32, %arg1: i32) -> (i32, i32, i32) {
    %c0_i32 = arith.constant 0 : i32
    %c0_i32_0 = arith.constant 0 : i32
    %c0_i32_1 = arith.constant 0 : i32
    return %arg0, %c0_i32, %c0_i32_0 : i32, i32, i32
  }
  func.func @transform_1(%arg0: i32, %arg1: i32) -> (i32, i32, i32) {
    %c0_i32 = arith.constant 0 : i32
    %c0_i32_0 = arith.constant 0 : i32
    return %arg0, %c0_i32, %arg1 : i32, i32, i32
  }
  func.func @transform_2(%arg0: i32, %arg1: i32) -> (i32, i32, i32) {
    %c0_i32 = arith.constant 0 : i32
    %c0_i32_0 = arith.constant 0 : i32
    %c0_i32_1 = arith.constant 0 : i32
    return %arg0, %c0_i32, %c0_i32_0 : i32, i32, i32
  }
  func.func @transform_3(%arg0: i32, %arg1: i32) -> (i32, i32) {
    %c0_i32 = arith.constant 0 : i32
    %c0_i32_0 = arith.constant 0 : i32
    %c0_i32_1 = arith.constant 0 : i32
    return %c0_i32, %c0_i32_0 : i32, i32
  }
  func.func @transform_4(%arg0: i32, %arg1: i32) -> (i32, i32) {
    %c0_i32 = arith.constant 0 : i32
    %c0_i32_0 = arith.constant 0 : i32
    %c0_i32_1 = arith.constant 0 : i32
    return %c0_i32, %c0_i32_0 : i32, i32
  }
  func.func @transform_5(%arg0: i32, %arg1: i32) -> (i32, i32) {
    %c0_i32 = arith.constant 0 : i32
    %c0_i32_0 = arith.constant 0 : i32
    %c0_i32_1 = arith.constant 0 : i32
    return %c0_i32, %c0_i32_0 : i32, i32
  }
  func.func @transform_6(%arg0: i32, %arg1: i32) -> (i32, i32) {
    %c0_i32 = arith.constant 0 : i32
    %c0_i32_0 = arith.constant 0 : i32
    %c0_i32_1 = arith.constant 0 : i32
    return %c0_i32, %c0_i32_0 : i32, i32
  }
  func.func @transform_7(%arg0: i32, %arg1: i32) -> (i32, i32, i32) {
    %c0_i32 = arith.constant 0 : i32
    %c0_i32_0 = arith.constant 0 : i32
    return %arg0, %c0_i32, %arg1 : i32, i32, i32
  }
}

</mosaic_0001>

<bundles_post_ra>
// kernel: pam_forward.1
= control target key start
LH: loop header
LB: loop body
LE: loop exit
PB: predicated region body
PF: predicated region fallthrough
CT: control target
= control target key end

     0   :  { %s4593_s24 = smov 0   ;;  %s4595_s25 = smov 0   ;;  %s6172_s0 = inlined_call_operand.vmem [shape: f32[2,9,1024], index: 0, kind: input, shape index: {}, may-alias: {0,1}]   ;;  %s6173_s1 = inlined_call_operand.vmem [shape: f32[2,9,1024], index: 1, kind: input, shape index: {}, may-alias: {0,1}]   ;;  %s6174_s2 = inlined_call_operand.vmem [shape: f32[2,1024,9], index: 2, kind: input, shape index: {}]   ;;  %s6175_s3 = inlined_call_operand.vmem [shape: f32[1,9], index: 3, kind: input, shape index: {}]   ;;  %s6176_s4 = inlined_call_operand.vmem [shape: f32[1,9], index: 4, kind: input, shape index: {}]   ;;  %s6177_s5 = inlined_call_operand.vmem [shape: f32[9,1], index: 5, kind: input, shape index: {}]   ;;  %s6178_s6 = inlined_call_operand.vmem [shape: f32[9,9], index: 6, kind: input, shape index: {}]   ;;  %s6179_s7 = inlined_call_operand.vmem [shape: f32[2,8,1024], index: 7, kind: output, shape index: {}]  }
   0x1   :  { %s4597_s26 = smov 0   ;;  %s4599_s27 = smov 0  }
   0x2   :  { %s4601_s28 = smov 0   ;;  %s4603_s29 = smov 0  }
   0x3   :  { %s4605_s30 = smov 0  }
   0x4 LB: > { %s26_s8 = sadd.s32 1, %s4541_s28  ;;  %s29_s9 = sadd.s32 1, %s4545_s29  ;;  %s4549_s30 = sphi %s4605_s30, %s17_s30   ;;  %s4545_s29 = sphi %s4603_s29, %s6324_s29   ;;  %s4541_s28 = sphi %s4601_s28, %s6323_s28   ;;  %s4537_s27 = sphi %s4599_s27, %s6322_s27   ;;  %s4533_s26 = sphi %s4597_s26, %s6321_s26   ;;  %s4529_s25 = sphi %s4595_s25, %s6320_s25   ;;  %s4525_s24 = sphi %s4593_s24, %s6319_s24  }
   0x5   : > { %p27_p0 = scmp.ge.s32.totalorder %s26_s8, 4  ;;  %p71_p1 = scmp.ne.s32.totalorder %s4529_s25, %s4525_s24 }
   0x6   : > { %p72_p2 = scmp.eq.s32.totalorder %s4549_s30, 0  ;;  %s64_s13 = sadd.s32 1, %s4529_s25 }
   0x7   : > { %s6326_s8 = smov (%p27_p0, %s26_s8), 0  ;;  %s6328_s9 = smov (!%p27_p0, %s29_s9), %s4545_s29 }
   0x8   : > { %p73_p3 = por %p72_p2, %p71_p1  ;;  %p31_p4 = scmp.ge.s32.totalorder %s6328_s9, 2 }
   0x9   : > { %s60_s10 = ssub.s32 %s4541_s28, %s6326_s8  ;;  %p3737_p6 = scmp.ge.s32.totalorder %s4549_s30, 8 }
   0xa   : > { %s6330_s9 = smov (%p31_p4, %s6328_s9), 0 }
   0xb   : > { %s59_s11 = ssub.s32 %s4545_s29, %s6330_s9  ;;  %247 = sbr.rel (%p3737_p6) target bundleno = 25 (0x19), region = 32 }
   0xc   : > { %s61_s12 = sor.u32 %s60_s10, %s59_s11 }
   0xd   : > { %p62_p5 = scmp.eq.s32.totalorder %s61_s12, 0 }
   0xf   : > { %s4644_s14 = scalar_select %p62_p5, %s4529_s25, %s64_s13  }
  0x10   : > { %258 = sbr.rel (!%p73_p3) target bundleno = 25 (0x19), region = 40  ;;  %s260_s15 = sand.u32 (%p73_p3), 1, %s4529_s25  }
  0x11   : > { %s3739_s16 = sshll.u32 (%p73_p3), %s4541_s28, 1  ;;  %s3738_s17 = sshll.u32 (%p73_p3), %s260_s15, 5 }
  0x12   : > { %s3740_s18 = sshll.u32 (%p73_p3), %s4545_s29, 4  ;;  %s262_s10 = scalar_lea.vmem (%p73_p3), [#allocation2], %s3738_s17 }
  0x13   : > { %s265_s19 = sadd.s32 (%p73_p3), %s3740_s18, %s3739_s16 }
  0x14   : > { %s3741_s20 = sshll.u32 (%p73_p3), %s265_s19, 3 }
  0x15   : > { %s267_s23 = scalar_lea.vmem %s6173_s1, %s3741_s20 }
  0x16   : > { %v280_v0 = vld [vmem:[%s267_s23] sm:$0xff]  ;;  %v282_v1 = vld [vmem:[%s267_s23 + $0x8] sm:$0xff] }
  0x17   : > { %v284_v2 = vld [vmem:[%s267_s23 + $0x40] sm:$0xff]  ;;  %281 = vst [vmem:[%s262_s10] sm:$0xff] %v280_v0  ;;  %283 = vst [vmem:[%s262_s10 + $0x8] sm:$0xff] %v282_v1  ;;  %v286_v3 = vld [vmem:[%s267_s23 + $0x48] sm:$0xff] }
  0x18   : > { %285 = vst [vmem:[%s262_s10 + $0x10] sm:$0xff] %v284_v2  ;;  %287 = vst [vmem:[%s262_s10 + $0x18] sm:$0xff] %v286_v3 }
  0x19 PF: > { %p3742_p7 = scmp.ge.s32.totalorder %s4549_s30, 1  ;;  %p300_p8 = scmp.lt.s32.totalorder %s4549_s30, 9 }
  0x1b   : > { %p301_p9 = pnand %p3742_p7, %p300_p8 }
  0x1d   : > { %304 = sbr.rel (%p301_p9) target bundleno = 1096 (0x448), region = 67 }
  0x22   : > { %p352_p10 = scmp.lt.s32.totalorder %s4537_s27, 1  ;;  %v6180_v4 = vmov 0.0   ;;  %v4552_v5 = vmov 0   ;;  %v1273_v6 = vld [vmem:[%s6177_s5 + $0x8] sm:$0x1]  ;;  %vm526_vm0 = vcmask 1040384   ;;  %v1284_v48 = vlaneseq }
  0x23   : > { %615 = vmatprep.mubr.f32.mxu0 %v6180_v4  ;;  %692 = vmatprep.mubr.f32.mxu1 %v6180_v4  ;;  %v517_v15 = vld [vmem:[%s6178_s6] sm:$0xff]  ;;  %vm519_vm1 = vcmask 72704   ;;  %v518_v20 = vld [vmem:[%s6178_s6 + $0x8] sm:$0x1]  ;;  %s307_s22 = sand.u32 1, %s4525_s24   ;;  %s3748_s21 = sshll.u32 %s4533_s26, 1 }
  0x24   : > { %s6332_s27 = smov (!%p352_p10, %s4537_s27), 1  ;;  %3978 = vset.pattern.permute.xlu0 %v4552_v5  ;;  %v859_v25 = vld [vmem:[%s6176_s4] sm:$0x1]  ;;  %s3743_s11 = sshll.u32 %s307_s22, 5  ;;  %v1285_v53 = vshrl.u32 %v1284_v48, 7 }
  0x25   : > { %1281 = vperm.xlu0 %3978, %v1273_v6   ;;  %s3914_s13 = sshll.u32 %s6332_s27, 7  ;;  %s309_s24 = scalar_lea.vmem [#allocation2], %s3743_s11  ;;  %v1272_v28 = vld [vmem:[%s6177_s5] sm:$0xff] }
  0x26   : > { %s4668_s17 = scalar_lea.vmem %s6172_s0, %s3914_s13  ;;  %v1151_v26 = vld [vmem:[%s309_s24 + $0x18] sm:$0x1]  ;;  %v1150_v27 = vld [vmem:[%s309_s24 + $0x10] sm:$0x1]  ;;  %v1149_v29 = vld [vmem:[%s309_s24 + $0x8] sm:$0xff]  ;;  %v4781_v59 = vsub.s32 0, %v1285_v53 }
  0x27   : > { %v382_v7 = vld [vmem:[%s4668_s17 + $0x48] sm:$0x1]  ;;  %v384_v8 = vld [vmem:[%s4668_s17 + $0x58] sm:$0x1]  ;;  %v381_v9 = vld [vmem:[%s4668_s17 + $0x40] sm:$0x1] }
  0x28   : > { %3751 = vmatprep.subr.msk.mxu0 %vm526_vm0, %v382_v7  ;;  %3755 = vmatprep.subr.msk.mxu1 %vm526_vm0, %v384_v8  ;;  %v383_v10 = vld [vmem:[%s4668_s17 + $0x50] sm:$0x1]  ;;  %v374_v11 = vld [vmem:[%s4668_s17 + $0x8] sm:$0xff]  ;;  %v376_v12 = vld [vmem:[%s4668_s17 + $0x18] sm:$0xff]  ;;  %6199 = vst [vmem:[#allocation18_spill] sm:$0xff] %v4781_v59  ;;  %p366_p11 = scmp.lt.s32.totalorder %s3748_s21, 7 }
  0x29   : > { %3752 = vmatpush1.msk.msra.mxu0 %vm526_vm0, %v381_v9  ;;  %3756 = vmatpush1.msk.msra.mxu1 %vm526_vm0, %v383_v10  ;;  %v373_v13 = vld [vmem:[%s4668_s17] sm:$0xff]  ;;  %v375_v14 = vld [vmem:[%s4668_s17 + $0x10] sm:$0xff]  ;;  %v386_v16 = vld [vmem:[%s4668_s17 + $0x68] sm:$0x1]  ;;  %s3749_s22 = sshll.u32 %s6332_s27, 3 }
  0x2a   : > { %581 = vmatprep.subr.mxu0 %v374_v11  ;;  %658 = vmatprep.subr.mxu1 %v376_v12  ;;  %v388_v17 = vld [vmem:[%s4668_s17 + $0x78] sm:$0x1]  ;;  %v385_v18 = vld [vmem:[%s4668_s17 + $0x60] sm:$0x1]  ;;  %v387_v19 = vld [vmem:[%s4668_s17 + $0x70] sm:$0x1] }
  0x2b   : > { %582 = vmatpush1.msra.mxu0 %v373_v13  ;;  %659 = vmatpush1.msra.mxu1 %v375_v14  ;;  %v378_v21 = vld [vmem:[%s4668_s17 + $0x28] sm:$0xff]  ;;  %v380_v22 = vld [vmem:[%s4668_s17 + $0x38] sm:$0xff]  ;;  %v377_v23 = vld [vmem:[%s4668_s17 + $0x20] sm:$0xff]  ;;  %s6334_s21 = smov (!%p366_p11, %s3748_s21), 7 }
  0x2c   : > { %3753 = vmatmul.mubr.msk.f32.vlgmr.msra.gmra.mxu0 %vm519_vm1, %v517_v15  ;;  %3757 = vmatmul.mubr.msk.f32.vlgmr.msra.gmra.mxu1 %vm519_vm1, %v517_v15  ;;  %v379_v24 = vld [vmem:[%s4668_s17 + $0x30] sm:$0xff]  ;;  %v1148_v30 = vld [vmem:[%s309_s24] sm:$0xff]  ;;  %s3915_s17 = sshll.u32 %s6332_s27, 10  ;;  %s369_s23 = sadd.s32 %s3749_s22, %s6334_s21 }
  0x2d   : > { %621 = vmatprep.mubr.f32.mxu0 %v6180_v4  ;;  %698 = vmatprep.mubr.f32.mxu1 %v6180_v4  ;;  %v1147_v31 = vld [vmem:[%s6175_s3] sm:$0x1]  ;;  %s4808_s20 = scalar_lea.vmem %s6174_s2, %s3915_s17  ;;  %s3750_s10 = sshll.u32 %s369_s23, 3 }
  0x2e   : > { %3759 = vmatprep.subr.msk.mxu0 %vm526_vm0, %v386_v16  ;;  %3763 = vmatprep.subr.msk.mxu1 %vm526_vm0, %v388_v17  ;;  %v427_v53 = vld [vmem:[%s4808_s20 + $0x130] sm:$0xff]  ;;  %s371_s24 = scalar_lea.vmem %s6179_s7, %s3750_s10 }
  0x2f   : > { %3760 = vmatpush1.msk.msra.mxu0 %vm526_vm0, %v385_v18  ;;  %3764 = vmatpush1.msk.msra.mxu1 %vm526_vm0, %v387_v19 }
  0x30   : > { %3754 = vmatmul.mubr.msk.f32.gmra.mxu0 %vm519_vm1, %v518_v20  ;;  %3758 = vmatmul.mubr.msk.f32.gmra.mxu1 %vm519_vm1, %v518_v20 }
  0x31   : > { %735 = vmatprep.subr.mxu0 %v378_v21  ;;  %812 = vmatprep.subr.mxu1 %v380_v22 }
  0x32   : > { %736 = vmatpush1.msra.mxu0 %v377_v23  ;;  %769 = vmatprep.mubr.f32.mxu0 %v6180_v4 }
  0x33   : > { %813 = vmatpush1.msra.mxu1 %v379_v24  ;;  %846 = vmatprep.mubr.f32.mxu1 %v6180_v4 }
  0x34   : > { %3761 = vmatmul.mubr.msk.f32.vlgmr.msra.gmra.mxu0 %vm519_vm1, %v517_v15  ;;  %3765 = vmatmul.mubr.msk.f32.vlgmr.msra.gmra.mxu1 %vm519_vm1, %v517_v15 }
  0x35   : > { %775 = vmatprep.mubr.f32.mxu0 %v6180_v4  ;;  %852 = vmatprep.mubr.f32.mxu1 %v6180_v4 }
  0x36   : > { %3767 = vmatprep.subr.msk.mxu0 %vm526_vm0, %v382_v7  ;;  %3770 = vmatprep.subr.msk.mxu1 %vm526_vm0, %v384_v8 }
  0x37   : > { %3768 = vmatpush1.msk.msra.mxu0 %vm526_vm0, %v381_v9  ;;  %3771 = vmatpush1.msk.msra.mxu1 %vm526_vm0, %v383_v10 }
  0x38   : > { %3762 = vmatmul.mubr.msk.f32.gmra.mxu0 %vm519_vm1, %v518_v20  ;;  %3766 = vmatmul.mubr.msk.f32.gmra.mxu1 %vm519_vm1, %v518_v20 }
  0x39   : > { %893 = vmatprep.subr.mxu0 %v374_v11  ;;  %964 = vmatprep.subr.mxu1 %v376_v12 }
  0x3a   : > { %894 = vmatpush1.msra.mxu0 %v373_v13  ;;  %927 = vmatprep.mubr.f32.mxu0 %v6180_v4 }
  0x3b   : > { %965 = vmatpush1.msra.mxu1 %v375_v14  ;;  %998 = vmatprep.mubr.f32.mxu1 %v6180_v4 }
  0x3c   : > { %3769 = vmatmul.mubr.msk.f32.vlgmr.msra.gmra.mxu0 %vm519_vm1, %v859_v25  ;;  %3772 = vmatmul.mubr.msk.f32.vlgmr.msra.gmra.mxu1 %vm519_vm1, %v859_v25 }
  0x3d   : > { %3773 = vmatprep.subr.msk.mxu0 %vm526_vm0, %v386_v16  ;;  %3776 = vmatprep.subr.msk.mxu1 %vm526_vm0, %v388_v17 }
  0x3e   : > { %3774 = vmatpush1.msk.msra.mxu0 %vm526_vm0, %v385_v18  ;;  %3777 = vmatpush1.msk.msra.mxu1 %vm526_vm0, %v387_v19 }
  0x3f   : > { %1035 = vmatprep.subr.mxu0 %v378_v21  ;;  %1106 = vmatprep.subr.mxu1 %v380_v22 }
  0x40   : > { %1036 = vmatpush1.msra.mxu0 %v377_v23  ;;  %1069 = vmatprep.mubr.f32.mxu0 %v6180_v4 }
  0x41   : > { %1107 = vmatpush1.msra.mxu1 %v379_v24  ;;  %1140 = vmatprep.mubr.f32.mxu1 %v6180_v4 }
  0x42   : > { %3775 = vmatmul.mubr.msk.f32.vlgmr.msra.gmra.mxu0 %vm519_vm1, %v859_v25  ;;  %3778 = vmatmul.mubr.msk.f32.vlgmr.msra.gmra.mxu1 %vm519_vm1, %v859_v25 }
  0x43   : > { %3779 = vmatprep.subr.msk.mxu0 %vm526_vm0, %v1151_v26  ;;  %1225 = vmatprep.mubr.f32.mxu0 %v6180_v4 }
  0x44   : > { %3780 = vmatpush1.msk.msra.mxu0 %vm526_vm0, %v1150_v27  ;;  %1276 = vperm.xlu0 %3978, %v1272_v28  }
  0x45   : > { %1191 = vmatprep.subr.mxu0 %v1149_v29  ;;  %1978 = vmatprep.mubr.f32.mxu1 %v6180_v4 }
  0x46   : > { %1192 = vmatpush1.msra.mxu0 %v1148_v30 }
  0x47   : > { %3781 = vmatmul.mubr.msk.f32.vlgmr.msra.gmra.mxu0 %vm519_vm1, %v1147_v31 }
  0x48   : > { %1750 = vmatprep.mubr.f32.mxu0 %v6180_v4 }
  0xa0   : > { %v1282_v13 = vpop.permute.xlu0 %1281 }
  0xbf   : > { %v1277_v30 = vpop.permute.xlu0 %1276 }
  0xec   : > { %v4746_v32 = vpop.f32.mrf.mxu0  ;;  %v4748_v33 = vpop.f32.mrf.mxu1 }
  0xed   : > { %6184 = vst [vmem:[#allocation3_spill] sm:$0xff] %v4746_v32  ;;  %6185 = vst [vmem:[#allocation4_spill] sm:$0xff] %v4748_v33  ;;  %v488_v33 = vld [vmem:[%s4808_s20 + $0x318] sm:$0xff] }
  0xee   : > { %v4750_v34 = vpop.f32.mrf.mxu0  ;;  %v4752_v35 = vpop.f32.mrf.mxu1 }
  0xef   : > { %6186 = vst [vmem:[#allocation5_spill] sm:$0xff] %v4752_v35 }
  0xf0   : > { %v4754_v36 = vpop.f32.mrf.mxu0  ;;  %v4756_v37 = vpop.f32.mrf.mxu1 }
  0xf1   : > { %6187 = vst [vmem:[#allocation6_spill] sm:$0xff] %v4754_v36  ;;  %6188 = vst [vmem:[#allocation7_spill] sm:$0xff] %v4756_v37 }
  0xf2   : > { %v4758_v38 = vpop.f32.mrf.mxu0  ;;  %v4760_v39 = vpop.f32.mrf.mxu1 }
  0xf3   : > { %6189 = vst [vmem:[#allocation8_spill] sm:$0xff] %v4758_v38  ;;  %6190 = vst [vmem:[#allocation9_spill] sm:$0xff] %v4760_v39 }
  0xf4   : > { %v4762_v40 = vpop.f32.mrf.mxu0  ;;  %v4764_v41 = vpop.f32.mrf.mxu1 }
  0xf5   : > { %6191 = vst [vmem:[#allocation10_spill] sm:$0xff] %v4762_v40  ;;  %6192 = vst [vmem:[#allocation11_spill] sm:$0xff] %v4764_v41 }
  0xf6   : > { %v4766_v42 = vpop.f32.mrf.mxu0  ;;  %v4768_v43 = vpop.f32.mrf.mxu1 }
  0xf7   : > { %6193 = vst [vmem:[#allocation12_spill] sm:$0xff] %v4766_v42  ;;  %6194 = vst [vmem:[#allocation13_spill] sm:$0xff] %v4768_v43 }
  0xf8   : > { %v4770_v44 = vpop.f32.mrf.mxu0  ;;  %v4772_v45 = vpop.f32.mrf.mxu1 }
  0xf9   : > { %6195 = vst [vmem:[#allocation14_spill] sm:$0xff] %v4770_v44  ;;  %6196 = vst [vmem:[#allocation15_spill] sm:$0xff] %v4772_v45 }
  0xfa   : > { %v4774_v46 = vpop.f32.mrf.mxu0  ;;  %v4776_v47 = vpop.f32.mrf.mxu1 }
  0xfb   : > { %6197 = vst [vmem:[#allocation16_spill] sm:$0xff] %v4774_v46  ;;  %6198 = vst [vmem:[#allocation17_spill] sm:$0xff] %v4776_v47 }
  0xfc   : > { %v929_v49 = vpop.f32.mrf.mxu0  ;;  %v1000_v50 = vpop.f32.mrf.mxu1 }
  0xfd   : > { %v1234_v54 = vsel %vm526_vm0, %v1000_v50, -inf  ;;  %v1232_v55 = vsel %vm526_vm0, %v929_v49, -inf  ;;  %v1251_v56 = vsel %vm526_vm0, %v1000_v50, inf  ;;  %v1249_v20 = vsel %vm526_vm0, %v929_v49, inf }
  0xfe   : > { %v931_v51 = vpop.f32.mrf.mxu0  ;;  %v1002_v52 = vpop.f32.mrf.mxu1 }
  0xff   : > { %v1233_v60 = vsel %vm526_vm0, %v931_v51, -inf  ;;  %v1235_v61 = vsel %vm526_vm0, %v1002_v52, -inf  ;;  %v1250_v0 = vsel %vm526_vm0, %v931_v51, inf  ;;  %v1252_v1 = vsel %vm526_vm0, %v1002_v52, inf  ;;  %v389_v52 = vld [vmem:[%s4808_s20] sm:$0xff] }
 0x102   : > { %v1071_v57 = vpop.f32.mrf.mxu0  ;;  %v1142_v58 = vpop.f32.mrf.mxu1 }
 0x103   : > { %v1236_v62 = vsel %vm526_vm0, %v1071_v57, -inf  ;;  %v1240_v63 = vsel %vm526_vm0, %v1142_v58, -inf  ;;  %v1257_v3 = vsel %vm526_vm0, %v1142_v58, inf  ;;  %v1253_v12 = vsel %vm526_vm0, %v1071_v57, inf  ;;  %v429_v57 = vld [vmem:[%s4808_s20 + $0x140] sm:$0xff]  ;;  %v392_v58 = vld [vmem:[%s4808_s20 + $0x18] sm:$0xff] }
 0x104   : > { %v1241_v2 = vmax.f32 %v1234_v54, %v1240_v63  ;;  %v1073_v5 = vpop.f32.mrf.mxu0  ;;  %v1144_v6 = vpop.f32.mrf.mxu1  ;;  %v1237_v11 = vmax.f32 %v1232_v55, %v1236_v62  ;;  %v1258_v16 = vmin.f32 %v1251_v56, %v1257_v3  ;;  %v1254_v23 = vmin.f32 %v1249_v20, %v1253_v12  ;;  %v390_v54 = vld [vmem:[%s4808_s20 + $0x8] sm:$0xff]  ;;  %v428_v55 = vld [vmem:[%s4808_s20 + $0x138] sm:$0xff]  ;;  %v391_v56 = vld [vmem:[%s4808_s20 + $0x10] sm:$0xff] }
 0x105   : > { %v1238_v7 = vsel %vm526_vm0, %v1073_v5, -inf  ;;  %v1255_v8 = vsel %vm526_vm0, %v1073_v5, inf  ;;  %v1242_v9 = vsel %vm526_vm0, %v1144_v6, -inf  ;;  %v1259_v10 = vsel %vm526_vm0, %v1144_v6, inf  ;;  %v431_v62 = vld [vmem:[%s4808_s20 + $0x150] sm:$0xff]  ;;  %v394_v63 = vld [vmem:[%s4808_s20 + $0x28] sm:$0xff] }
 0x106   : > { %v1239_v14 = vmax.f32 %v1233_v60, %v1238_v7  ;;  %v1243_v15 = vmax.f32 %v1235_v61, %v1242_v9  ;;  %v1256_v17 = vmin.f32 %v1250_v0, %v1255_v8  ;;  %v1260_v18 = vmin.f32 %v1252_v1, %v1259_v10  ;;  %v430_v60 = vld [vmem:[%s4808_s20 + $0x148] sm:$0xff]  ;;  %v393_v61 = vld [vmem:[%s4808_s20 + $0x20] sm:$0xff]  ;;  %v432_v0 = vld [vmem:[%s4808_s20 + $0x158] sm:$0xff] }
 0x107   : > { %v4795_v19 = vpop.f32.mrf.mxu0  ;;  %v395_v1 = vld [vmem:[%s4808_s20 + $0x30] sm:$0xff]  ;;  %v396_v3 = vld [vmem:[%s4808_s20 + $0x38] sm:$0xff]  ;;  %v434_v5 = vld [vmem:[%s4808_s20 + $0x168] sm:$0xff] }
 0x108   : > { %v1244_v21 = vmax.f32 %v1237_v11, %v1239_v14  ;;  %v1245_v22 = vmax.f32 %v1241_v2, %v1243_v15  ;;  %v1287_v24 = vrot.slane %v4795_v19, %v4781_v59  ;;  %v1261_v28 = vmin.f32 %v1254_v23, %v1256_v17  ;;  %v433_v2 = vld [vmem:[%s4808_s20 + $0x160] sm:$0xff]  ;;  %v435_v7 = vld [vmem:[%s4808_s20 + $0x170] sm:$0xff]  ;;  %v398_v8 = vld [vmem:[%s4808_s20 + $0x48] sm:$0xff] }
 0x109   : > { %v4801_v25 = vpop.f32.mrf.mxu0  ;;  %v1262_v29 = vmin.f32 %v1258_v16, %v1260_v18  ;;  %v397_v6 = vld [vmem:[%s4808_s20 + $0x40] sm:$0xff]  ;;  %v436_v9 = vld [vmem:[%s4808_s20 + $0x178] sm:$0xff]  ;;  %v399_v10 = vld [vmem:[%s4808_s20 + $0x50] sm:$0xff] }
 0x10a   : > { %v1291_v26 = vrot.slane %v4801_v25, %v4781_v59  ;;  %v1246_v27 = vmax.f32 %v1244_v21, %v1245_v22  ;;  %v1294_v48 = vmul.f32 %v1287_v24, %v1282_v13  ;;  %v1292_v50 = vmul.f32 %v1287_v24, %v1277_v30  ;;  %v437_v11 = vld [vmem:[%s4808_s20 + $0x180] sm:$0xff]  ;;  %v400_v12 = vld [vmem:[%s4808_s20 + $0x58] sm:$0xff]  ;;  %v439_v15 = vld [vmem:[%s4808_s20 + $0x190] sm:$0xff] }
 0x10b   : > { %v1263_v51 = vmin.f32 %v1261_v28, %v1262_v29  ;;  %v401_v14 = vld [vmem:[%s4808_s20 + $0x60] sm:$0xff]  ;;  %v402_v16 = vld [vmem:[%s4808_s20 + $0x68] sm:$0xff]  ;;  %v440_v17 = vld [vmem:[%s4808_s20 + $0x198] sm:$0xff] }
 0x10c   : > { %v1295_v31 = vmul.f32 %v1291_v26, %v1282_v13  ;;  %1247 = vmax.xlane.f32.xlu1 %v1246_v27  ;;  %v1293_v49 = vmul.f32 %v1291_v26, %v1277_v30  ;;  %v438_v13 = vld [vmem:[%s4808_s20 + $0x188] sm:$0xff]  ;;  %v403_v18 = vld [vmem:[%s4808_s20 + $0x70] sm:$0xff]  ;;  %v441_v20 = vld [vmem:[%s4808_s20 + $0x1a0] sm:$0xff] }
 0x10d   : > { %v404_v21 = vld [vmem:[%s4808_s20 + $0x78] sm:$0xff]  ;;  %v442_v22 = vld [vmem:[%s4808_s20 + $0x1a8] sm:$0xff]  ;;  %v405_v23 = vld [vmem:[%s4808_s20 + $0x80] sm:$0xff] }
 0x10e   : > { %3782 = vmatprep.subr.msk.mxu0 %vm526_vm0, %v1295_v31  ;;  %3916 = vmatprep.subr.msk.mxu1 %vm526_vm0, %v1295_v31  ;;  %v443_v24 = vld [vmem:[%s4808_s20 + $0x1b0] sm:$0xff]  ;;  %v406_v26 = vld [vmem:[%s4808_s20 + $0x88] sm:$0xff]  ;;  %v444_v27 = vld [vmem:[%s4808_s20 + $0x1b8] sm:$0xff] }
 0x10f   : > { %3783 = vmatpush1.msk.msra.mxu0 %vm526_vm0, %v1294_v48  ;;  %3918 = vmatpush1.msk.msra.mxu1 %vm526_vm0, %v1294_v48  ;;  %v407_v28 = vld [vmem:[%s4808_s20 + $0x90] sm:$0xff]  ;;  %v445_v29 = vld [vmem:[%s4808_s20 + $0x1c0] sm:$0xff]  ;;  %v408_v30 = vld [vmem:[%s4808_s20 + $0x98] sm:$0xff] }
 0x110   : > { %1716 = vmatprep.subr.mxu0 %v1293_v49  ;;  %3917 = vmatprep.subr.mxu1 %v1293_v49  ;;  %v446_v31 = vld [vmem:[%s4808_s20 + $0x1c8] sm:$0xff]  ;;  %v409_v48 = vld [vmem:[%s4808_s20 + $0xa0] sm:$0xff]  ;;  %v447_v49 = vld [vmem:[%s4808_s20 + $0x1d0] sm:$0xff] }
 0x111   : > { %1264 = vmin.xlane.f32.xlu1 %v1263_v51  ;;  %1717 = vmatpush1.msra.mxu0 %v1292_v50  ;;  %v448_v51 = vld [vmem:[%s4808_s20 + $0x1d8] sm:$0xff] }
 0x112   : > { %3919 = vmatpush1.msra.mxu1 %v1292_v50  ;;  %3784 = vmatmul.mubr.msk.f32.vlgmr.msra.gmra.mxu0 %vm519_vm1, %v389_v52  ;;  %v410_v50 = vld [vmem:[%s4808_s20 + $0xa8] sm:$0xff]  ;;  %v411_v52 = vld [vmem:[%s4808_s20 + $0xb0] sm:$0xff] }
 0x113   : > { %3822 = vmatmul.mubr.msk.f32.vlgmr.msra.gmra.mxu1 %vm519_vm1, %v427_v53  ;;  %1756 = vmatprep.mubr.f32.mxu0 %v6180_v4  ;;  %v449_v53 = vld [vmem:[%s4808_s20 + $0x1e0] sm:$0xff] }
 0x114   : > { %1984 = vmatprep.mubr.f32.mxu1 %v6180_v4 }
 0x116   : > { %3785 = vmatmul.mubr.msk.f32.gmra.mxu0 %vm519_vm1, %v390_v54  ;;  %v412_v54 = vld [vmem:[%s4808_s20 + $0xb8] sm:$0xff] }
 0x117   : > { %3823 = vmatmul.mubr.msk.f32.gmra.mxu1 %vm519_vm1, %v428_v55  ;;  %1762 = vmatprep.mubr.f32.mxu0 %v6180_v4  ;;  %v450_v55 = vld [vmem:[%s4808_s20 + $0x1e8] sm:$0xff] }
 0x118   : > { %1990 = vmatprep.mubr.f32.mxu1 %v6180_v4 }
 0x11a   : > { %3786 = vmatmul.mubr.msk.f32.gmra.mxu0 %vm519_vm1, %v391_v56  ;;  %v413_v56 = vld [vmem:[%s4808_s20 + $0xc0] sm:$0xff] }
 0x11b   : > { %3824 = vmatmul.mubr.msk.f32.gmra.mxu1 %vm519_vm1, %v429_v57  ;;  %1768 = vmatprep.mubr.f32.mxu0 %v6180_v4  ;;  %v451_v57 = vld [vmem:[%s4808_s20 + $0x1f0] sm:$0xff] }
 0x11c   : > { %1996 = vmatprep.mubr.f32.mxu1 %v6180_v4 }
 0x11e   : > { %3787 = vmatmul.mubr.msk.f32.gmra.mxu0 %vm519_vm1, %v392_v58  ;;  %v414_v58 = vld [vmem:[%s4808_s20 + $0xc8] sm:$0xff] }
 0x11f   : > { %3825 = vmatmul.mubr.msk.f32.gmra.mxu1 %vm519_vm1, %v430_v60  ;;  %1774 = vmatprep.mubr.f32.mxu0 %v6180_v4  ;;  %v452_v60 = vld [vmem:[%s4808_s20 + $0x1f8] sm:$0xff] }
 0x120   : > { %2002 = vmatprep.mubr.f32.mxu1 %v6180_v4 }
 0x122   : > { %3788 = vmatmul.mubr.msk.f32.gmra.mxu0 %vm519_vm1, %v393_v61  ;;  %v415_v61 = vld [vmem:[%s4808_s20 + $0xd0] sm:$0xff] }
 0x123   : > { %3826 = vmatmul.mubr.msk.f32.gmra.mxu1 %vm519_vm1, %v431_v62  ;;  %1780 = vmatprep.mubr.f32.mxu0 %v6180_v4  ;;  %v453_v62 = vld [vmem:[%s4808_s20 + $0x200] sm:$0xff] }
 0x124   : > { %2008 = vmatprep.mubr.f32.mxu1 %v6180_v4 }
 0x126   : > { %3789 = vmatmul.mubr.msk.f32.gmra.mxu0 %vm519_vm1, %v394_v63  ;;  %v416_v63 = vld [vmem:[%s4808_s20 + $0xd8] sm:$0xff] }
 0x127   : > { %3827 = vmatmul.mubr.msk.f32.gmra.mxu1 %vm519_vm1, %v432_v0  ;;  %1786 = vmatprep.mubr.f32.mxu0 %v6180_v4  ;;  %v454_v0 = vld [vmem:[%s4808_s20 + $0x208] sm:$0xff] }
 0x128   : > { %2014 = vmatprep.mubr.f32.mxu1 %v6180_v4 }
 0x12a   : > { %3790 = vmatmul.mubr.msk.f32.gmra.mxu0 %vm519_vm1, %v395_v1  ;;  %v417_v1 = vld [vmem:[%s4808_s20 + $0xe0] sm:$0xff] }
 0x12b   : > { %3828 = vmatmul.mubr.msk.f32.gmra.mxu1 %vm519_vm1, %v433_v2  ;;  %1792 = vmatprep.mubr.f32.mxu0 %v6180_v4  ;;  %v455_v2 = vld [vmem:[%s4808_s20 + $0x210] sm:$0xff] }
 0x12c   : > { %2020 = vmatprep.mubr.f32.mxu1 %v6180_v4 }
 0x12e   : > { %3791 = vmatmul.mubr.msk.f32.gmra.mxu0 %vm519_vm1, %v396_v3  ;;  %v418_v3 = vld [vmem:[%s4808_s20 + $0xe8] sm:$0xff] }
 0x12f   : > { %3829 = vmatmul.mubr.msk.f32.gmra.mxu1 %vm519_vm1, %v434_v5  ;;  %1798 = vmatprep.mubr.f32.mxu0 %v6180_v4  ;;  %v456_v5 = vld [vmem:[%s4808_s20 + $0x218] sm:$0xff] }
 0x130   : > { %2026 = vmatprep.mubr.f32.mxu1 %v6180_v4 }
 0x132   : > { %3792 = vmatmul.mubr.msk.f32.gmra.mxu0 %vm519_vm1, %v397_v6  ;;  %v419_v6 = vld [vmem:[%s4808_s20 + $0xf0] sm:$0xff] }
 0x133   : > { %3830 = vmatmul.mubr.msk.f32.gmra.mxu1 %vm519_vm1, %v435_v7  ;;  %1804 = vmatprep.mubr.f32.mxu0 %v6180_v4  ;;  %v457_v7 = vld [vmem:[%s4808_s20 + $0x220] sm:$0xff] }
 0x134   : > { %2032 = vmatprep.mubr.f32.mxu1 %v6180_v4 }
 0x136   : > { %3793 = vmatmul.mubr.msk.f32.gmra.mxu0 %vm519_vm1, %v398_v8  ;;  %v420_v8 = vld [vmem:[%s4808_s20 + $0xf8] sm:$0xff] }
 0x137   : > { %3831 = vmatmul.mubr.msk.f32.gmra.mxu1 %vm519_vm1, %v436_v9  ;;  %1810 = vmatprep.mubr.f32.mxu0 %v6180_v4  ;;  %v458_v9 = vld [vmem:[%s4808_s20 + $0x228] sm:$0xff] }
 0x138   : > { %2038 = vmatprep.mubr.f32.mxu1 %v6180_v4 }
 0x13a   : > { %3794 = vmatmul.mubr.msk.f32.gmra.mxu0 %vm519_vm1, %v399_v10  ;;  %v421_v10 = vld [vmem:[%s4808_s20 + $0x100] sm:$0xff] }
 0x13b   : > { %3832 = vmatmul.mubr.msk.f32.gmra.mxu1 %vm519_vm1, %v437_v11  ;;  %1816 = vmatprep.mubr.f32.mxu0 %v6180_v4  ;;  %v459_v11 = vld [vmem:[%s4808_s20 + $0x230] sm:$0xff] }
 0x13c   : > { %2044 = vmatprep.mubr.f32.mxu1 %v6180_v4 }
 0x13e   : > { %3795 = vmatmul.mubr.msk.f32.gmra.mxu0 %vm519_vm1, %v400_v12  ;;  %v422_v12 = vld [vmem:[%s4808_s20 + $0x108] sm:$0xff] }
 0x13f   : > { %3833 = vmatmul.mubr.msk.f32.gmra.mxu1 %vm519_vm1, %v438_v13  ;;  %1822 = vmatprep.mubr.f32.mxu0 %v6180_v4  ;;  %v460_v13 = vld [vmem:[%s4808_s20 + $0x238] sm:$0xff] }
 0x140   : > { %2050 = vmatprep.mubr.f32.mxu1 %v6180_v4 }
 0x142   : > { %3796 = vmatmul.mubr.msk.f32.gmra.mxu0 %vm519_vm1, %v401_v14  ;;  %v423_v14 = vld [vmem:[%s4808_s20 + $0x110] sm:$0xff] }
 0x143   : > { %3834 = vmatmul.mubr.msk.f32.gmra.mxu1 %vm519_vm1, %v439_v15  ;;  %1828 = vmatprep.mubr.f32.mxu0 %v6180_v4  ;;  %v461_v15 = vld [vmem:[%s4808_s20 + $0x240] sm:$0xff] }
 0x144   : > { %2056 = vmatprep.mubr.f32.mxu1 %v6180_v4 }
 0x146   : > { %3797 = vmatmul.mubr.msk.f32.gmra.mxu0 %vm519_vm1, %v402_v16  ;;  %v424_v16 = vld [vmem:[%s4808_s20 + $0x118] sm:$0xff] }
 0x147   : > { %3835 = vmatmul.mubr.msk.f32.gmra.mxu1 %vm519_vm1, %v440_v17  ;;  %1834 = vmatprep.mubr.f32.mxu0 %v6180_v4  ;;  %v462_v17 = vld [vmem:[%s4808_s20 + $0x248] sm:$0xff] }
 0x148   : > { %2062 = vmatprep.mubr.f32.mxu1 %v6180_v4 }
 0x14a   : > { %3798 = vmatmul.mubr.msk.f32.gmra.mxu0 %vm519_vm1, %v403_v18  ;;  %v425_v18 = vld [vmem:[%s4808_s20 + $0x120] sm:$0xff] }
 0x14b   : > { %3836 = vmatmul.mubr.msk.f32.gmra.mxu1 %vm519_vm1, %v441_v20  ;;  %1840 = vmatprep.mubr.f32.mxu0 %v6180_v4  ;;  %v463_v20 = vld [vmem:[%s4808_s20 + $0x250] sm:$0xff] }
 0x14c   : > { %2068 = vmatprep.mubr.f32.mxu1 %v6180_v4 }
 0x14e   : > { %3799 = vmatmul.mubr.msk.f32.gmra.mxu0 %vm519_vm1, %v404_v21  ;;  %v426_v21 = vld [vmem:[%s4808_s20 + $0x128] sm:$0xff] }
 0x14f   : > { %3837 = vmatmul.mubr.msk.f32.gmra.mxu1 %vm519_vm1, %v442_v22  ;;  %1846 = vmatprep.mubr.f32.mxu0 %v6180_v4  ;;  %v464_v22 = vld [vmem:[%s4808_s20 + $0x258] sm:$0xff] }
 0x150   : > { %2074 = vmatprep.mubr.f32.mxu1 %v6180_v4 }
 0x152   : > { %3800 = vmatmul.mubr.msk.f32.gmra.mxu0 %vm519_vm1, %v405_v23  ;;  %v465_v23 = vld [vmem:[%s4808_s20 + $0x260] sm:$0xff] }
 0x153   : > { %3838 = vmatmul.mubr.msk.f32.gmra.mxu1 %vm519_vm1, %v443_v24  ;;  %1852 = vmatprep.mubr.f32.mxu0 %v6180_v4  ;;  %v466_v24 = vld [vmem:[%s4808_s20 + $0x268] sm:$0xff] }
 0x154   : > { %2080 = vmatprep.mubr.f32.mxu1 %v6180_v4 }
 0x156   : > { %3801 = vmatmul.mubr.msk.f32.gmra.mxu0 %vm519_vm1, %v406_v26  ;;  %v467_v26 = vld [vmem:[%s4808_s20 + $0x270] sm:$0xff] }
 0x157   : > { %3839 = vmatmul.mubr.msk.f32.gmra.mxu1 %vm519_vm1, %v444_v27  ;;  %1858 = vmatprep.mubr.f32.mxu0 %v6180_v4  ;;  %v469_v27 = vld [vmem:[%s4808_s20 + $0x280] sm:$0xff] }
 0x158   : > { %2086 = vmatprep.mubr.f32.mxu1 %v6180_v4 }
 0x15a   : > { %3802 = vmatmul.mubr.msk.f32.gmra.mxu0 %vm519_vm1, %v407_v28  ;;  %v470_v28 = vld [vmem:[%s4808_s20 + $0x288] sm:$0xff] }
 0x15b   : > { %3840 = vmatmul.mubr.msk.f32.gmra.mxu1 %vm519_vm1, %v445_v29  ;;  %1864 = vmatprep.mubr.f32.mxu0 %v6180_v4  ;;  %v471_v29 = vld [vmem:[%s4808_s20 + $0x290] sm:$0xff] }
 0x15c   : > { %2092 = vmatprep.mubr.f32.mxu1 %v6180_v4 }
 0x15e   : > { %3803 = vmatmul.mubr.msk.f32.gmra.mxu0 %vm519_vm1, %v408_v30  ;;  %v472_v30 = vld [vmem:[%s4808_s20 + $0x298] sm:$0xff] }
 0x15f   : > { %3841 = vmatmul.mubr.msk.f32.gmra.mxu1 %vm519_vm1, %v446_v31  ;;  %1870 = vmatprep.mubr.f32.mxu0 %v6180_v4  ;;  %v473_v31 = vld [vmem:[%s4808_s20 + $0x2a0] sm:$0xff] }
 0x160   : > { %2098 = vmatprep.mubr.f32.mxu1 %v6180_v4 }
 0x162   : > { %3804 = vmatmul.mubr.msk.f32.gmra.mxu0 %vm519_vm1, %v409_v48  ;;  %v474_v48 = vld [vmem:[%s4808_s20 + $0x2a8] sm:$0xff] }
 0x163   : > { %3842 = vmatmul.mubr.msk.f32.gmra.mxu1 %vm519_vm1, %v447_v49  ;;  %1876 = vmatprep.mubr.f32.mxu0 %v6180_v4  ;;  %v475_v49 = vld [vmem:[%s4808_s20 + $0x2b0] sm:$0xff] }
 0x164   : > { %2104 = vmatprep.mubr.f32.mxu1 %v6180_v4 }
 0x166   : > { %3805 = vmatmul.mubr.msk.f32.gmra.mxu0 %vm519_vm1, %v410_v50 }
 0x167   : > { %3843 = vmatmul.mubr.msk.f32.gmra.mxu1 %vm519_vm1, %v448_v51  ;;  %1882 = vmatprep.mubr.f32.mxu0 %v6180_v4 }
 0x168   : > { %2110 = vmatprep.mubr.f32.mxu1 %v6180_v4 }
 0x16a   : > { %3806 = vmatmul.mubr.msk.f32.gmra.mxu0 %vm519_vm1, %v411_v52 }
 0x16b   : > { %3844 = vmatmul.mubr.msk.f32.gmra.mxu1 %vm519_vm1, %v449_v53  ;;  %1888 = vmatprep.mubr.f32.mxu0 %v6180_v4  ;;  %v476_v53 = vld [vmem:[%s4808_s20 + $0x2b8] sm:$0xff] }
 0x16c   : > { %2116 = vmatprep.mubr.f32.mxu1 %v6180_v4 }
 0x16e   : > { %3807 = vmatmul.mubr.msk.f32.gmra.mxu0 %vm519_vm1, %v412_v54 }
 0x16f   : > { %3845 = vmatmul.mubr.msk.f32.gmra.mxu1 %vm519_vm1, %v450_v55  ;;  %1894 = vmatprep.mubr.f32.mxu0 %v6180_v4 }
 0x170   : > { %2122 = vmatprep.mubr.f32.mxu1 %v6180_v4 }
 0x172   : > { %3808 = vmatmul.mubr.msk.f32.gmra.mxu0 %vm519_vm1, %v413_v56 }
 0x173   : > { %3846 = vmatmul.mubr.msk.f32.gmra.mxu1 %vm519_vm1, %v451_v57  ;;  %1900 = vmatprep.mubr.f32.mxu0 %v6180_v4 }
 0x174   : > { %2128 = vmatprep.mubr.f32.mxu1 %v6180_v4 }
 0x176   : > { %3809 = vmatmul.mubr.msk.f32.gmra.mxu0 %vm519_vm1, %v414_v58  ;;  %v477_v58 = vld [vmem:[%s4808_s20 + $0x2c0] sm:$0xff] }
 0x177   : > { %3847 = vmatmul.mubr.msk.f32.gmra.mxu1 %vm519_vm1, %v452_v60  ;;  %1906 = vmatprep.mubr.f32.mxu0 %v6180_v4 }
 0x178   : > { %2134 = vmatprep.mubr.f32.mxu1 %v6180_v4 }
 0x17a   : > { %3810 = vmatmul.mubr.msk.f32.gmra.mxu0 %vm519_vm1, %v415_v61 }
 0x17b   : > { %3848 = vmatmul.mubr.msk.f32.gmra.mxu1 %vm519_vm1, %v453_v62  ;;  %1912 = vmatprep.mubr.f32.mxu0 %v6180_v4 }
 0x17c   : > { %2140 = vmatprep.mubr.f32.mxu1 %v6180_v4 }
 0x17e   : > { %3811 = vmatmul.mubr.msk.f32.gmra.mxu0 %vm519_vm1, %v416_v63 }
 0x17f   : > { %3849 = vmatmul.mubr.msk.f32.gmra.mxu1 %vm519_vm1, %v454_v0  ;;  %1918 = vmatprep.mubr.f32.mxu0 %v6180_v4  ;;  %v478_v0 = vld [vmem:[%s4808_s20 + $0x2c8] sm:$0xff] }
 0x180   : > { %2146 = vmatprep.mubr.f32.mxu1 %v6180_v4 }
 0x182   : > { %3812 = vmatmul.mubr.msk.f32.gmra.mxu0 %vm519_vm1, %v417_v1 }
 0x183   : > { %3850 = vmatmul.mubr.msk.f32.gmra.mxu1 %vm519_vm1, %v455_v2  ;;  %1924 = vmatprep.mubr.f32.mxu0 %v6180_v4 }
 0x184   : > { %2152 = vmatprep.mubr.f32.mxu1 %v6180_v4 }
 0x186   : > { %3813 = vmatmul.mubr.msk.f32.gmra.mxu0 %vm519_vm1, %v418_v3 }
 0x187   : > { %3851 = vmatmul.mubr.msk.f32.gmra.mxu1 %vm519_vm1, %v456_v5  ;;  %1930 = vmatprep.mubr.f32.mxu0 %v6180_v4 }
 0x188   : > { %2158 = vmatprep.mubr.f32.mxu1 %v6180_v4 }
 0x18a   : > { %3814 = vmatmul.mubr.msk.f32.gmra.mxu0 %vm519_vm1, %v419_v6  ;;  %v479_v6 = vld [vmem:[%s4808_s20 + $0x2d0] sm:$0xff] }
 0x18b   : > { %3852 = vmatmul.mubr.msk.f32.gmra.mxu1 %vm519_vm1, %v457_v7  ;;  %1936 = vmatprep.mubr.f32.mxu0 %v6180_v4 }
 0x18c   : > { %2164 = vmatprep.mubr.f32.mxu1 %v6180_v4 }
 0x18e   : > { %3815 = vmatmul.mubr.msk.f32.gmra.mxu0 %vm519_vm1, %v420_v8 }
 0x18f   : > { %3853 = vmatmul.mubr.msk.f32.gmra.mxu1 %vm519_vm1, %v458_v9  ;;  %1942 = vmatprep.mubr.f32.mxu0 %v6180_v4 }
 0x190   : > { %2170 = vmatprep.mubr.f32.mxu1 %v6180_v4 }
 0x192   : > { %3816 = vmatmul.mubr.msk.f32.gmra.mxu0 %vm519_vm1, %v421_v10 }
 0x193   : > { %3854 = vmatmul.mubr.msk.f32.gmra.mxu1 %vm519_vm1, %v459_v11  ;;  %1948 = vmatprep.mubr.f32.mxu0 %v6180_v4  ;;  %v480_v11 = vld [vmem:[%s4808_s20 + $0x2d8] sm:$0xff] }
 0x194   : > { %2176 = vmatprep.mubr.f32.mxu1 %v6180_v4 }
 0x196   : > { %3817 = vmatmul.mubr.msk.f32.gmra.mxu0 %vm519_vm1, %v422_v12 }
 0x197   : > { %3855 = vmatmul.mubr.msk.f32.gmra.mxu1 %vm519_vm1, %v460_v13  ;;  %1954 = vmatprep.mubr.f32.mxu0 %v6180_v4 }
 0x198   : > { %2182 = vmatprep.mubr.f32.mxu1 %v6180_v4 }
 0x19a   : > { %3818 = vmatmul.mubr.msk.f32.gmra.mxu0 %vm519_vm1, %v423_v14 }
 0x19b   : > { %3856 = vmatmul.mubr.msk.f32.gmra.mxu1 %vm519_vm1, %v461_v15  ;;  %1960 = vmatprep.mubr.f32.mxu0 %v6180_v4 }
 0x19c   : > { %2188 = vmatprep.mubr.f32.mxu1 %v6180_v4 }
 0x19e   : > { %3819 = vmatmul.mubr.msk.f32.gmra.mxu0 %vm519_vm1, %v424_v16  ;;  %v481_v16 = vld [vmem:[%s4808_s20 + $0x2e0] sm:$0xff] }
 0x19f   : > { %3857 = vmatmul.mubr.msk.f32.gmra.mxu1 %vm519_vm1, %v462_v17  ;;  %1966 = vmatprep.mubr.f32.mxu0 %v6180_v4 }
 0x1a0   : > { %2194 = vmatprep.mubr.f32.mxu1 %v6180_v4 }
 0x1a2   : > { %3820 = vmatmul.mubr.msk.f32.gmra.mxu0 %vm519_vm1, %v425_v18 }
 0x1a3   : > { %3858 = vmatmul.mubr.msk.f32.gmra.mxu1 %vm519_vm1, %v463_v20  ;;  %1972 = vmatprep.mubr.f32.mxu0 %v6180_v4 }
 0x1a4   : > { %2200 = vmatprep.mubr.f32.mxu1 %v6180_v4 }
 0x1a6   : > { %3821 = vmatmul.mubr.msk.f32.gmra.mxu0 %vm519_vm1, %v426_v21 }
 0x1a7   : > { %3859 = vmatmul.mubr.msk.f32.gmra.mxu1 %vm519_vm1, %v464_v22  ;;  %3359 = vmatprep.mubr.f32.mxu0 %v4750_v34  ;;  %v468_v34 = vld [vmem:[%s4808_s20 + $0x278] sm:$0xff]  ;;  %v482_v22 = vld [vmem:[%s4808_s20 + $0x2e8] sm:$0xff] }
 0x1a8   : > { %2206 = vmatprep.mubr.f32.mxu1 %v6180_v4 }
 0x1ab   : > { %3860 = vmatmul.mubr.msk.f32.gmra.mxu1 %vm519_vm1, %v465_v23 }
 0x1ac   : > { %2212 = vmatprep.mubr.f32.mxu1 %v6180_v4 }
 0x1af   : > { %3861 = vmatmul.mubr.msk.f32.gmra.mxu1 %vm519_vm1, %v466_v24 }
 0x1b0   : > { %2218 = vmatprep.mubr.f32.mxu1 %v6180_v4 }
 0x1b3   : > { %3862 = vmatmul.mubr.msk.f32.gmra.mxu1 %vm519_vm1, %v467_v26 }
 0x1b4   : > { %2224 = vmatprep.mubr.f32.mxu1 %v6180_v4 }
 0x1b7   : > { %3863 = vmatmul.mubr.msk.f32.gmra.mxu1 %vm519_vm1, %v468_v34 }
 0x1b8   : > { %2230 = vmatprep.mubr.f32.mxu1 %v6180_v4 }
 0x1bb   : > { %3864 = vmatmul.mubr.msk.f32.gmra.mxu1 %vm519_vm1, %v469_v27  ;;  %v483_v27 = vld [vmem:[%s4808_s20 + $0x2f0] sm:$0xff] }
 0x1bc   : > { %2236 = vmatprep.mubr.f32.mxu1 %v6180_v4 }
 0x1bf   : > { %3865 = vmatmul.mubr.msk.f32.gmra.mxu1 %vm519_vm1, %v470_v28 }
 0x1c0   : > { %2242 = vmatprep.mubr.f32.mxu1 %v6180_v4 }
 0x1c3   : > { %3866 = vmatmul.mubr.msk.f32.gmra.mxu1 %vm519_vm1, %v471_v29 }
 0x1c4   : > { %2248 = vmatprep.mubr.f32.mxu1 %v6180_v4 }
 0x1c7   : > { %3867 = vmatmul.mubr.msk.f32.gmra.mxu1 %vm519_vm1, %v472_v30 }
 0x1c8   : > { %2254 = vmatprep.mubr.f32.mxu1 %v6180_v4 }
 0x1cb   : > { %3868 = vmatmul.mubr.msk.f32.gmra.mxu1 %vm519_vm1, %v473_v31 }
 0x1cc   : > { %2260 = vmatprep.mubr.f32.mxu1 %v6180_v4 }
 0x1cf   : > { %3869 = vmatmul.mubr.msk.f32.gmra.mxu1 %vm519_vm1, %v474_v48  ;;  %v484_v48 = vld [vmem:[%s4808_s20 + $0x2f8] sm:$0xff] }
 0x1d0   : > { %2266 = vmatprep.mubr.f32.mxu1 %v6180_v4 }
 0x1d2   : > { %v5073_v50 = vpop.f32.mrf.mxu0 }
 0x1d3   : > { %v5075_v51 = vpop.f32.mrf.mxu1  ;;  %3870 = vmatmul.mubr.msk.f32.gmra.mxu1 %vm519_vm1, %v475_v49 }
 0x1d4   : > { %6200 = vst [vmem:[#allocation19_spill] sm:$0xff] %v5075_v51  ;;  %v5078_v52 = vpop.f32.mrf.mxu0  ;;  %2272 = vmatprep.mubr.f32.mxu1 %v6180_v4 }
 0x1d5   : > { %v5082_v54 = vpop.f32.mrf.mxu1 }
 0x1d6   : > { %6201 = vst [vmem:[#allocation20_spill] sm:$0xff] %v5082_v54  ;;  %v5084_v55 = vpop.f32.mrf.mxu0 }
 0x1d7   : > { %v5086_v56 = vpop.f32.mrf.mxu1  ;;  %3871 = vmatmul.mubr.msk.f32.gmra.mxu1 %vm519_vm1, %v476_v53 }
 0x1d8   : > { %6202 = vst [vmem:[#allocation21_spill] sm:$0xff] %v5086_v56  ;;  %v5089_v57 = vpop.f32.mrf.mxu0  ;;  %2278 = vmatprep.mubr.f32.mxu1 %v6180_v4 }
 0x1d9   : > { %v5093_v60 = vpop.f32.mrf.mxu1 }
 0x1da   : > { %v5095_v61 = vpop.f32.mrf.mxu0 }
 0x1db   : > { %v5097_v62 = vpop.f32.mrf.mxu1  ;;  %3872 = vmatmul.mubr.msk.f32.gmra.mxu1 %vm519_vm1, %v477_v58 }
 0x1dc   : > { %v5100_v63 = vpop.f32.mrf.mxu0  ;;  %2284 = vmatprep.mubr.f32.mxu1 %v6180_v4 }
 0x1dd   : > { %v5104_v1 = vpop.f32.mrf.mxu1 }
 0x1de   : > { %v5106_v2 = vpop.f32.mrf.mxu0 }
 0x1df   : > { %v5108_v3 = vpop.f32.mrf.mxu1  ;;  %3873 = vmatmul.mubr.msk.f32.gmra.mxu1 %vm519_vm1, %v478_v0 }
 0x1e0   : > { %v5111_v5 = vpop.f32.mrf.mxu0  ;;  %2290 = vmatprep.mubr.f32.mxu1 %v6180_v4 }
 0x1e1   : > { %v5115_v7 = vpop.f32.mrf.mxu1 }
 0x1e2   : > { %v5117_v8 = vpop.f32.mrf.mxu0 }
 0x1e3   : > { %v5119_v9 = vpop.f32.mrf.mxu1  ;;  %3874 = vmatmul.mubr.msk.f32.gmra.mxu1 %vm519_vm1, %v479_v6  ;;  %v485_v6 = vld [vmem:[%s4808_s20 + $0x300] sm:$0xff] }
 0x1e4   : > { %v5122_v10 = vpop.f32.mrf.mxu0  ;;  %2296 = vmatprep.mubr.f32.mxu1 %v6180_v4 }
 0x1e5   : > { %v5126_v12 = vpop.f32.mrf.mxu1 }
 0x1e6   : > { %v5128_v13 = vpop.f32.mrf.mxu0 }
 0x1e7   : > { %v5130_v14 = vpop.f32.mrf.mxu1  ;;  %3875 = vmatmul.mubr.msk.f32.gmra.mxu1 %vm519_vm1, %v480_v11 }
 0x1e8   : > { %v5133_v15 = vpop.f32.mrf.mxu0  ;;  %2302 = vmatprep.mubr.f32.mxu1 %v6180_v4 }
 0x1e9   : > { %v5137_v17 = vpop.f32.mrf.mxu1 }
 0x1ea   : > { %v5139_v18 = vpop.f32.mrf.mxu0 }
 0x1eb   : > { %v5141_v20 = vpop.f32.mrf.mxu1  ;;  %3876 = vmatmul.mubr.msk.f32.gmra.mxu1 %vm519_vm1, %v481_v16 }
 0x1ec   : > { %v5144_v21 = vpop.f32.mrf.mxu0  ;;  %2308 = vmatprep.mubr.f32.mxu1 %v6180_v4 }
 0x1ed   : > { %v5148_v23 = vpop.f32.mrf.mxu1 }
 0x1ee   : > { %v5150_v24 = vpop.f32.mrf.mxu0 }
 0x1ef   : > { %v5152_v26 = vpop.f32.mrf.mxu1  ;;  %3877 = vmatmul.mubr.msk.f32.gmra.mxu1 %vm519_vm1, %v482_v22 }
 0x1f0   : > { %v5155_v34 = vpop.f32.mrf.mxu0  ;;  %2314 = vmatprep.mubr.f32.mxu1 %v6180_v4 }
 0x1f1   : > { %v5159_v28 = vpop.f32.mrf.mxu1 }
 0x1f2   : > { %v5161_v29 = vpop.f32.mrf.mxu0 }
 0x1f3   : > { %v5163_v30 = vpop.f32.mrf.mxu1  ;;  %3878 = vmatmul.mubr.msk.f32.gmra.mxu1 %vm519_vm1, %v483_v27  ;;  %v1248_v27 = vpop.xlane.xlu1 %1247 }
 0x1f4   : > { %v5166_v31 = vpop.f32.mrf.mxu0  ;;  %2320 = vmatprep.mubr.f32.mxu1 %v6180_v4  ;;  %v1267_v35 = vmul.f32 %v1248_v27, %v4801_v25 }
 0x1f5   : > { %v5170_v49 = vpop.f32.mrf.mxu1 }
 0x1f6   : > { %v5172_v53 = vpop.f32.mrf.mxu0 }
 0x1f7   : > { %v5174_v58 = vpop.f32.mrf.mxu1  ;;  %3879 = vmatmul.mubr.msk.f32.gmra.mxu1 %vm519_vm1, %v484_v48  ;;  %v486_v48 = vld [vmem:[%s4808_s20 + $0x308] sm:$0xff]  ;;  %v1265_v40 = vpop.xlane.xlu1 %1264 }
 0x1f8   : > { %v5177_v0 = vpop.f32.mrf.mxu0  ;;  %2326 = vmatprep.mubr.f32.mxu1 %v6180_v4 }
 0x1f9   : > { %v5181_v11 = vpop.f32.mrf.mxu1 }
 0x1fa   : > { %v5183_v16 = vpop.f32.mrf.mxu0 }
 0x1fb   : > { %v5185_v22 = vpop.f32.mrf.mxu1  ;;  %3880 = vmatmul.mubr.msk.f32.gmra.mxu1 %vm519_vm1, %v485_v6  ;;  %v487_v6 = vld [vmem:[%s4808_s20 + $0x310] sm:$0xff] }
 0x1fc   : > { %6203 = vst [vmem:[#allocation22_spill] sm:$0xff] %v5185_v22  ;;  %v5188_v45 = vpop.f32.mrf.mxu0  ;;  %2332 = vmatprep.mubr.f32.mxu1 %v6180_v4  ;;  %v1269_v22 = vmul.f32 %v1265_v40, %v4801_v25  ;;  %v490_v25 = vld [vmem:[%s4808_s20 + $0x328] sm:$0xff] }
 0x1fd   : > { %v5192_v47 = vpop.f32.mrf.mxu1 }
 0x1fe   : > { %6204 = vst [vmem:[#allocation23_spill] sm:$0xff] %v5192_v47  ;;  %v5194_v41 = vpop.f32.mrf.mxu0  ;;  %v1271_v32 = vmax.f32 %v1267_v35, %v1269_v22 }
 0x1ff   : > { %v5196_v43 = vpop.f32.mrf.mxu1  ;;  %3881 = vmatmul.mubr.msk.f32.gmra.mxu1 %vm519_vm1, %v486_v48  ;;  %v1268_v48 = vmul.f32 %v1265_v40, %v4795_v19 }
 0x200   : > { %6205 = vst [vmem:[#allocation24_spill] sm:$0xff] %v5196_v43  ;;  %v5199_v44 = vpop.f32.mrf.mxu0  ;;  %2338 = vmatprep.mubr.f32.mxu1 %v6180_v4 }
 0x201   : > { %v5203_v46 = vpop.f32.mrf.mxu1 }
 0x202   : > { %6206 = vst [vmem:[#allocation25_spill] sm:$0xff] %v5203_v46  ;;  %v5205_v42 = vpop.f32.mrf.mxu0  ;;  %v1266_v46 = vmul.f32 %v1248_v27, %v4795_v19  ;;  %v5234_v27 = vrot.slane %v1271_v32, %v4781_v59 }
 0x203   : > { %v5207_v37 = vpop.f32.mrf.mxu1  ;;  %3882 = vmatmul.mubr.msk.f32.gmra.mxu1 %vm519_vm1, %v487_v6 }
 0x204   : > { %6207 = vst [vmem:[#allocation26_spill] sm:$0xff] %v5207_v37  ;;  %v1826_v39 = vpop.f32.mrf.mxu0  ;;  %2344 = vmatprep.mubr.f32.mxu1 %v6180_v4  ;;  %v489_v37 = vld [vmem:[%s4808_s20 + $0x320] sm:$0xff]  ;;  %v1270_v38 = vmax.f32 %v1266_v46, %v1268_v48 }
 0x205   : > { %v5214_v47 = vpop.f32.mrf.mxu1 }
 0x206   : > { %6208 = vst [vmem:[#allocation27_spill] sm:$0xff] %v5214_v47  ;;  %v1830_v43 = vpop.f32.mrf.mxu0 }
 0x207   : > { %v5218_v36 = vpop.f32.mrf.mxu1  ;;  %3883 = vmatmul.mubr.msk.f32.gmra.mxu1 %vm519_vm1, %v488_v33  ;;  %v5231_v33 = vrot.slane %v1270_v38, %v4781_v59  ;;  %v491_v38 = vld [vmem:[%s4808_s20 + $0x330] sm:$0xff] }
 0x208   : > { %6209 = vst [vmem:[#allocation28_spill] sm:$0xff] %v5218_v36  ;;  %v1832_v6 = vpop.f32.mrf.mxu0  ;;  %2350 = vmatprep.mubr.f32.mxu1 %v6180_v4 }
 0x209   : > { %v5223_v51 = vpop.f32.mrf.mxu1  ;;  %v2554_v32 = vsub.f32 %v1832_v6, %v5234_v27  ;;  %v2551_v6 = vsub.f32 %v5205_v42, %v5231_v33 }
 0x20a   : > { %6210 = vst [vmem:[#allocation29_spill] sm:$0xff] %v5223_v51  ;;  %v1836_v40 = vpop.f32.mrf.mxu0  ;;  %v6214_v51 = vmov 0.0  }
 0x20b   : > { %v5225_v47 = vpop.f32.mrf.mxu1  ;;  %3884 = vmatmul.mubr.msk.f32.gmra.mxu1 %vm519_vm1, %v489_v37  ;;  %v2555_v37 = vsub.f32 %v1836_v40, %v5231_v33 }
 0x20c   : > { %6211 = vst [vmem:[#allocation30_spill] sm:$0xff] %v5225_v47  ;;  %v1838_v19 = vpop.f32.mrf.mxu0  ;;  %2356 = vmatprep.mubr.f32.mxu1 %v6180_v4 }
 0x20d   : > { %v5236_v46 = vpop.f32.mrf.mxu1  ;;  %v2556_v22 = vsub.f32 %v1838_v19, %v5234_v27  ;;  %v2553_v19 = vsub.f32 %v1830_v43, %v5231_v33  ;;  %v2839_v56 = vmul.f32 1.442695, %v2555_v37  ;;  %v492_v43 = vld [vmem:[%s4808_s20 + $0x338] sm:$0xff]  ;;  %v2548_v37 = vsub.f32 %v5188_v45, %v5234_v27 }
 0x20e   : > { %6212 = vst [vmem:[#allocation31_spill] sm:$0xff] %v5236_v46  ;;  %v1842_v35 = vpop.f32.mrf.mxu0 }
 0x20f   : > { %v2557_v48 = vsub.f32 %v1842_v35, %v5231_v33  ;;  %v5240_v36 = vpop.f32.mrf.mxu1  ;;  %3885 = vmatmul.mubr.msk.f32.gmra.mxu1 %vm519_vm1, %v490_v25  ;;  %v2552_v25 = vsub.f32 %v1826_v39, %v5234_v27 }
 0x210   : > { %6213 = vst [vmem:[#allocation32_spill] sm:$0xff] %v5240_v36  ;;  %v1844_v4 = vpop.f32.mrf.mxu0  ;;  %2362 = vmatprep.mubr.f32.mxu1 %v6214_v51  ;;  %v2841_v36 = vmul.f32 1.442695, %v2556_v22  ;;  %v2835_v22 = vmul.f32 1.442695, %v2553_v19  ;;  %v2546_v19 = vsub.f32 %v5177_v0, %v5234_v27 }
 0x211   : > { %v2558_v59 = vsub.f32 %v1844_v4, %v5234_v27  ;;  %v5248_v47 = vpop.f32.mrf.mxu1  ;;  %v2843_v35 = vmul.f32 1.442695, %v2557_v48  ;;  %v2550_v48 = vsub.f32 %v5199_v44, %v5234_v27  ;;  %v2547_v44 = vsub.f32 %v5183_v16, %v5231_v33 }
 0x212   : > { %6215 = vst [vmem:[#allocation33_spill] sm:$0xff] %v5248_v47  ;;  %v5251_v46 = vpop.f32.mrf.mxu0  ;;  %v2837_v47 = vmul.f32 1.442695, %v2554_v32  ;;  %v2831_v32 = vmul.f32 1.442695, %v2551_v6 }
 0x213   : > { %v2845_v40 = vmul.f32 1.442695, %v2558_v59  ;;  %v5254_v54 = vpop.f32.mrf.mxu1  ;;  %3886 = vmatmul.mubr.msk.f32.gmra.mxu1 %vm519_vm1, %v491_v38  ;;  %v2549_v59 = vsub.f32 %v5194_v41, %v5231_v33  ;;  %v2833_v38 = vmul.f32 1.442695, %v2552_v25  ;;  %v493_v41 = vld [vmem:[%s4808_s20 + $0x340] sm:$0xff] }
 0x214   : > { %6216 = vst [vmem:[#allocation34_spill] sm:$0xff] %v5254_v54  ;;  %v5259_v4 = vpop.f32.mrf.mxu0  ;;  %2368 = vmatprep.mubr.f32.mxu1 %v6214_v51  ;;  %v2829_v45 = vmul.f32 1.442695, %v2550_v48  ;;  %v2825_v6 = vmul.f32 1.442695, %v2548_v37  ;;  %v2541_v37 = vsub.f32 %v5150_v24, %v5231_v33  ;;  %v495_v24 = vld [vmem:[%s4808_s20 + $0x350] sm:$0xff] }
 0x215   : > { %3979 = vpow2.f32 %v2845_v40  ;;  %v5265_v39 = vpop.f32.mrf.mxu1  ;;  %v2827_v25 = vmul.f32 1.442695, %v2549_v59  ;;  %v2823_v0 = vmul.f32 1.442695, %v2547_v44  ;;  %v2542_v59 = vsub.f32 %v5155_v34, %v5234_v27 }
 0x216   : > { %6217 = vst [vmem:[#allocation35_spill] sm:$0xff] %v5265_v39  ;;  %3981 = vpow2.f32 %v2843_v35  ;;  %v5269_v42 = vpop.f32.mrf.mxu0  ;;  %v2545_v35 = vsub.f32 %v5172_v53, %v5231_v33  ;;  %v494_v53 = vld [vmem:[%s4808_s20 + $0x348] sm:$0xff]  ;;  %v2540_v44 = vsub.f32 %v5144_v21, %v5234_v27  ;;  %v2539_v34 = vsub.f32 %v5139_v18, %v5231_v33 }
 0x217   : > { %3983 = vpow2.f32 %v2841_v36  ;;  %v5273_v54 = vpop.f32.mrf.mxu1  ;;  %3887 = vmatmul.mubr.msk.f32.gmra.mxu1 %vm519_vm1, %v492_v43  ;;  %v2813_v21 = vmul.f32 1.442695, %v2542_v59 }
 0x218   : > { %6218 = vst [vmem:[#allocation36_spill] sm:$0xff] %v5273_v54  ;;  %3985 = vpow2.f32 %v2839_v56  ;;  %v5278_v40 = vpop.f32.mrf.mxu0  ;;  %2374 = vmatprep.mubr.f32.mxu1 %v6214_v51  ;;  %v2544_v56 = vsub.f32 %v5166_v31, %v5234_v27  ;;  %v2821_v31 = vmul.f32 1.442695, %v2546_v19  ;;  %v2809_v39 = vmul.f32 1.442695, %v2540_v44 }
 0x219   : > { %3987 = vpow2.f32 %v2837_v47  ;;  %v5284_v36 = vpop.f32.mrf.mxu1  ;;  %v2543_v47 = vsub.f32 %v5161_v29, %v5231_v33  ;;  %v2534_v44 = vsub.f32 %v5111_v5, %v5234_v27  ;;  %v2532_v54 = vsub.f32 %v5100_v63, %v5234_v27 }
 0x21a   : > { %6219 = vst [vmem:[#allocation37_spill] sm:$0xff] %v5284_v36  ;;  %3989 = vpow2.f32 %v2835_v22  ;;  %v5288_v16 = vpop.f32.mrf.mxu0 }
 0x21b   : > { %3991 = vpow2.f32 %v2833_v38  ;;  %v5292_v43 = vpop.f32.mrf.mxu1  ;;  %3888 = vmatmul.mubr.msk.f32.gmra.mxu1 %vm519_vm1, %v493_v41  ;;  %v2819_v38 = vmul.f32 1.442695, %v2545_v35  ;;  %v2815_v19 = vmul.f32 1.442695, %v2543_v47  ;;  %v2538_v35 = vsub.f32 %v5133_v15, %v5234_v27 }
 0x21c   : > { %6220 = vst [vmem:[#allocation38_spill] sm:$0xff] %v5292_v43  ;;  %3993 = vpow2.f32 %v2831_v32  ;;  %v5297_v48 = vpop.f32.mrf.mxu0  ;;  %2380 = vmatprep.mubr.f32.mxu1 %v6214_v51  ;;  %v2817_v32 = vmul.f32 1.442695, %v2544_v56 }
 0x21d   : > { %3995 = vpow2.f32 %v2829_v45  ;;  %v5303_v22 = vpop.f32.mrf.mxu1 }
 0x21e   : > { %6221 = vst [vmem:[#allocation39_spill] sm:$0xff] %v5303_v22  ;;  %3997 = vpow2.f32 %v2827_v25  ;;  %v5307_v29 = vpop.f32.mrf.mxu0 }
 0x21f   : > { %3999 = vpow2.f32 %v2825_v6  ;;  %v5311_v41 = vpop.f32.mrf.mxu1  ;;  %3889 = vmatmul.mubr.msk.f32.gmra.mxu1 %vm519_vm1, %v494_v53  ;;  %v2537_v6 = vsub.f32 %v5128_v13, %v5231_v33  ;;  %v2811_v53 = vmul.f32 1.442695, %v2541_v37  ;;  %v2535_v13 = vsub.f32 %v5117_v8, %v5231_v33 }
 0x220   : > { %6222 = vst [vmem:[#allocation40_spill] sm:$0xff] %v5311_v41  ;;  %4001 = vpow2.f32 %v2823_v0  ;;  %v5316_v45 = vpop.f32.mrf.mxu0  ;;  %2386 = vmatprep.mubr.f32.mxu1 %v6214_v51  ;;  %v2536_v0 = vsub.f32 %v5122_v10, %v5234_v27  ;;  %v2533_v8 = vsub.f32 %v5106_v2, %v5231_v33  ;;  %v2531_v2 = vsub.f32 %v5095_v61, %v5231_v33 }
 0x221   : > { %4003 = vpow2.f32 %v2821_v31  ;;  %v5322_v25 = vpop.f32.mrf.mxu1  ;;  %v2807_v31 = vmul.f32 1.442695, %v2539_v34  ;;  %v2803_v34 = vmul.f32 1.442695, %v2537_v6  ;;  %v2799_v6 = vmul.f32 1.442695, %v2535_v13 }
 0x222   : > { %6223 = vst [vmem:[#allocation41_spill] sm:$0xff] %v5322_v25  ;;  %v3980_v56 = vpop.eup %3979  ;;  %4005 = vpow2.f32 %v2819_v38  ;;  %v5326_v18 = vpop.f32.mrf.mxu0  ;;  %v496_v38 = vld [vmem:[%s4808_s20 + $0x358] sm:$0xff]  ;;  %v2801_v5 = vmul.f32 1.442695, %v2536_v0  ;;  %v2797_v0 = vmul.f32 1.442695, %v2534_v44  ;;  %v2529_v61 = vsub.f32 %v5084_v55, %v5231_v33 }
 0x223   : > { %v3982_v47 = vpop.eup %3981  ;;  %4007 = vpow2.f32 %v2817_v32  ;;  %v5330_v15 = vpop.f32.mrf.mxu1  ;;  %3890 = vmatmul.mubr.msk.f32.gmra.mxu1 %vm519_vm1, %v495_v24  ;;  %3295 = vmatprep.subr.mxu0 %v3980_v56  ;;  %v2805_v32 = vmul.f32 1.442695, %v2538_v35  ;;  %v2795_v13 = vmul.f32 1.442695, %v2533_v8  ;;  %v2527_v55 = vsub.f32 %v5073_v50, %v5231_v33 }
 0x224   : > { %6224 = vst [vmem:[#allocation42_spill] sm:$0xff] %v5330_v15  ;;  %v3984_v59 = vpop.eup %3983  ;;  %4009 = vpow2.f32 %v2815_v19  ;;  %v5335_v37 = vpop.f32.mrf.mxu0  ;;  %3296 = vmatpush1.msra.mxu0 %v3982_v47  ;;  %2392 = vmatprep.mubr.f32.mxu1 %v6214_v51  ;;  %v2791_v8 = vmul.f32 1.442695, %v2531_v2 }
 0x225   : > { %v3986_v10 = vpop.eup %3985  ;;  %4011 = vpow2.f32 %v2813_v21  ;;  %v5341_v24 = vpop.f32.mrf.mxu1  ;;  %3297 = vmatprep.subr.mxu0 %v3984_v59  ;;  %v497_v59 = vld [vmem:[%s4808_s20 + $0x360] sm:$0xff] }
 0x226   : > { %6225 = vst [vmem:[#allocation43_spill] sm:$0xff] %v5341_v24  ;;  %v3988_v56 = vpop.eup %3987  ;;  %4013 = vpow2.f32 %v2811_v53  ;;  %v5345_v19 = vpop.f32.mrf.mxu0  ;;  %3298 = vmatpush1.msra.mxu0 %v3986_v10 }
 0x227   : > { %v3990_v47 = vpop.eup %3989  ;;  %4015 = vpow2.f32 %v2809_v39  ;;  %v5349_v35 = vpop.f32.mrf.mxu1  ;;  %3891 = vmatmul.mubr.msk.f32.gmra.mxu1 %vm519_vm1, %v496_v38  ;;  %3299 = vmatprep.subr.mxu0 %v3988_v56  ;;  %v2530_v39 = vsub.f32 %v5089_v57, %v5234_v27  ;;  %v2793_v57 = vmul.f32 1.442695, %v2532_v54 }
 0x228   : > { %6226 = vst [vmem:[#allocation44_spill] sm:$0xff] %v5349_v35  ;;  %v3992_v21 = vpop.eup %3991  ;;  %4017 = vpow2.f32 %v2807_v31  ;;  %v5354_v53 = vpop.f32.mrf.mxu0  ;;  %3300 = vmatpush1.msra.mxu0 %v3990_v47  ;;  %2398 = vmatprep.mubr.f32.mxu1 %v6214_v51  ;;  %v2528_v47 = vsub.f32 %v5078_v52, %v5234_v27 }
 0x229   : > { %v3994_v63 = vpop.eup %3993  ;;  %4019 = vpow2.f32 %v2805_v32  ;;  %v5360_v38 = vpop.f32.mrf.mxu1  ;;  %3301 = vmatprep.subr.mxu0 %v3992_v21  ;;  %v498_v21 = vld [vmem:[%s4808_s20 + $0x368] sm:$0xff]  ;;  %v2789_v54 = vmul.f32 1.442695, %v2530_v39 }
 0x22a   : > { %6227 = vst [vmem:[#allocation45_spill] sm:$0xff] %v5360_v38  ;;  %v3996_v10 = vpop.eup %3995  ;;  %4021 = vpow2.f32 %v2803_v34  ;;  %v5364_v31 = vpop.f32.mrf.mxu0  ;;  %3302 = vmatpush1.msra.mxu0 %v3994_v63  ;;  %v2787_v63 = vmul.f32 1.442695, %v2529_v61  ;;  %v2785_v2 = vmul.f32 1.442695, %v2528_v47  ;;  %v499_v61 = vld [vmem:[%s4808_s20 + $0x370] sm:$0xff] }
 0x22b   : > { %v3998_v56 = vpop.eup %3997  ;;  %4023 = vpow2.f32 %v2801_v5  ;;  %v5368_v44 = vpop.f32.mrf.mxu1  ;;  %3892 = vmatmul.mubr.msk.f32.gmra.mxu1 %vm519_vm1, %v497_v59  ;;  %3303 = vmatprep.subr.mxu0 %v3996_v10 }
 0x22c   : > { %6228 = vst [vmem:[#allocation46_spill] sm:$0xff] %v5368_v44  ;;  %v4000_v32 = vpop.eup %3999  ;;  %4025 = vpow2.f32 %v2799_v6  ;;  %v5373_v34 = vpop.f32.mrf.mxu0  ;;  %3304 = vmatpush1.msra.mxu0 %v3998_v56  ;;  %2404 = vmatprep.mubr.f32.mxu1 %v6214_v51 }
 0x22d   : > { %v4002_v52 = vpop.eup %4001  ;;  %4027 = vpow2.f32 %v2797_v0  ;;  %v5377_v5 = vpop.f32.mrf.mxu1  ;;  %3305 = vmatprep.subr.mxu0 %v4000_v32  ;;  %v2783_v0 = vmul.f32 1.442695, %v2527_v55 }
 0x22e   : > { %6229 = vst [vmem:[#allocation47_spill] sm:$0xff] %v5377_v5  ;;  %v4004_v59 = vpop.eup %4003  ;;  %4029 = vpow2.f32 %v2795_v13  ;;  %v5379_v10 = vpop.f32.mrf.mxu0  ;;  %3306 = vmatpush1.msra.mxu0 %v4002_v52 }
 0x22f   : > { %v4006_v50 = vpop.eup %4005  ;;  %4031 = vpow2.f32 %v2793_v57  ;;  %v5381_v6 = vpop.f32.mrf.mxu1  ;;  %3893 = vmatmul.mubr.msk.f32.gmra.mxu1 %vm519_vm1, %v498_v21  ;;  %3307 = vmatprep.subr.mxu0 %v4004_v59 }
 0x230   : > { %6230 = vst [vmem:[#allocation48_spill] sm:$0xff] %v5381_v6  ;;  %v4008_v39 = vpop.eup %4007  ;;  %4033 = vpow2.f32 %v2791_v8  ;;  %v5384_v56 = vpop.f32.mrf.mxu0  ;;  %3308 = vmatpush1.msra.mxu0 %v4006_v50  ;;  %2410 = vmatprep.mubr.f32.mxu1 %v6214_v51 }
 0x231   : > { %v4010_v13 = vpop.eup %4009  ;;  %4035 = vpow2.f32 %v2789_v54  ;;  %v5388_v32 = vpop.f32.mrf.mxu1  ;;  %3309 = vmatprep.subr.mxu0 %v4008_v39  ;;  %v500_v54 = vld [vmem:[%s4808_s20 + $0x378] sm:$0xff] }
 0x232   : > { %6231 = vst [vmem:[#allocation49_spill] sm:$0xff] %v5388_v32  ;;  %v4012_v47 = vpop.eup %4011  ;;  %4037 = vpow2.f32 %v2787_v63  ;;  %v5390_v57 = vpop.f32.mrf.mxu0  ;;  %3310 = vmatpush1.msra.mxu0 %v4010_v13 }
 0x233   : > { %v4014_v21 = vpop.eup %4013  ;;  %4039 = vpow2.f32 %v2785_v2  ;;  %v5392_v55 = vpop.f32.mrf.mxu1  ;;  %3894 = vmatmul.mubr.msk.f32.gmra.mxu1 %vm519_vm1, %v499_v61  ;;  %3311 = vmatprep.subr.mxu0 %v4012_v47  ;;  %v501_v47 = vld [vmem:[%s4808_s20 + $0x380] sm:$0xff] }
 0x234   : > { %6232 = vst [vmem:[#allocation50_spill] sm:$0xff] %v5392_v55  ;;  %v4016_v8 = vpop.eup %4015  ;;  %4041 = vpow2.f32 %v2783_v0  ;;  %v5395_v52 = vpop.f32.mrf.mxu0  ;;  %3312 = vmatpush1.msra.mxu0 %v4014_v21  ;;  %2416 = vmatprep.mubr.f32.mxu1 %v6214_v51 }
 0x235   : > { %v4018_v59 = vpop.eup %4017  ;;  %v5399_v63 = vpop.f32.mrf.mxu1  ;;  %3313 = vmatprep.subr.mxu0 %v4016_v8 }
 0x236   : > { %6233 = vst [vmem:[#allocation51_spill] sm:$0xff] %v5399_v63  ;;  %v4020_v50 = vpop.eup %4019  ;;  %v5401_v2 = vpop.f32.mrf.mxu0  ;;  %3314 = vmatpush1.msra.mxu0 %v4018_v59 }
 0x237   : > { %v4022_v39 = vpop.eup %4021  ;;  %v5403_v61 = vpop.f32.mrf.mxu1  ;;  %3895 = vmatmul.mubr.msk.f32.gmra.mxu1 %vm519_vm1, %v500_v54  ;;  %3315 = vmatprep.subr.mxu0 %v4020_v50 }
 0x238   : > { %6234 = vst [vmem:[#allocation52_spill] sm:$0xff] %v5403_v61  ;;  %v4024_v0 = vpop.eup %4023  ;;  %v5406_v13 = vpop.f32.mrf.mxu0  ;;  %3316 = vmatpush1.msra.mxu0 %v4022_v39  ;;  %2422 = vmatprep.mubr.f32.mxu1 %v6214_v51  ;;  %v502_v39 = vld [vmem:[%s4808_s20 + $0x388] sm:$0xff] }
 0x239   : > { %v4026_v21 = vpop.eup %4025  ;;  %v5410_v8 = vpop.f32.mrf.mxu1  ;;  %3317 = vmatprep.subr.mxu0 %v4024_v0 }
 0x23a   : > { %6235 = vst [vmem:[#allocation53_spill] sm:$0xff] %v5410_v8  ;;  %v4028_v36 = vpop.eup %4027  ;;  %v5412_v59 = vpop.f32.mrf.mxu0  ;;  %3318 = vmatpush1.msra.mxu0 %v4026_v21 }
 0x23b   : > { %v4030_v43 = vpop.eup %4029  ;;  %v5414_v22 = vpop.f32.mrf.mxu1  ;;  %3896 = vmatmul.mubr.msk.f32.gmra.mxu1 %vm519_vm1, %v501_v47  ;;  %3319 = vmatprep.subr.mxu0 %v4028_v36  ;;  %v503_v47 = vld [vmem:[%s4808_s20 + $0x390] sm:$0xff] }
 0x23c   : > { %6236 = vst [vmem:[#allocation54_spill] sm:$0xff] %v5414_v22  ;;  %v4032_v54 = vpop.eup %4031  ;;  %v5417_v50 = vpop.f32.mrf.mxu0  ;;  %3320 = vmatpush1.msra.mxu0 %v4030_v43  ;;  %2428 = vmatprep.mubr.f32.mxu1 %v6214_v51 }
 0x23d   : > { %v4034_v41 = vpop.eup %4033  ;;  %v5421_v0 = vpop.f32.mrf.mxu1  ;;  %3321 = vmatprep.subr.mxu0 %v4032_v54 }
 0x23e   : > { %6237 = vst [vmem:[#allocation55_spill] sm:$0xff] %v5421_v0  ;;  %v4036_v25 = vpop.eup %4035  ;;  %v5423_v21 = vpop.f32.mrf.mxu0  ;;  %3322 = vmatpush1.msra.mxu0 %v4034_v41 }
 0x23f   : > { %v4038_v22 = vpop.eup %4037  ;;  %v5425_v15 = vpop.f32.mrf.mxu1  ;;  %3897 = vmatmul.mubr.msk.f32.gmra.mxu1 %vm519_vm1, %v502_v39  ;;  %3323 = vmatprep.subr.mxu0 %v4036_v25  ;;  %v504_v25 = vld [vmem:[%s4808_s20 + $0x398] sm:$0xff] }
 0x240   : > { %6238 = vst [vmem:[#allocation56_spill] sm:$0xff] %v5425_v15  ;;  %v4040_v36 = vpop.eup %4039  ;;  %v5428_v43 = vpop.f32.mrf.mxu0  ;;  %3324 = vmatpush1.msra.mxu0 %v4038_v22  ;;  %2434 = vmatprep.mubr.f32.mxu1 %v6214_v51 }
 0x241   : > { %v4042_v0 = vpop.eup %4041  ;;  %v5432_v54 = vpop.f32.mrf.mxu1  ;;  %3325 = vmatprep.subr.mxu0 %v4040_v36 }
 0x242   : > { %6239 = vst [vmem:[#allocation57_spill] sm:$0xff] %v5432_v54  ;;  %v1920_v41 = vpop.f32.mrf.mxu0  ;;  %3326 = vmatpush1.msra.mxu0 %v4042_v0  ;;  %v505_v0 = vld [vmem:[%s4808_s20 + $0x3a0] sm:$0xff] }
 0x243   : > { %v5434_v24 = vpop.f32.mrf.mxu1  ;;  %3898 = vmatmul.mubr.msk.f32.gmra.mxu1 %vm519_vm1, %v503_v47  ;;  %v2583_v8 = vsub.f32 %v1920_v41, %v5231_v33  ;;  %v2580_v41 = vsub.f32 %v5417_v50, %v5234_v27 }
 0x244   : > { %6240 = vst [vmem:[#allocation58_spill] sm:$0xff] %v5434_v24  ;;  %v1922_v39 = vpop.f32.mrf.mxu0  ;;  %2440 = vmatprep.mubr.f32.mxu1 %v6214_v51 }
 0x245   : > { %v5439_v22 = vpop.f32.mrf.mxu1 }
 0x246   : > { %6241 = vst [vmem:[#allocation59_spill] sm:$0xff] %v5439_v22  ;;  %v1926_v15 = vpop.f32.mrf.mxu0  ;;  %v506_v22 = vld [vmem:[%s4808_s20 + $0x3a8] sm:$0xff] }
 0x247   : > { %v5441_v35 = vpop.f32.mrf.mxu1  ;;  %3899 = vmatmul.mubr.msk.f32.gmra.mxu1 %vm519_vm1, %v504_v25 }
 0x248   : > { %6242 = vst [vmem:[#allocation60_spill] sm:$0xff] %v5441_v35  ;;  %v1928_v54 = vpop.f32.mrf.mxu0  ;;  %2446 = vmatprep.mubr.f32.mxu1 %v6214_v51 }
 0x249   : > { %v5446_v36 = vpop.f32.mrf.mxu1  ;;  %v2586_v32 = vsub.f32 %v1928_v54, %v5234_v27 }
 0x24a   : > { %6243 = vst [vmem:[#allocation61_spill] sm:$0xff] %v5446_v36  ;;  %v1932_v47 = vpop.f32.mrf.mxu0 }
 0x24b   : > { %v5448_v24 = vpop.f32.mrf.mxu1  ;;  %3900 = vmatmul.mubr.msk.f32.gmra.mxu1 %vm519_vm1, %v505_v0  ;;  %v2587_v36 = vsub.f32 %v1932_v47, %v5231_v33  ;;  %v507_v0 = vld [vmem:[%s4808_s20 + $0x3b0] sm:$0xff] }
 0x24c   : > { %6244 = vst [vmem:[#allocation62_spill] sm:$0xff] %v5448_v24  ;;  %v1934_v38 = vpop.f32.mrf.mxu0  ;;  %2452 = vmatprep.mubr.f32.mxu1 %v6214_v51 }
 0x24d   : > { %v5453_v44 = vpop.f32.mrf.mxu1  ;;  %v2588_v25 = vsub.f32 %v1934_v38, %v5234_v27  ;;  %v2585_v38 = vsub.f32 %v1926_v15, %v5231_v33  ;;  %v2903_v54 = vmul.f32 1.442695, %v2587_v36  ;;  %v2582_v15 = vsub.f32 %v5428_v43, %v5234_v27 }
 0x24e   : > { %6245 = vst [vmem:[#allocation63_spill] sm:$0xff] %v5453_v44  ;;  %v1938_v35 = vpop.f32.mrf.mxu0  ;;  %v2895_v43 = vmul.f32 1.442695, %v2583_v8  ;;  %v2576_v8 = vsub.f32 %v5395_v52, %v5234_v27 }
 0x24f   : > { %v2589_v5 = vsub.f32 %v1938_v35, %v5231_v33  ;;  %v5457_v6 = vpop.f32.mrf.mxu1  ;;  %3901 = vmatmul.mubr.msk.f32.gmra.mxu1 %vm519_vm1, %v506_v22  ;;  %v2584_v22 = vsub.f32 %v1922_v39, %v5234_v27  ;;  %v2899_v39 = vmul.f32 1.442695, %v2585_v38  ;;  %v2578_v38 = vsub.f32 %v5406_v13, %v5234_v27 }
 0x250   : > { %6246 = vst [vmem:[#allocation64_spill] sm:$0xff] %v5457_v6  ;;  %v1940_v24 = vpop.f32.mrf.mxu0  ;;  %2458 = vmatprep.mubr.f32.mxu1 %v6214_v51  ;;  %v2905_v6 = vmul.f32 1.442695, %v2588_v25  ;;  %v2575_v13 = vsub.f32 %v5390_v57, %v5231_v33  ;;  %v2572_v57 = vsub.f32 %v5373_v34, %v5234_v27 }
 0x251   : > { %v2590_v44 = vsub.f32 %v1940_v24, %v5234_v27  ;;  %v5465_v55 = vpop.f32.mrf.mxu1  ;;  %v2907_v35 = vmul.f32 1.442695, %v2589_v5  ;;  %v508_v24 = vld [vmem:[%s4808_s20 + $0x3b8] sm:$0xff]  ;;  %v2901_v5 = vmul.f32 1.442695, %v2586_v32  ;;  %v2579_v32 = vsub.f32 %v5412_v59, %v5231_v33 }
 0x252   : > { %6247 = vst [vmem:[#allocation65_spill] sm:$0xff] %v5465_v55  ;;  %v5468_v63 = vpop.f32.mrf.mxu0  ;;  %v2897_v36 = vmul.f32 1.442695, %v2584_v22  ;;  %v2889_v59 = vmul.f32 1.442695, %v2580_v41 }
 0x253   : > { %v2909_v47 = vmul.f32 1.442695, %v2590_v44  ;;  %v5471_v61 = vpop.f32.mrf.mxu1  ;;  %3902 = vmatmul.mubr.msk.f32.gmra.mxu1 %vm519_vm1, %v507_v0  ;;  %v2581_v44 = vsub.f32 %v5423_v21, %v5231_v33  ;;  %v509_v21 = vld [vmem:[%s4808_s20 + $0x3c0] sm:$0xff] }
 0x254   : > { %2464 = vmatprep.mubr.f32.mxu1 %v6214_v51  ;;  %v5483_v25 = vpop.f32.mrf.mxu0 }
 0x255   : > { %4043 = vpow2.f32 %v2909_v47  ;;  %v5479_v55 = vpop.f32.mrf.mxu1  ;;  %v2891_v22 = vmul.f32 1.442695, %v2581_v44  ;;  %v2573_v44 = vsub.f32 %v5379_v10, %v5231_v33  ;;  %v511_v10 = vld [vmem:[%s4808_s20 + $0x3d0] sm:$0xff] }
 0x256   : > { %4045 = vpow2.f32 %v2907_v35  ;;  %v2893_v35 = vmul.f32 1.442695, %v2582_v15  ;;  %v5500_v47 = vpop.f32.mrf.mxu0  ;;  %v2574_v15 = vsub.f32 %v5384_v56, %v5234_v27  ;;  %v2571_v56 = vsub.f32 %v5364_v31, %v5231_v33 }
 0x257   : > { %4047 = vpow2.f32 %v2905_v6  ;;  %v5487_v0 = vpop.f32.mrf.mxu1  ;;  %3903 = vmatmul.mubr.msk.f32.gmra.mxu1 %vm519_vm1, %v508_v24  ;;  %v2577_v6 = vsub.f32 %v5401_v2, %v5231_v33  ;;  %v2887_v24 = vmul.f32 1.442695, %v2579_v32  ;;  %v510_v2 = vld [vmem:[%s4808_s20 + $0x3c8] sm:$0xff] }
 0x258   : > { %4049 = vpow2.f32 %v2903_v54  ;;  %2470 = vmatprep.mubr.f32.mxu1 %v6214_v51  ;;  %v5517_v41 = vpop.f32.mrf.mxu0 }
 0x259   : > { %4051 = vpow2.f32 %v2901_v5  ;;  %v5496_v50 = vpop.f32.mrf.mxu1  ;;  %v2885_v5 = vmul.f32 1.442695, %v2578_v38  ;;  %v2877_v38 = vmul.f32 1.442695, %v2574_v15  ;;  %v512_v15 = vld [vmem:[%s4808_s20 + $0x3d8] sm:$0xff] }
 0x25a   : > { %4053 = vpow2.f32 %v2899_v39  ;;  %v2883_v39 = vmul.f32 1.442695, %v2577_v6  ;;  %v2569_v6 = vsub.f32 %v5345_v19, %v5231_v33  ;;  %v5534_v31 = vpop.f32.mrf.mxu0  ;;  %v2567_v19 = vsub.f32 %v5326_v18, %v5231_v33 }
 0x25b   : > { %4055 = vpow2.f32 %v2897_v36  ;;  %v5504_v54 = vpop.f32.mrf.mxu1  ;;  %3904 = vmatmul.mubr.msk.f32.gmra.mxu1 %vm519_vm1, %v509_v21  ;;  %v2881_v36 = vmul.f32 1.442695, %v2576_v8  ;;  %v2570_v21 = vsub.f32 %v5354_v53, %v5234_v27 }
 0x25c   : > { %4057 = vpow2.f32 %v2895_v43  ;;  %2476 = vmatprep.mubr.f32.mxu1 %v6214_v51  ;;  %v2879_v43 = vmul.f32 1.442695, %v2575_v13  ;;  %v2873_v13 = vmul.f32 1.442695, %v2572_v57  ;;  %v2867_v18 = vmul.f32 1.442695, %v2569_v6 }
 0x25d   : > { %4059 = vpow2.f32 %v2893_v35  ;;  %v5513_v52 = vpop.f32.mrf.mxu1  ;;  %v513_v6 = vld [vmem:[%s4808_s20 + $0x3e0] sm:$0xff] }
 0x25e   : > { %4061 = vpow2.f32 %v2891_v22  ;;  %v2875_v22 = vmul.f32 1.442695, %v2573_v44  ;;  %v2869_v44 = vmul.f32 1.442695, %v2570_v21 }
 0x25f   : > { %4063 = vpow2.f32 %v2889_v59  ;;  %v5521_v32 = vpop.f32.mrf.mxu1  ;;  %3905 = vmatmul.mubr.msk.f32.gmra.mxu1 %vm519_vm1, %v510_v2  ;;  %v2568_v59 = vsub.f32 %v5335_v37, %v5234_v27  ;;  %v2871_v2 = vmul.f32 1.442695, %v2571_v56  ;;  %v2566_v37 = vsub.f32 %v5316_v45, %v5234_v27  ;;  %v5551_v56 = vpop.f32.mrf.mxu0 }
 0x260   : > { %4065 = vpow2.f32 %v2887_v24  ;;  %2482 = vmatprep.mubr.f32.mxu1 %v6214_v51 }
 0x261   : > { %4067 = vpow2.f32 %v2885_v5  ;;  %v5530_v34 = vpop.f32.mrf.mxu1  ;;  %v2865_v45 = vmul.f32 1.442695, %v2568_v59 }
 0x262   : > { %v4044_v35 = vpop.eup %4043  ;;  %4069 = vpow2.f32 %v2883_v39 }
 0x263   : > { %v4046_v8 = vpop.eup %4045  ;;  %4071 = vpow2.f32 %v2881_v36  ;;  %v5538_v53 = vpop.f32.mrf.mxu1  ;;  %3906 = vmatmul.mubr.msk.f32.gmra.mxu1 %vm519_vm1, %v511_v10  ;;  %3327 = vmatprep.subr.mxu0 %v4044_v35  ;;  %v2565_v36 = vsub.f32 %v5307_v29, %v5231_v33  ;;  %v2564_v10 = vsub.f32 %v5297_v48, %v5234_v27  ;;  %v2563_v29 = vsub.f32 %v5288_v16, %v5231_v33 }
 0x264   : > { %v4048_v24 = vpop.eup %4047  ;;  %4073 = vpow2.f32 %v2879_v43  ;;  %3328 = vmatpush2.msra.mxu0 %v4046_v8  ;;  %2488 = vmatprep.mubr.f32.mxu1 %v6214_v51  ;;  %v2863_v35 = vmul.f32 1.442695, %v2567_v19  ;;  %v2562_v48 = vsub.f32 %v5278_v40, %v5234_v27  ;;  %v2861_v8 = vmul.f32 1.442695, %v2566_v37  ;;  %v5568_v19 = vpop.f32.mrf.mxu0 }
 0x265   : > { %v4050_v5 = vpop.eup %4049  ;;  %4075 = vpow2.f32 %v2877_v38  ;;  %v5547_v39 = vpop.f32.mrf.mxu1  ;;  %3329 = vmatprep.subr.mxu0 %v4048_v24  ;;  %v2561_v24 = vsub.f32 %v5269_v42, %v5231_v33  ;;  %v2859_v16 = vmul.f32 1.442695, %v2565_v36  ;;  %v2857_v40 = vmul.f32 1.442695, %v2564_v10 }
 0x266   : > { %v4052_v57 = vpop.eup %4051  ;;  %4077 = vpow2.f32 %v2875_v22  ;;  %3330 = vmatpush2.msra.mxu0 %v4050_v5  ;;  %v2559_v42 = vsub.f32 %v5251_v46, %v5231_v33 }
 0x267   : > { %v4054_v43 = vpop.eup %4053  ;;  %4079 = vpow2.f32 %v2873_v13  ;;  %v5555_v21 = vpop.f32.mrf.mxu1  ;;  %3907 = vmatmul.mubr.msk.f32.gmra.mxu1 %vm519_vm1, %v512_v15  ;;  %3331 = vmatprep.subr.mxu0 %v4052_v57  ;;  %v2560_v15 = vsub.f32 %v5259_v4, %v5234_v27  ;;  %v514_v57 = vld [vmem:[%s4808_s20 + $0x3e8] sm:$0xff]  ;;  %v2622_v4 = vsub.f32 %v5181_v11, %v5234_v27  ;;  %v2851_v46 = vmul.f32 1.442695, %v2561_v24 }
 0x268   : > { %v4056_v38 = vpop.eup %4055  ;;  %4081 = vpow2.f32 %v2871_v2  ;;  %3332 = vmatpush2.msra.mxu0 %v4054_v43  ;;  %2494 = vmatprep.mubr.f32.mxu1 %v6214_v51 }
 0x269   : > { %v4058_v22 = vpop.eup %4057  ;;  %4083 = vpow2.f32 %v2869_v44  ;;  %v5564_v59 = vpop.f32.mrf.mxu1  ;;  %3333 = vmatprep.subr.mxu0 %v4056_v38  ;;  %v2855_v44 = vmul.f32 1.442695, %v2563_v29  ;;  %v2849_v11 = vmul.f32 1.442695, %v2560_v15  ;;  %v2973_v24 = vmul.f32 1.442695, %v2622_v4 }
 0x26a   : > { %v4060_v13 = vpop.eup %4059  ;;  %4085 = vpow2.f32 %v2867_v18  ;;  %3334 = vmatpush2.msra.mxu0 %v4058_v22  ;;  %v2853_v18 = vmul.f32 1.442695, %v2562_v48  ;;  %v5585_v38 = vpop.f32.mrf.mxu0  ;;  %v2847_v48 = vmul.f32 1.442695, %v2559_v42  ;;  %v2617_v15 = vsub.f32 %v5152_v26, %v5231_v33  ;;  %v516_v4 = vld [vmem:[%s4808_s20 + $0x3f8] sm:$0xff] }
 0x26b   : > { %v4062_v2 = vpop.eup %4061  ;;  %4087 = vpow2.f32 %v2865_v45  ;;  %v5572_v5 = vpop.f32.mrf.mxu1  ;;  %3908 = vmatmul.mubr.msk.f32.gmra.mxu1 %vm519_vm1, %v513_v6  ;;  %3335 = vmatprep.subr.mxu0 %v4060_v13  ;;  %v2621_v45 = vsub.f32 %v5174_v58, %v5231_v33  ;;  %v2619_v58 = vsub.f32 %v5163_v30, %v5231_v33  ;;  %v2616_v42 = vsub.f32 %v5148_v23, %v5234_v27 }
 0x26c   : > { %v4064_v37 = vpop.eup %4063  ;;  %4089 = vpow2.f32 %v2863_v35  ;;  %3336 = vmatpush2.msra.mxu0 %v4062_v2  ;;  %2500 = vmatprep.mubr.f32.mxu1 %v6214_v51  ;;  %v2620_v35 = vsub.f32 %v5170_v49, %v5234_v27  ;;  %v2618_v49 = vsub.f32 %v5159_v28, %v5234_v27  ;;  %v2615_v26 = vsub.f32 %v5141_v20, %v5231_v33 }
 0x26d   : > { %v4066_v36 = vpop.eup %4065  ;;  %4091 = vpow2.f32 %v2861_v8  ;;  %v5581_v43 = vpop.f32.mrf.mxu1  ;;  %3337 = vmatprep.subr.mxu0 %v4064_v37  ;;  %v515_v8 = vld [vmem:[%s4808_s20 + $0x3f0] sm:$0xff]  ;;  %v2971_v30 = vmul.f32 1.442695, %v2621_v45  ;;  %v2614_v23 = vsub.f32 %v5137_v17, %v5234_v27  ;;  %v2963_v20 = vmul.f32 1.442695, %v2617_v15 }
 0x26e   : > { %v4068_v10 = vpop.eup %4067  ;;  %4093 = vpow2.f32 %v2859_v16  ;;  %3338 = vmatpush2.msra.mxu0 %v4066_v36  ;;  %v2969_v28 = vmul.f32 1.442695, %v2620_v35  ;;  %v2967_v36 = vmul.f32 1.442695, %v2619_v58 }
 0x26f   : > { %v4070_v29 = vpop.eup %4069  ;;  %4095 = vpow2.f32 %v2857_v40  ;;  %v5589_v6 = vpop.f32.mrf.mxu1  ;;  %3909 = vmatmul.mubr.msk.f32.gmra.mxu1 %vm519_vm1, %v514_v57  ;;  %3339 = vmatprep.subr.mxu0 %v4068_v10  ;;  %v2965_v10 = vmul.f32 1.442695, %v2618_v49  ;;  %v2957_v49 = vmul.f32 1.442695, %v2614_v23  ;;  %v6250_v23 = vld [vmem:[#allocation21_spill] sm:$0xff] }
 0x270   : > { %v4072_v22 = vpop.eup %4071  ;;  %4097 = vpow2.f32 %v2855_v44  ;;  %3340 = vmatpush2.msra.mxu0 %v4070_v29  ;;  %2506 = vmatprep.mubr.f32.mxu1 %v6214_v51  ;;  %v5602_v40 = vpop.f32.mrf.mxu0  ;;  %v2613_v29 = vsub.f32 %v5130_v14, %v5231_v33  ;;  %v2611_v14 = vsub.f32 %v5119_v9, %v5231_v33 }
 0x271   : > { %v4074_v13 = vpop.eup %4073  ;;  %4099 = vpow2.f32 %v2853_v18  ;;  %v5598_v16 = vpop.f32.mrf.mxu1  ;;  %3341 = vmatprep.subr.mxu0 %v4072_v22  ;;  %v2961_v22 = vmul.f32 1.442695, %v2616_v42 }
 0x272   : > { %v4076_v2 = vpop.eup %4075  ;;  %4101 = vpow2.f32 %v2851_v46  ;;  %3342 = vmatpush2.msra.mxu0 %v4074_v13  ;;  %v5619_v35 = vpop.f32.mrf.mxu0  ;;  %v2610_v13 = vsub.f32 %v5115_v7, %v5234_v27  ;;  %v2955_v15 = vmul.f32 1.442695, %v2613_v29 }
 0x273   : > { %v4078_v37 = vpop.eup %4077  ;;  %4103 = vpow2.f32 %v2849_v11  ;;  %v5606_v44 = vpop.f32.mrf.mxu1  ;;  %3910 = vmatmul.mubr.msk.f32.gmra.mxu1 %vm519_vm1, %v515_v8  ;;  %3343 = vmatprep.subr.mxu0 %v4076_v2  ;;  %v2612_v11 = vsub.f32 %v5126_v12, %v5234_v27  ;;  %v2609_v2 = vsub.f32 %v5108_v3, %v5231_v33 }
 0x274   : > { %v4080_v57 = vpop.eup %4079  ;;  %4105 = vpow2.f32 %v2847_v48  ;;  %3344 = vmatpush2.msra.mxu0 %v4078_v37  ;;  %2512 = vmatprep.mubr.f32.mxu1 %v6214_v51  ;;  %v2959_v48 = vmul.f32 1.442695, %v2615_v26  ;;  %v2608_v37 = vsub.f32 %v5104_v1, %v5234_v27  ;;  %v2951_v26 = vmul.f32 1.442695, %v2611_v14 }
 0x275   : > { %v4082_v18 = vpop.eup %4081  ;;  %4107 = vpow2.f32 %v2973_v24  ;;  %v5615_v45 = vpop.f32.mrf.mxu1  ;;  %3345 = vmatprep.subr.mxu0 %v4080_v57  ;;  %v2953_v42 = vmul.f32 1.442695, %v2612_v11  ;;  %v2607_v57 = vsub.f32 %v5097_v62, %v5231_v33 }
 0x276   : > { %v4084_v46 = vpop.eup %4083  ;;  %4109 = vpow2.f32 %v2971_v30  ;;  %3346 = vmatpush2.msra.mxu0 %v4082_v18  ;;  %v5634_v30 = vpop.f32.mrf.mxu0  ;;  %v2945_v11 = vmul.f32 1.442695, %v2608_v37 }
 0x277   : > { %v4086_v51 = vpop.eup %4085  ;;  %4111 = vpow2.f32 %v2969_v28  ;;  %v5623_v17 = vpop.f32.mrf.mxu1  ;;  %3911 = vmatmul.mubr.msk.f32.gmra.mxu1 %vm519_vm1, %v516_v4  ;;  %3347 = vmatprep.subr.mxu0 %v4084_v46  ;;  %v2949_v4 = vmul.f32 1.442695, %v2610_v13  ;;  %v2947_v46 = vmul.f32 1.442695, %v2609_v2 }
 0x278   : > { %v4088_v58 = vpop.eup %4087  ;;  %4113 = vpow2.f32 %v2967_v36  ;;  %3348 = vmatpush2.msra.mxu0 %v4086_v51  ;;  %v2606_v36 = vsub.f32 %v5093_v60, %v5234_v27  ;;  %v1976_v29 = vpop.f32.mrf.mxu0 }
 0x279   : > { %v4090_v8 = vpop.eup %4089  ;;  %4115 = vpow2.f32 %v2965_v10  ;;  %v5630_v12 = vpop.f32.mrf.mxu1  ;;  %3349 = vmatprep.subr.mxu0 %v4088_v58  ;;  %v2605_v10 = vsub.f32 %v6250_v23, %v5231_v33  ;;  %v6253_v58 = vld [vmem:[#allocation19_spill] sm:$0xff]  ;;  %v2598_v23 = vsub.f32 %v5585_v38, %v5234_v27  ;;  %v6257_v38 = vld [vmem:[#allocation6_spill] sm:$0xff] }
 0x27a   : > { %v4092_v24 = vpop.eup %4091  ;;  %4117 = vpow2.f32 %v2963_v20  ;;  %3350 = vmatpush2.msra.mxu0 %v4090_v8  ;;  %v6251_v20 = vld [vmem:[#allocation20_spill] sm:$0xff]  ;;  %v2603_v14 = vsub.f32 %v6253_v58, %v5231_v33  ;;  %v2941_v13 = vmul.f32 1.442695, %v2606_v36  ;;  %v2595_v58 = vsub.f32 %v5534_v31, %v5231_v33 }
 0x27b   : > { %v4094_v9 = vpop.eup %4093  ;;  %4119 = vpow2.f32 %v2961_v22  ;;  %v5638_v7 = vpop.f32.mrf.mxu1  ;;  %3351 = vmatprep.subr.mxu0 %v4092_v24  ;;  %v2604_v51 = vsub.f32 %v6251_v20, %v5234_v27  ;;  %v2596_v20 = vsub.f32 %v5551_v56, %v5234_v27  ;;  %v2925_v56 = vmul.f32 1.442695, %v2598_v23 }
 0x27c   : > { %6248 = vst [vmem:[#allocation66_spill] sm:$0xff] %v5638_v7  ;;  %v4096_v28 = vpop.eup %4095  ;;  %4121 = vpow2.f32 %v2959_v48  ;;  %3352 = vmatpush2.msra.mxu0 %v4094_v9  ;;  %v2943_v48 = vmul.f32 1.442695, %v2607_v57  ;;  %v2601_v9 = vsub.f32 %v5634_v30, %v5231_v33  ;;  %v2935_v36 = vmul.f32 1.442695, %v2603_v14 }
 0x27d   : > { %v4098_v3 = vpop.eup %4097  ;;  %4123 = vpow2.f32 %v2957_v49  ;;  %v5644_v18 = vpop.f32.mrf.mxu1  ;;  %3353 = vmatprep.subr.mxu0 %v4096_v28  ;;  %v2602_v49 = vsub.f32 %v1976_v29, %v5234_v27  ;;  %v2600_v28 = vsub.f32 %v5619_v35, %v5234_v27  ;;  %v2597_v29 = vsub.f32 %v5568_v19, %v5231_v33  ;;  %v6258_v19 = vld [vmem:[#allocation5_spill] sm:$0xff] }
 0x27e   : > { %6249 = vst [vmem:[#allocation67_spill] sm:$0xff] %v5644_v18  ;;  %v4100_v1 = vpop.eup %4099  ;;  %4125 = vpow2.f32 %v2955_v15  ;;  %3354 = vmatpush2.msra.mxu0 %v4098_v3  ;;  %v2939_v15 = vmul.f32 1.442695, %v2605_v10 }
 0x27f   : > { %v4102_v62 = vpop.eup %4101  ;;  %4127 = vpow2.f32 %v2953_v42  ;;  %v5650_v60 = vpop.f32.mrf.mxu1  ;;  %3355 = vmatprep.subr.mxu0 %v4100_v1  ;;  %v2937_v42 = vmul.f32 1.442695, %v2604_v51  ;;  %v6256_v1 = vld [vmem:[#allocation8_spill] sm:$0xff]  ;;  %v2933_v35 = vmul.f32 1.442695, %v2602_v49 }
 0x280   : > { %6252 = vst [vmem:[#allocation21_spill] sm:$0xff] %v5650_v60  ;;  %v4104_v22 = vpop.eup %4103  ;;  %4129 = vpow2.f32 %v2951_v26  ;;  %3356 = vmatpush2.msra.mxu0 %v4102_v62  ;;  %v6255_v26 = vld [vmem:[#allocation3_spill] sm:$0xff]  ;;  %v2931_v62 = vmul.f32 1.442695, %v2601_v9  ;;  %v2929_v51 = vmul.f32 1.442695, %v2600_v28  ;;  %v2592_v9 = vsub.f32 %v5483_v25, %v5234_v27 }
 0x281   : > { %v4106_v8 = vpop.eup %4105  ;;  %4131 = vpow2.f32 %v2949_v4  ;;  %v5655_v24 = vpop.f32.mrf.mxu1  ;;  %3357 = vmatprep.subr.mxu0 %v4104_v22  ;;  %v2599_v4 = vsub.f32 %v5602_v40, %v5231_v33  ;;  %v2591_v28 = vsub.f32 %v5468_v63, %v5231_v33 }
 0x282   : > { %6254 = vst [vmem:[#allocation20_spill] sm:$0xff] %v5655_v24  ;;  %v4108_v2 = vpop.eup %4107  ;;  %4133 = vpow2.f32 %v2947_v46  ;;  %3358 = vmatpush2.msra.mxu0 %v4106_v8  ;;  %v2594_v8 = vsub.f32 %v5517_v41, %v5234_v27 }
 0x283   : > { %v4110_v37 = vpop.eup %4109  ;;  %4135 = vpow2.f32 %v2945_v11  ;;  %v5661_v57 = vpop.f32.mrf.mxu1  ;;  %3360 = vmatmul.mubr.f32.vlgmr.msra.gmra.mxu0 %v6255_v26  ;;  %3372 = vmatprep.subr.mxu0 %v4108_v2  ;;  %v2927_v14 = vmul.f32 1.442695, %v2599_v4  ;;  %v2593_v2 = vsub.f32 %v5500_v47, %v5231_v33  ;;  %v2919_v26 = vmul.f32 1.442695, %v2595_v58 }
 0x284   : > { %v4112_v3 = vpop.eup %4111  ;;  %4137 = vpow2.f32 %v2943_v48  ;;  %3365 = vmatprep.mubr.f32.mxu0 %v6256_v1  ;;  %3373 = vmatpush1.msra.mxu0 %v4110_v37  ;;  %v2921_v37 = vmul.f32 1.442695, %v2596_v20  ;;  %v2917_v4 = vmul.f32 1.442695, %v2594_v8 }
 0x285   : > { %v4114_v30 = vpop.eup %4113  ;;  %4139 = vpow2.f32 %v2941_v13  ;;  %v5669_v10 = vpop.f32.mrf.mxu1  ;;  %3374 = vmatprep.subr.mxu0 %v4112_v3  ;;  %v6259_v3 = vld [vmem:[#allocation53_spill] sm:$0xff] }
 0x286   : > { %v4116_v46 = vpop.eup %4115  ;;  %4141 = vpow2.f32 %v2939_v15  ;;  %3375 = vmatpush1.msra.mxu0 %v4114_v30  ;;  %v2923_v15 = vmul.f32 1.442695, %v2597_v29  ;;  %v6260_v30 = vld [vmem:[#allocation52_spill] sm:$0xff] }
 0x287   : > { %v4118_v40 = vpop.eup %4117  ;;  %4143 = vpow2.f32 %v2937_v42  ;;  %v5675_v11 = vpop.f32.mrf.mxu1  ;;  %3366 = vmatmul.mubr.f32.gmra.mxu0 %v6257_v38  ;;  %3376 = vmatprep.subr.mxu0 %v4116_v46  ;;  %v2653_v23 = vsub.f32 %v6260_v30, %v5231_v33  ;;  %v6261_v46 = vld [vmem:[#allocation51_spill] sm:$0xff] }
 0x288   : > { %v4120_v22 = vpop.eup %4119  ;;  %4145 = vpow2.f32 %v2935_v36  ;;  %3377 = vmatpush1.msra.mxu0 %v4118_v40  ;;  %3436 = vmatprep.mubr.f32.mxu0 %v6258_v19  ;;  %v2654_v36 = vsub.f32 %v6259_v3, %v5234_v27  ;;  %v2652_v29 = vsub.f32 %v6261_v46, %v5234_v27  ;;  %v6268_v46 = vld [vmem:[#allocation44_spill] sm:$0xff] }
 0x289   : > { %v4122_v48 = vpop.eup %4121  ;;  %4147 = vpow2.f32 %v2933_v35  ;;  %v5683_v13 = vpop.f32.mrf.mxu1  ;;  %3378 = vmatprep.subr.mxu0 %v4120_v22  ;;  %v2915_v35 = vmul.f32 1.442695, %v2593_v2  ;;  %v2911_v22 = vmul.f32 1.442695, %v2591_v28 }
 0x28a   : > { %v4124_v49 = vpop.eup %4123  ;;  %4149 = vpow2.f32 %v2931_v62  ;;  %3379 = vmatpush1.msra.mxu0 %v4122_v48  ;;  %v2913_v62 = vmul.f32 1.442695, %v2592_v9  ;;  %v3037_v48 = vmul.f32 1.442695, %v2654_v36  ;;  %v6265_v9 = vld [vmem:[#allocation47_spill] sm:$0xff] }
 0x28b   : > { %v4126_v31 = vpop.eup %4125  ;;  %4151 = vpow2.f32 %v2929_v51  ;;  %v5689_v42 = vpop.f32.mrf.mxu1  ;;  %3380 = vmatprep.subr.mxu0 %v4124_v49  ;;  %v6262_v51 = vld [vmem:[#allocation50_spill] sm:$0xff]  ;;  %v6264_v49 = vld [vmem:[#allocation48_spill] sm:$0xff] }
 0x28c   : > { %v4128_v41 = vpop.eup %4127  ;;  %4153 = vpow2.f32 %v2927_v14  ;;  %3381 = vmatpush1.msra.mxu0 %v4126_v31  ;;  %v2651_v38 = vsub.f32 %v6262_v51, %v5231_v33  ;;  %v6263_v14 = vld [vmem:[#allocation49_spill] sm:$0xff]  ;;  %v2649_v2 = vsub.f32 %v6264_v49, %v5231_v33  ;;  %v6269_v51 = vld [vmem:[#allocation43_spill] sm:$0xff] }
 0x28d   : > { %v4130_v47 = vpop.eup %4129  ;;  %4155 = vpow2.f32 %v2925_v56  ;;  %v5695_v1 = vpop.f32.mrf.mxu1  ;;  %3382 = vmatprep.subr.mxu0 %v4128_v41  ;;  %v2650_v19 = vsub.f32 %v6263_v14, %v5234_v27  ;;  %v3033_v41 = vmul.f32 1.442695, %v2652_v29  ;;  %v2645_v29 = vsub.f32 %v6268_v46, %v5231_v33 }
 0x28e   : > { %v4132_v25 = vpop.eup %4131  ;;  %4157 = vpow2.f32 %v2923_v15  ;;  %3383 = vmatpush1.msra.mxu0 %v4130_v47  ;;  %v3035_v15 = vmul.f32 1.442695, %v2653_v23  ;;  %v6266_v47 = vld [vmem:[#allocation46_spill] sm:$0xff]  ;;  %v3031_v36 = vmul.f32 1.442695, %v2651_v38  ;;  %v2644_v38 = vsub.f32 %v6269_v51, %v5234_v27 }
 0x28f   : > { %v4134_v63 = vpop.eup %4133  ;;  %4159 = vpow2.f32 %v2921_v37  ;;  %v5701_v40 = vpop.f32.mrf.mxu1  ;;  %3384 = vmatprep.subr.mxu0 %v4132_v25  ;;  %v2648_v37 = vsub.f32 %v6265_v9, %v5234_v27  ;;  %v2647_v3 = vsub.f32 %v6266_v47, %v5231_v33  ;;  %v6267_v25 = vld [vmem:[#allocation45_spill] sm:$0xff]  ;;  %v3029_v23 = vmul.f32 1.442695, %v2650_v19  ;;  %v6270_v19 = vld [vmem:[#allocation42_spill] sm:$0xff] }
 0x290   : > { %v4136_v20 = vpop.eup %4135  ;;  %4161 = vpow2.f32 %v2919_v26  ;;  %3385 = vmatpush1.msra.mxu0 %v4134_v63  ;;  %v2646_v30 = vsub.f32 %v6267_v25, %v5234_v27  ;;  %v3019_v47 = vmul.f32 1.442695, %v2645_v29  ;;  %v3017_v25 = vmul.f32 1.442695, %v2644_v38  ;;  %v6275_v29 = vld [vmem:[#allocation37_spill] sm:$0xff] }
 0x291   : > { %v4138_v58 = vpop.eup %4137  ;;  %4163 = vpow2.f32 %v2917_v4  ;;  %v5707_v8 = vpop.f32.mrf.mxu1  ;;  %3386 = vmatprep.subr.mxu0 %v4136_v20 }
 0x292   : > { %v4140_v56 = vpop.eup %4139  ;;  %4165 = vpow2.f32 %v2915_v35  ;;  %3387 = vmatpush1.msra.mxu0 %v4138_v58 }
 0x293   : > { %v4142_v31 = vpop.eup %4141  ;;  %4167 = vpow2.f32 %v2913_v62  ;;  %v5713_v28 = vpop.f32.mrf.mxu1  ;;  %3388 = vmatprep.subr.mxu0 %v4140_v56  ;;  %v3027_v62 = vmul.f32 1.442695, %v2649_v2  ;;  %v3023_v56 = vmul.f32 1.442695, %v2647_v3  ;;  %v6271_v2 = vld [vmem:[#allocation41_spill] sm:$0xff]  ;;  %v6273_v3 = vld [vmem:[#allocation39_spill] sm:$0xff] }
 0x294   : > { %v4144_v26 = vpop.eup %4143  ;;  %4169 = vpow2.f32 %v2911_v22  ;;  %3389 = vmatpush1.msra.mxu0 %v4142_v31  ;;  %v3025_v22 = vmul.f32 1.442695, %v2648_v37  ;;  %v3021_v31 = vmul.f32 1.442695, %v2646_v30 }
 0x295   : > { %v4146_v4 = vpop.eup %4145  ;;  %4171 = vpow2.f32 %v3037_v48  ;;  %v5719_v35 = vpop.f32.mrf.mxu1  ;;  %3390 = vmatprep.subr.mxu0 %v4144_v26  ;;  %v2643_v48 = vsub.f32 %v6270_v19, %v5231_v33 }
 0x296   : > { %v4148_v63 = vpop.eup %4147  ;;  %4173 = vpow2.f32 %v3035_v15  ;;  %3391 = vmatpush1.msra.mxu0 %v4146_v4  ;;  %v2642_v15 = vsub.f32 %v6271_v2, %v5234_v27 }
 0x297   : > { %v4150_v20 = vpop.eup %4149  ;;  %4175 = vpow2.f32 %v3033_v41  ;;  %v5725_v58 = vpop.f32.mrf.mxu1  ;;  %3392 = vmatprep.subr.mxu0 %v4148_v63  ;;  %v6272_v41 = vld [vmem:[#allocation40_spill] sm:$0xff] }
 0x298   : > { %v4152_v14 = vpop.eup %4151  ;;  %4177 = vpow2.f32 %v3031_v36  ;;  %3393 = vmatpush1.msra.mxu0 %v4150_v20  ;;  %v2641_v26 = vsub.f32 %v6272_v41, %v5231_v33  ;;  %v2640_v36 = vsub.f32 %v6273_v3, %v5234_v27  ;;  %v3015_v20 = vmul.f32 1.442695, %v2643_v48  ;;  %v6277_v48 = vld [vmem:[#allocation35_spill] sm:$0xff] }
 0x299   : > { %v4154_v49 = vpop.eup %4153  ;;  %4179 = vpow2.f32 %v3029_v23  ;;  %v5731_v9 = vpop.f32.mrf.mxu1  ;;  %3394 = vmatprep.subr.mxu0 %v4152_v14  ;;  %v6274_v23 = vld [vmem:[#allocation38_spill] sm:$0xff]  ;;  %v3013_v14 = vmul.f32 1.442695, %v2642_v15 }
 0x29a   : > { %v4156_v37 = vpop.eup %4155  ;;  %4181 = vpow2.f32 %v3027_v62  ;;  %3395 = vmatpush1.msra.mxu0 %v4154_v49  ;;  %v2639_v46 = vsub.f32 %v6274_v23, %v5231_v33  ;;  %v2638_v62 = vsub.f32 %v6275_v29, %v5234_v27  ;;  %v3011_v2 = vmul.f32 1.442695, %v2641_v26  ;;  %v6279_v26 = vld [vmem:[#allocation33_spill] sm:$0xff] }
 0x29b   : > { %v4158_v4 = vpop.eup %4157  ;;  %4183 = vpow2.f32 %v3025_v22  ;;  %v5737_v63 = vpop.f32.mrf.mxu1  ;;  %3396 = vmatprep.subr.mxu0 %v4156_v37  ;;  %v6276_v22 = vld [vmem:[#allocation36_spill] sm:$0xff]  ;;  %v3009_v41 = vmul.f32 1.442695, %v2640_v36 }
 0x29c   : > { %v4160_v30 = vpop.eup %4159  ;;  %4185 = vpow2.f32 %v3023_v56  ;;  %3397 = vmatpush1.msra.mxu0 %v4158_v4  ;;  %v2637_v49 = vsub.f32 %v6276_v22, %v5231_v33  ;;  %v2636_v56 = vsub.f32 %v6277_v48, %v5234_v27 }
 0x29d   : > { %v4162_v51 = vpop.eup %4161  ;;  %4187 = vpow2.f32 %v3021_v31  ;;  %v5743_v19 = vpop.f32.mrf.mxu1  ;;  %3398 = vmatprep.subr.mxu0 %v4160_v30  ;;  %v6278_v31 = vld [vmem:[#allocation34_spill] sm:$0xff]  ;;  %v3007_v30 = vmul.f32 1.442695, %v2639_v46  ;;  %v6281_v46 = vld [vmem:[#allocation31_spill] sm:$0xff] }
 0x29e   : > { %v4164_v38 = vpop.eup %4163  ;;  %4189 = vpow2.f32 %v3019_v47  ;;  %3399 = vmatpush1.msra.mxu0 %v4162_v51  ;;  %v2635_v3 = vsub.f32 %v6278_v31, %v5231_v33  ;;  %v2634_v47 = vsub.f32 %v6279_v26, %v5234_v27  ;;  %v3005_v51 = vmul.f32 1.442695, %v2638_v62 }
 0x29f   : > { %v4166_v37 = vpop.eup %4165  ;;  %4191 = vpow2.f32 %v3017_v25  ;;  %v5749_v4 = vpop.f32.mrf.mxu1  ;;  %3400 = vmatprep.subr.mxu0 %v4164_v38  ;;  %v6280_v25 = vld [vmem:[#allocation32_spill] sm:$0xff]  ;;  %v3003_v22 = vmul.f32 1.442695, %v2637_v49  ;;  %v6283_v49 = vld [vmem:[#allocation29_spill] sm:$0xff] }
 0x2a0   : > { %v4168_v15 = vpop.eup %4167  ;;  %4193 = vpow2.f32 %v3015_v20  ;;  %3401 = vmatpush1.msra.mxu0 %v4166_v37  ;;  %v2633_v38 = vsub.f32 %v6280_v25, %v5231_v33  ;;  %v2632_v20 = vsub.f32 %v6281_v46, %v5234_v27  ;;  %v3001_v37 = vmul.f32 1.442695, %v2636_v56 }
 0x2a1   : > { %v4170_v23 = vpop.eup %4169  ;;  %4195 = vpow2.f32 %v3013_v14  ;;  %v5755_v29 = vpop.f32.mrf.mxu1  ;;  %3402 = vmatprep.subr.mxu0 %v4168_v15  ;;  %v6282_v14 = vld [vmem:[#allocation30_spill] sm:$0xff]  ;;  %v2999_v26 = vmul.f32 1.442695, %v2635_v3  ;;  %v6285_v3 = vld [vmem:[#allocation27_spill] sm:$0xff] }
 0x2a2   : > { %v4172_v36 = vpop.eup %4171  ;;  %4197 = vpow2.f32 %v3011_v2  ;;  %3403 = vmatpush1.msra.mxu0 %v4170_v23  ;;  %v2631_v15 = vsub.f32 %v6282_v14, %v5231_v33  ;;  %v2630_v2 = vsub.f32 %v6283_v49, %v5234_v27  ;;  %v2997_v23 = vmul.f32 1.442695, %v2634_v47 }
 0x2a3   : > { %v4174_v48 = vpop.eup %4173  ;;  %4199 = vpow2.f32 %v3009_v41  ;;  %v5761_v31 = vpop.f32.mrf.mxu1  ;;  %3404 = vmatprep.subr.mxu0 %v4172_v36  ;;  %v6284_v41 = vld [vmem:[#allocation28_spill] sm:$0xff]  ;;  %v2995_v46 = vmul.f32 1.442695, %v2633_v38  ;;  %v6287_v38 = vld [vmem:[#allocation25_spill] sm:$0xff] }
 0x2a4   : > { %v4176_v62 = vpop.eup %4175  ;;  %4201 = vpow2.f32 %v3007_v30  ;;  %3405 = vmatpush2.msra.mxu0 %v4174_v48  ;;  %v2629_v36 = vsub.f32 %v6284_v41, %v5231_v33  ;;  %v2628_v30 = vsub.f32 %v6285_v3, %v5234_v27  ;;  %v2993_v48 = vmul.f32 1.442695, %v2632_v20 }
 0x2a5   : > { %v4178_v25 = vpop.eup %4177  ;;  %4203 = vpow2.f32 %v3005_v51  ;;  %v5767_v7 = vpop.f32.mrf.mxu1  ;;  %3406 = vmatprep.subr.mxu0 %v4176_v62  ;;  %v6286_v51 = vld [vmem:[#allocation26_spill] sm:$0xff]  ;;  %v2991_v49 = vmul.f32 1.442695, %v2631_v15  ;;  %v6289_v15 = vld [vmem:[#allocation23_spill] sm:$0xff] }
 0x2a6   : > { %v4180_v56 = vpop.eup %4179  ;;  %4205 = vpow2.f32 %v3003_v22  ;;  %3407 = vmatpush2.msra.mxu0 %v4178_v25  ;;  %v2627_v62 = vsub.f32 %v6286_v51, %v5231_v33  ;;  %v2626_v22 = vsub.f32 %v6287_v38, %v5234_v27  ;;  %v2989_v25 = vmul.f32 1.442695, %v2630_v2 }
 0x2a7   : > { %v4182_v14 = vpop.eup %4181  ;;  %4207 = vpow2.f32 %v3001_v37  ;;  %v5773_v18 = vpop.f32.mrf.mxu1  ;;  %3408 = vmatprep.subr.mxu0 %v4180_v56  ;;  %v6288_v37 = vld [vmem:[#allocation24_spill] sm:$0xff]  ;;  %v2987_v3 = vmul.f32 1.442695, %v2629_v36 }
 0x2a8   : > { %v4184_v47 = vpop.eup %4183  ;;  %4209 = vpow2.f32 %v2999_v26  ;;  %3409 = vmatpush2.msra.mxu0 %v4182_v14  ;;  %v2625_v56 = vsub.f32 %v6288_v37, %v5231_v33  ;;  %v2624_v26 = vsub.f32 %v6289_v15, %v5234_v27  ;;  %v2985_v14 = vmul.f32 1.442695, %v2628_v30 }
 0x2a9   : > { %v4186_v41 = vpop.eup %4185  ;;  %4211 = vpow2.f32 %v2997_v23  ;;  %v5779_v60 = vpop.f32.mrf.mxu1  ;;  %3410 = vmatprep.subr.mxu0 %v4184_v47  ;;  %v6290_v23 = vld [vmem:[#allocation22_spill] sm:$0xff]  ;;  %v2983_v38 = vmul.f32 1.442695, %v2627_v62  ;;  %v2981_v36 = vmul.f32 1.442695, %v2626_v22 }
 0x2aa   : > { %v4188_v20 = vpop.eup %4187  ;;  %4213 = vpow2.f32 %v2995_v46  ;;  %3411 = vmatpush2.msra.mxu0 %v4186_v41  ;;  %v2623_v47 = vsub.f32 %v6290_v23, %v5231_v33  ;;  %v2686_v46 = vsub.f32 %v5630_v12, %v5234_v27  ;;  %v2977_v62 = vmul.f32 1.442695, %v2624_v26 }
 0x2ab   : > { %v4190_v51 = vpop.eup %4189  ;;  %4215 = vpow2.f32 %v2993_v48  ;;  %v5785_v24 = vpop.f32.mrf.mxu1  ;;  %3412 = vmatprep.subr.mxu0 %v4188_v20  ;;  %v2979_v48 = vmul.f32 1.442695, %v2625_v56  ;;  %v2685_v20 = vsub.f32 %v5623_v17, %v5231_v33  ;;  %v2683_v56 = vsub.f32 %v5606_v44, %v5231_v33 }
 0x2ac   : > { %v4192_v2 = vpop.eup %4191  ;;  %4217 = vpow2.f32 %v2991_v49  ;;  %3413 = vmatpush2.msra.mxu0 %v4190_v51  ;;  %v2684_v49 = vsub.f32 %v5615_v45, %v5234_v27  ;;  %v2682_v17 = vsub.f32 %v5598_v16, %v5234_v27  ;;  %v3101_v51 = vmul.f32 1.442695, %v2686_v46 }
 0x2ad   : > { %v4194_v37 = vpop.eup %4193  ;;  %4219 = vpow2.f32 %v2989_v25  ;;  %v5791_v41 = vpop.f32.mrf.mxu1  ;;  %3414 = vmatprep.subr.mxu0 %v4192_v2  ;;  %v2975_v25 = vmul.f32 1.442695, %v2623_v47  ;;  %v3099_v2 = vmul.f32 1.442695, %v2685_v20  ;;  %v2680_v44 = vsub.f32 %v5581_v43, %v5234_v27 }
 0x2ae   : > { %v4196_v30 = vpop.eup %4195  ;;  %4221 = vpow2.f32 %v2987_v3  ;;  %3415 = vmatpush2.msra.mxu0 %v4194_v37  ;;  %v3097_v47 = vmul.f32 1.442695, %v2684_v49  ;;  %v2679_v37 = vsub.f32 %v5572_v5, %v5231_v33  ;;  %v2677_v20 = vsub.f32 %v5555_v21, %v5231_v33 }
 0x2af   : > { %v4198_v15 = vpop.eup %4197  ;;  %4223 = vpow2.f32 %v2985_v14  ;;  %v5797_v22 = vpop.f32.mrf.mxu1  ;;  %3416 = vmatprep.subr.mxu0 %v4196_v30  ;;  %v2681_v14 = vsub.f32 %v5589_v6, %v5231_v33  ;;  %v2678_v6 = vsub.f32 %v5564_v59, %v5234_v27  ;;  %v3093_v30 = vmul.f32 1.442695, %v2682_v17 }
 0x2b0   : > { %v4200_v12 = vpop.eup %4199  ;;  %4225 = vpow2.f32 %v2983_v38  ;;  %3417 = vmatpush2.msra.mxu0 %v4198_v15  ;;  %v2676_v5 = vsub.f32 %v5547_v39, %v5234_v27  ;;  %v3089_v49 = vmul.f32 1.442695, %v2680_v44 }
 0x2b1   : > { %v4202_v3 = vpop.eup %4201  ;;  %4227 = vpow2.f32 %v2981_v36  ;;  %v5803_v26 = vpop.f32.mrf.mxu1  ;;  %3418 = vmatprep.subr.mxu0 %v4200_v12  ;;  %v3095_v36 = vmul.f32 1.442695, %v2683_v56  ;;  %v3091_v15 = vmul.f32 1.442695, %v2681_v14  ;;  %v3087_v56 = vmul.f32 1.442695, %v2679_v37 }
 0x2b2   : > { %v4204_v45 = vpop.eup %4203  ;;  %4229 = vpow2.f32 %v2979_v48  ;;  %3419 = vmatpush2.msra.mxu0 %v4202_v3  ;;  %v2674_v3 = vsub.f32 %v5530_v34, %v5234_v27  ;;  %v3085_v17 = vmul.f32 1.442695, %v2678_v6  ;;  %v3083_v14 = vmul.f32 1.442695, %v2677_v20 }
 0x2b3   : > { %v4206_v23 = vpop.eup %4205  ;;  %4231 = vpow2.f32 %v2977_v62  ;;  %v5809_v38 = vpop.f32.mrf.mxu1  ;;  %3420 = vmatprep.subr.mxu0 %v4204_v45  ;;  %v2673_v45 = vsub.f32 %v5521_v32, %v5231_v33  ;;  %v2670_v37 = vsub.f32 %v5496_v50, %v5234_v27  ;;  %v2669_v6 = vsub.f32 %v5487_v0, %v5231_v33 }
 0x2b4   : > { %v4208_v16 = vpop.eup %4207  ;;  %4233 = vpow2.f32 %v2975_v25  ;;  %3421 = vmatpush2.msra.mxu0 %v4206_v23  ;;  %v2675_v25 = vsub.f32 %v5538_v53, %v5231_v33  ;;  %v3081_v23 = vmul.f32 1.442695, %v2676_v5 }
 0x2b5   : > { %v4210_v46 = vpop.eup %4209  ;;  %4235 = vpow2.f32 %v3101_v51  ;;  %v5815_v48 = vpop.f32.mrf.mxu1  ;;  %3422 = vmatprep.subr.mxu0 %v4208_v16 }
 0x2b6   : > { %v4212_v43 = vpop.eup %4211  ;;  %4237 = vpow2.f32 %v3099_v2  ;;  %3423 = vmatpush2.msra.mxu0 %v4210_v46  ;;  %v2672_v2 = vsub.f32 %v5513_v52, %v5234_v27  ;;  %v3079_v16 = vmul.f32 1.442695, %v2675_v25  ;;  %v3069_v25 = vmul.f32 1.442695, %v2670_v37 }
 0x2b7   : > { %v4214_v62 = vpop.eup %4213  ;;  %4239 = vpow2.f32 %v3097_v47  ;;  %v5821_v12 = vpop.f32.mrf.mxu1  ;;  %3424 = vmatprep.subr.mxu0 %v4212_v43  ;;  %v2671_v47 = vsub.f32 %v5504_v54, %v5231_v33  ;;  %v2668_v43 = vsub.f32 %v5479_v55, %v5234_v27 }
 0x2b8   : > { %v4216_v59 = vpop.eup %4215  ;;  %4241 = vpow2.f32 %v3095_v36  ;;  %3425 = vmatpush2.msra.mxu0 %v4214_v62  ;;  %v3077_v36 = vmul.f32 1.442695, %v2674_v3  ;;  %v3073_v20 = vmul.f32 1.442695, %v2672_v2  ;;  %v2667_v62 = vsub.f32 %v5471_v61, %v5231_v33  ;;  %v6294_v2 = vld [vmem:[#allocation4_spill] sm:$0xff] }
 0x2b9   : > { %v4218_v21 = vpop.eup %4217  ;;  %4243 = vpow2.f32 %v3093_v30  ;;  %v5827_v51 = vpop.f32.mrf.mxu1  ;;  %3426 = vmatprep.subr.mxu0 %v4216_v59  ;;  %v3075_v30 = vmul.f32 1.442695, %v2673_v45  ;;  %v3071_v5 = vmul.f32 1.442695, %v2671_v47 }
 0x2ba   : > { %v4220_v39 = vpop.eup %4219  ;;  %4245 = vpow2.f32 %v3091_v15  ;;  %3427 = vmatpush2.msra.mxu0 %v4218_v21  ;;  %v6292_v21 = vld [vmem:[#allocation64_spill] sm:$0xff] }
 0x2bb   : > { %v4222_v53 = vpop.eup %4221  ;;  %4247 = vpow2.f32 %v3089_v49  ;;  %v5833_v44 = vpop.f32.mrf.mxu1  ;;  %3428 = vmatprep.subr.mxu0 %v4220_v39  ;;  %v6291_v49 = vld [vmem:[#allocation65_spill] sm:$0xff]  ;;  %v2665_v3 = vsub.f32 %v6292_v21, %v5231_v33  ;;  %v6293_v39 = vld [vmem:[#allocation63_spill] sm:$0xff]  ;;  %v6301_v21 = vld [vmem:[#allocation58_spill] sm:$0xff] }
 0x2bc   : > { %v4224_v34 = vpop.eup %4223  ;;  %4249 = vpow2.f32 %v3087_v56  ;;  %3429 = vmatpush2.msra.mxu0 %v4222_v53  ;;  %v2666_v59 = vsub.f32 %v6291_v49, %v5234_v27  ;;  %v2664_v45 = vsub.f32 %v6293_v39, %v5234_v27 }
 0x2bd   : > { %v4226_v32 = vpop.eup %4225  ;;  %4251 = vpow2.f32 %v3085_v17  ;;  %v5839_v46 = vpop.f32.mrf.mxu1  ;;  %3430 = vmatprep.subr.mxu0 %v4224_v34  ;;  %v3067_v17 = vmul.f32 1.442695, %v2669_v6  ;;  %v6295_v34 = vld [vmem:[#allocation62_spill] sm:$0xff] }
 0x2be   : > { %v4228_v52 = vpop.eup %4227  ;;  %4253 = vpow2.f32 %v3083_v14  ;;  %3431 = vmatpush2.msra.mxu0 %v4226_v32  ;;  %v3065_v14 = vmul.f32 1.442695, %v2668_v43  ;;  %v2663_v47 = vsub.f32 %v6295_v34, %v5231_v33  ;;  %v6296_v32 = vld [vmem:[#allocation9_spill] sm:$0xff]  ;;  %v3061_v6 = vmul.f32 1.442695, %v2666_v59  ;;  %v6298_v43 = vld [vmem:[#allocation60_spill] sm:$0xff] }
 0x2bf   : > { %v4230_v54 = vpop.eup %4229  ;;  %4255 = vpow2.f32 %v3081_v23  ;;  %v5845_v15 = vpop.f32.mrf.mxu1  ;;  %3432 = vmatprep.subr.mxu0 %v4228_v52  ;;  %v3057_v49 = vmul.f32 1.442695, %v2664_v45  ;;  %v6300_v59 = vld [vmem:[#allocation7_spill] sm:$0xff] }
 0x2c0   : > { %v4232_v50 = vpop.eup %4231  ;;  %4257 = vpow2.f32 %v3079_v16  ;;  %3433 = vmatpush2.msra.mxu0 %v4230_v54  ;;  %v3063_v16 = vmul.f32 1.442695, %v2667_v62  ;;  %v3055_v39 = vmul.f32 1.442695, %v2663_v47 }
 0x2c1   : > { %v4234_v0 = vpop.eup %4233  ;;  %4259 = vpow2.f32 %v3077_v36  ;;  %v5851_v56 = vpop.f32.mrf.mxu1  ;;  %3434 = vmatprep.subr.mxu0 %v4232_v50  ;;  %v6297_v36 = vld [vmem:[#allocation61_spill] sm:$0xff]  ;;  %v3059_v50 = vmul.f32 1.442695, %v2665_v3  ;;  %v6302_v3 = vld [vmem:[#allocation12_spill] sm:$0xff] }
 0x2c2   : > { %v4236_v55 = vpop.eup %4235  ;;  %4261 = vpow2.f32 %v3075_v30  ;;  %3435 = vmatpush2.msra.mxu0 %v4234_v0  ;;  %v2662_v52 = vsub.f32 %v6297_v36, %v5234_v27 }
 0x2c3   : > { %v4238_v61 = vpop.eup %4237  ;;  %4263 = vpow2.f32 %v3073_v20  ;;  %v5857_v53 = vpop.f32.mrf.mxu1  ;;  %3437 = vmatmul.mubr.f32.vlgmr.msra.gmra.mxu0 %v6294_v2  ;;  %3449 = vmatprep.subr.mxu0 %v4236_v55  ;;  %v2661_v20 = vsub.f32 %v6298_v43, %v5231_v33  ;;  %v6303_v2 = vld [vmem:[#allocation57_spill] sm:$0xff] }
 0x2c4   : > { %v4240_v23 = vpop.eup %4239  ;;  %4265 = vpow2.f32 %v3071_v5  ;;  %3442 = vmatprep.mubr.f32.mxu0 %v6296_v32  ;;  %3450 = vmatpush1.msra.mxu0 %v4238_v61  ;;  %v6299_v5 = vld [vmem:[#allocation59_spill] sm:$0xff]  ;;  %v2659_v61 = vsub.f32 %v6301_v21, %v5231_v33  ;;  %v3053_v45 = vmul.f32 1.442695, %v2662_v52  ;;  %v6304_v32 = vld [vmem:[#allocation56_spill] sm:$0xff] }
 0x2c5   : > { %v4242_v37 = vpop.eup %4241  ;;  %4267 = vpow2.f32 %v3069_v25  ;;  %v5865_v30 = vpop.f32.mrf.mxu1  ;;  %3451 = vmatprep.subr.mxu0 %v4240_v23  ;;  %v2660_v0 = vsub.f32 %v6299_v5, %v5234_v27  ;;  %v2658_v23 = vsub.f32 %v6303_v2, %v5234_v27  ;;  %v3051_v36 = vmul.f32 1.442695, %v2661_v20 }
 0x2c6   : > { %v4244_v54 = vpop.eup %4243  ;;  %4269 = vpow2.f32 %v3067_v17  ;;  %3452 = vmatpush1.msra.mxu0 %v4242_v37  ;;  %v2657_v37 = vsub.f32 %v6304_v32, %v5231_v33 }
 0x2c7   : > { %v4246_v62 = vpop.eup %4245  ;;  %4271 = vpow2.f32 %v3065_v14  ;;  %v5871_v55 = vpop.f32.mrf.mxu1  ;;  %3443 = vmatmul.mubr.f32.gmra.mxu0 %v6300_v59  ;;  %3453 = vmatprep.subr.mxu0 %v4244_v54  ;;  %v3049_v43 = vmul.f32 1.442695, %v2660_v0  ;;  %v3047_v59 = vmul.f32 1.442695, %v2659_v61  ;;  %v3045_v20 = vmul.f32 1.442695, %v2658_v23 }
 0x2c8   : > { %v4248_v25 = vpop.eup %4247  ;;  %4273 = vpow2.f32 %v3063_v16  ;;  %3454 = vmatpush1.msra.mxu0 %v4246_v62  ;;  %3513 = vmatprep.mubr.f32.mxu0 %v6302_v3  ;;  %v6305_v16 = vld [vmem:[#allocation55_spill] sm:$0xff]  ;;  %v2717_v3 = vsub.f32 %v5821_v12, %v5231_v33  ;;  %v2714_v12 = vsub.f32 %v5803_v26, %v5234_v27 }
 0x2c9   : > { %v4250_v17 = vpop.eup %4249  ;;  %4275 = vpow2.f32 %v3061_v6  ;;  %v5879_v14 = vpop.f32.mrf.mxu1  ;;  %3455 = vmatprep.subr.mxu0 %v4248_v25  ;;  %v2656_v54 = vsub.f32 %v6305_v16, %v5234_v27  ;;  %v6306_v6 = vld [vmem:[#allocation54_spill] sm:$0xff] }
 0x2ca   : > { %v4252_v34 = vpop.eup %4251  ;;  %4277 = vpow2.f32 %v3059_v50  ;;  %3456 = vmatpush1.msra.mxu0 %v4250_v17  ;;  %v2655_v5 = vsub.f32 %v6306_v6, %v5231_v33  ;;  %v2718_v50 = vsub.f32 %v5827_v51, %v5234_v27 }
 0x2cb   : > { %v4254_v47 = vpop.eup %4253  ;;  %4279 = vpow2.f32 %v3057_v49  ;;  %v5885_v62 = vpop.f32.mrf.mxu1  ;;  %3457 = vmatprep.subr.mxu0 %v4252_v34  ;;  %v3043_v49 = vmul.f32 1.442695, %v2657_v37  ;;  %v3041_v61 = vmul.f32 1.442695, %v2656_v54 }
 0x2cc   : > { %v4256_v52 = vpop.eup %4255  ;;  %4281 = vpow2.f32 %v3055_v39  ;;  %3458 = vmatpush1.msra.mxu0 %v4254_v47  ;;  %v2716_v39 = vsub.f32 %v5815_v48, %v5234_v27  ;;  %v3039_v23 = vmul.f32 1.442695, %v2655_v5  ;;  %v3165_v32 = vmul.f32 1.442695, %v2718_v50 }
 0x2cd   : > { %v4258_v25 = vpop.eup %4257  ;;  %4283 = vpow2.f32 %v3053_v45  ;;  %v5891_v21 = vpop.f32.mrf.mxu1  ;;  %3459 = vmatprep.subr.mxu0 %v4256_v52  ;;  %v2715_v45 = vsub.f32 %v5809_v38, %v5231_v33  ;;  %v3163_v47 = vmul.f32 1.442695, %v2717_v3  ;;  %v2712_v38 = vsub.f32 %v5791_v41, %v5234_v27 }
 0x2ce   : > { %v4260_v0 = vpop.eup %4259  ;;  %4285 = vpow2.f32 %v3051_v36  ;;  %3460 = vmatpush1.msra.mxu0 %v4258_v25  ;;  %v2713_v36 = vsub.f32 %v5797_v22, %v5231_v33  ;;  %v3161_v54 = vmul.f32 1.442695, %v2716_v39  ;;  %v2711_v52 = vsub.f32 %v5785_v24, %v5231_v33 }
 0x2cf   : > { %v4262_v17 = vpop.eup %4261  ;;  %4287 = vpow2.f32 %v3049_v43  ;;  %v5897_v2 = vpop.f32.mrf.mxu1  ;;  %3461 = vmatprep.subr.mxu0 %v4260_v0  ;;  %v3159_v6 = vmul.f32 1.442695, %v2715_v45  ;;  %v2710_v22 = vsub.f32 %v5779_v60, %v5234_v27  ;;  %v2708_v24 = vsub.f32 %v5767_v7, %v5234_v27 }
 0x2d0   : > { %v4264_v51 = vpop.eup %4263  ;;  %4289 = vpow2.f32 %v3047_v59  ;;  %3462 = vmatpush1.msra.mxu0 %v4262_v17  ;;  %v3157_v59 = vmul.f32 1.442695, %v2714_v12  ;;  %v3155_v50 = vmul.f32 1.442695, %v2713_v36  ;;  %v2707_v17 = vsub.f32 %v5761_v31, %v5231_v33 }
 0x2d1   : > { %v4266_v34 = vpop.eup %4265  ;;  %4291 = vpow2.f32 %v3045_v20  ;;  %v5903_v37 = vpop.f32.mrf.mxu1  ;;  %3463 = vmatprep.subr.mxu0 %v4264_v51  ;;  %v2709_v20 = vsub.f32 %v5773_v18, %v5231_v33  ;;  %v2706_v39 = vsub.f32 %v5755_v29, %v5234_v27  ;;  %v3149_v51 = vmul.f32 1.442695, %v2710_v22 }
 0x2d2   : > { %v4268_v48 = vpop.eup %4267  ;;  %4293 = vpow2.f32 %v3043_v49  ;;  %3464 = vmatpush1.msra.mxu0 %v4266_v34  ;;  %v3153_v49 = vmul.f32 1.442695, %v2712_v38  ;;  %v2705_v45 = vsub.f32 %v5749_v4, %v5231_v33  ;;  %v2704_v12 = vsub.f32 %v5743_v19, %v5234_v27 }
 0x2d3   : > { %v4270_v16 = vpop.eup %4269  ;;  %4295 = vpow2.f32 %v3041_v61  ;;  %v5909_v43 = vpop.f32.mrf.mxu1  ;;  %3465 = vmatprep.subr.mxu0 %v4268_v48  ;;  %v3151_v61 = vmul.f32 1.442695, %v2711_v52  ;;  %v3147_v34 = vmul.f32 1.442695, %v2709_v20  ;;  %v2703_v36 = vsub.f32 %v5737_v63, %v5231_v33 }
 0x2d4   : > { %v4272_v26 = vpop.eup %4271  ;;  %4297 = vpow2.f32 %v3039_v23  ;;  %3466 = vmatpush1.msra.mxu0 %v4270_v16  ;;  %v2702_v16 = vsub.f32 %v5731_v9, %v5234_v27  ;;  %v3141_v38 = vmul.f32 1.442695, %v2706_v39  ;;  %v3139_v52 = vmul.f32 1.442695, %v2705_v45 }
 0x2d5   : > { %v4274_v5 = vpop.eup %4273  ;;  %4299 = vpow2.f32 %v3165_v32  ;;  %v5915_v25 = vpop.f32.mrf.mxu1  ;;  %3467 = vmatprep.subr.mxu0 %v4272_v26  ;;  %v3145_v32 = vmul.f32 1.442695, %v2708_v24  ;;  %v2701_v26 = vsub.f32 %v5725_v58, %v5231_v33  ;;  %v2698_v20 = vsub.f32 %v5707_v8, %v5234_v27 }
 0x2d6   : > { %v4276_v41 = vpop.eup %4275  ;;  %4301 = vpow2.f32 %v3163_v47  ;;  %3468 = vmatpush1.msra.mxu0 %v4274_v5  ;;  %v3143_v47 = vmul.f32 1.442695, %v2707_v17  ;;  %v3137_v5 = vmul.f32 1.442695, %v2704_v12  ;;  %v2697_v24 = vsub.f32 %v5701_v40, %v5231_v33 }
 0x2d7   : > { %v4278_v0 = vpop.eup %4277  ;;  %4303 = vpow2.f32 %v3161_v54  ;;  %v5921_v3 = vpop.f32.mrf.mxu1  ;;  %3469 = vmatprep.subr.mxu0 %v4276_v41  ;;  %v3135_v41 = vmul.f32 1.442695, %v2703_v36  ;;  %v2692_v12 = vsub.f32 %v5669_v10, %v5234_v27  ;;  %v2691_v36 = vsub.f32 %v5661_v57, %v5231_v33 }
 0x2d8   : > { %v4280_v60 = vpop.eup %4279  ;;  %4305 = vpow2.f32 %v3159_v6  ;;  %3470 = vmatpush1.msra.mxu0 %v4278_v0  ;;  %v2700_v6 = vsub.f32 %v5719_v35, %v5234_v27 }
 0x2d9   : > { %v4282_v18 = vpop.eup %4281  ;;  %4307 = vpow2.f32 %v3157_v59  ;;  %v5927_v23 = vpop.f32.mrf.mxu1  ;;  %3471 = vmatprep.subr.mxu0 %v4280_v60  ;;  %v2699_v59 = vsub.f32 %v5713_v28, %v5231_v33  ;;  %v2696_v60 = vsub.f32 %v5695_v1, %v5234_v27 }
 0x2da   : > { %v4284_v7 = vpop.eup %4283  ;;  %4309 = vpow2.f32 %v3155_v50  ;;  %3472 = vmatpush1.msra.mxu0 %v4282_v18  ;;  %v3133_v50 = vmul.f32 1.442695, %v2702_v16  ;;  %v3129_v17 = vmul.f32 1.442695, %v2700_v6  ;;  %v2695_v18 = vsub.f32 %v5689_v42, %v5231_v33  ;;  %v6309_v6 = vld [vmem:[#allocation67_spill] sm:$0xff] }
 0x2db   : > { %v4286_v31 = vpop.eup %4285  ;;  %4311 = vpow2.f32 %v3153_v49  ;;  %v5933_v48 = vpop.f32.mrf.mxu1  ;;  %3473 = vmatprep.subr.mxu0 %v4284_v7  ;;  %v3131_v49 = vmul.f32 1.442695, %v2701_v26  ;;  %v3127_v39 = vmul.f32 1.442695, %v2699_v59  ;;  %v3125_v7 = vmul.f32 1.442695, %v2698_v20 }
 0x2dc   : > { %v4288_v29 = vpop.eup %4287  ;;  %4313 = vpow2.f32 %v3151_v61  ;;  %3474 = vmatpush1.msra.mxu0 %v4286_v31  ;;  %v3123_v31 = vmul.f32 1.442695, %v2697_v24  ;;  %v6308_v26 = vld [vmem:[#allocation21_spill] sm:$0xff] }
 0x2dd   : > { %v4290_v4 = vpop.eup %4289  ;;  %4315 = vpow2.f32 %v3149_v51  ;;  %v5939_v54 = vpop.f32.mrf.mxu1  ;;  %3475 = vmatprep.subr.mxu0 %v4288_v29  ;;  %v2694_v51 = vsub.f32 %v5683_v13, %v5234_v27 }
 0x2de   : > { %v4292_v19 = vpop.eup %4291  ;;  %4317 = vpow2.f32 %v3147_v34  ;;  %3476 = vmatpush1.msra.mxu0 %v4290_v4  ;;  %v2693_v34 = vsub.f32 %v5675_v11, %v5231_v33  ;;  %v6307_v4 = vld [vmem:[#allocation20_spill] sm:$0xff] }
 0x2df   : > { %v4294_v63 = vpop.eup %4293  ;;  %4319 = vpow2.f32 %v3145_v32  ;;  %v5945_v22 = vpop.f32.mrf.mxu1  ;;  %3477 = vmatprep.subr.mxu0 %v4292_v19  ;;  %v3121_v32 = vmul.f32 1.442695, %v2696_v60  ;;  %v2690_v16 = vsub.f32 %v6307_v4, %v5234_v27 }
 0x2e0   : > { %v4296_v9 = vpop.eup %4295  ;;  %4321 = vpow2.f32 %v3143_v47  ;;  %3478 = vmatpush1.msra.mxu0 %v4294_v63  ;;  %v3119_v47 = vmul.f32 1.442695, %v2695_v18  ;;  %v3115_v63 = vmul.f32 1.442695, %v2693_v34 }
 0x2e1   : > { %v4298_v58 = vpop.eup %4297  ;;  %4323 = vpow2.f32 %v3141_v38  ;;  %v5951_v0 = vpop.f32.mrf.mxu1  ;;  %3479 = vmatprep.subr.mxu0 %v4296_v9  ;;  %v3117_v38 = vmul.f32 1.442695, %v2694_v51  ;;  %v3113_v9 = vmul.f32 1.442695, %v2692_v12  ;;  %v3109_v24 = vmul.f32 1.442695, %v2690_v16 }
 0x2e2   : > { %v4300_v35 = vpop.eup %4299  ;;  %4325 = vpow2.f32 %v3139_v52  ;;  %3480 = vmatpush1.msra.mxu0 %v4298_v58  ;;  %v2689_v52 = vsub.f32 %v6308_v26, %v5231_v33  ;;  %v6310_v58 = vld [vmem:[#allocation66_spill] sm:$0xff] }
 0x2e3   : > { %v4302_v28 = vpop.eup %4301  ;;  %4327 = vpow2.f32 %v3137_v5  ;;  %v5957_v61 = vpop.f32.mrf.mxu1  ;;  %3481 = vmatprep.subr.mxu0 %v4300_v35  ;;  %v2688_v5 = vsub.f32 %v6309_v6, %v5234_v27  ;;  %v2687_v20 = vsub.f32 %v6310_v58, %v5231_v33 }
 0x2e4   : > { %v4304_v8 = vpop.eup %4303  ;;  %4329 = vpow2.f32 %v3135_v41  ;;  %3482 = vmatpush2.msra.mxu0 %v4302_v28  ;;  %v3107_v60 = vmul.f32 1.442695, %v2689_v52 }
 0x2e5   : > { %v4306_v40 = vpop.eup %4305  ;;  %4331 = vpow2.f32 %v3133_v50  ;;  %v5963_v45 = vpop.f32.mrf.mxu1  ;;  %3483 = vmatprep.subr.mxu0 %v4304_v8  ;;  %v3111_v50 = vmul.f32 1.442695, %v2691_v36  ;;  %v3105_v8 = vmul.f32 1.442695, %v2688_v5 }
 0x2e6   : > { %v4308_v1 = vpop.eup %4307  ;;  %4333 = vpow2.f32 %v3131_v49  ;;  %3484 = vmatpush2.msra.mxu0 %v4306_v40  ;;  %v3103_v40 = vmul.f32 1.442695, %v2687_v20 }
 0x2e7   : > { %v4310_v42 = vpop.eup %4309  ;;  %4335 = vpow2.f32 %v3129_v17  ;;  %v5969_v29 = vpop.f32.mrf.mxu1  ;;  %3485 = vmatprep.subr.mxu0 %v4308_v1 }
 0x2e8   : > { %v4312_v13 = vpop.eup %4311  ;;  %4337 = vpow2.f32 %v3127_v39  ;;  %3486 = vmatpush2.msra.mxu0 %v4310_v42 }
 0x2e9   : > { %v4314_v11 = vpop.eup %4313  ;;  %4339 = vpow2.f32 %v3125_v7  ;;  %v5975_v19 = vpop.f32.mrf.mxu1  ;;  %3487 = vmatprep.subr.mxu0 %v4312_v13 }
 0x2ea   : > { %v4316_v10 = vpop.eup %4315  ;;  %4341 = vpow2.f32 %v3123_v31  ;;  %3488 = vmatpush2.msra.mxu0 %v4314_v11 }
 0x2eb   : > { %v4318_v57 = vpop.eup %4317  ;;  %4343 = vpow2.f32 %v3121_v32  ;;  %v5981_v59 = vpop.f32.mrf.mxu1  ;;  %3489 = vmatprep.subr.mxu0 %v4316_v10 }
 0x2ec   : > { %v4320_v41 = vpop.eup %4319  ;;  %4345 = vpow2.f32 %v3119_v47  ;;  %3490 = vmatpush2.msra.mxu0 %v4318_v57 }
 0x2ed   : > { %v4322_v35 = vpop.eup %4321  ;;  %4347 = vpow2.f32 %v3117_v38  ;;  %v5985_v49 = vpop.f32.mrf.mxu1  ;;  %3491 = vmatprep.subr.mxu0 %v4320_v41 }
 0x2ee   : > { %v4324_v28 = vpop.eup %4323  ;;  %4349 = vpow2.f32 %v3115_v63  ;;  %3492 = vmatpush2.msra.mxu0 %v4322_v35  ;;  %v2744_v20 = vsub.f32 %v5985_v49, %v5234_v27  ;;  %v2741_v49 = vsub.f32 %v5969_v29, %v5231_v33  ;;  %v2738_v29 = vsub.f32 %v5951_v0, %v5234_v27 }
 0x2ef   : > { %v4326_v17 = vpop.eup %4325  ;;  %4351 = vpow2.f32 %v3113_v9  ;;  %v2406_v18 = vpop.f32.mrf.mxu1  ;;  %3493 = vmatprep.subr.mxu0 %v4324_v28  ;;  %v2743_v28 = vsub.f32 %v5981_v59, %v5231_v33  ;;  %v2735_v0 = vsub.f32 %v5933_v48, %v5231_v33  ;;  %v2732_v48 = vsub.f32 %v5915_v25, %v5234_v27 }
 0x2f0   : > { %v4328_v39 = vpop.eup %4327  ;;  %4353 = vpow2.f32 %v3111_v50  ;;  %3494 = vmatpush2.msra.mxu0 %v4326_v17  ;;  %v2745_v5 = vsub.f32 %v2406_v18, %v5231_v33  ;;  %v2742_v18 = vsub.f32 %v5975_v19, %v5234_v27  ;;  %v2729_v25 = vsub.f32 %v5897_v2, %v5231_v33 }
 0x2f1   : > { %v4330_v51 = vpop.eup %4329  ;;  %4355 = vpow2.f32 %v3109_v24  ;;  %v2408_v7 = vpop.f32.mrf.mxu1  ;;  %3495 = vmatprep.subr.mxu0 %v4328_v39 }
 0x2f2   : > { %v4332_v1 = vpop.eup %4331  ;;  %4357 = vpow2.f32 %v3107_v60  ;;  %3496 = vmatpush2.msra.mxu0 %v4330_v51  ;;  %v2746_v63 = vsub.f32 %v2408_v7, %v5234_v27  ;;  %v3219_v51 = vmul.f32 1.442695, %v2745_v5  ;;  %v3199_v5 = vmul.f32 1.442695, %v2735_v0 }
 0x2f3   : > { %v4334_v34 = vpop.eup %4333  ;;  %4359 = vpow2.f32 %v3105_v8  ;;  %v2412_v31 = vpop.f32.mrf.mxu1  ;;  %3497 = vmatprep.subr.mxu0 %v4332_v1  ;;  %v2740_v1 = vsub.f32 %v5963_v45, %v5234_v27  ;;  %v2737_v45 = vsub.f32 %v5945_v22, %v5231_v33  ;;  %v2734_v22 = vsub.f32 %v5927_v23, %v5234_v27 }
 0x2f4   : > { %v4336_v42 = vpop.eup %4335  ;;  %4361 = vpow2.f32 %v3103_v40  ;;  %3498 = vmatpush2.msra.mxu0 %v4334_v34  ;;  %v2747_v10 = vsub.f32 %v2412_v31, %v5231_v33  ;;  %v3221_v39 = vmul.f32 1.442695, %v2746_v63  ;;  %v3217_v34 = vmul.f32 1.442695, %v2744_v20  ;;  %v6313_v63 = vld [vmem:[#allocation14_spill] sm:$0xff] }
 0x2f5   : > { %v4338_v12 = vpop.eup %4337  ;;  %v2414_v32 = vpop.f32.mrf.mxu1  ;;  %3499 = vmatprep.subr.mxu0 %v4336_v42  ;;  %v2739_v31 = vsub.f32 %v5957_v61, %v5231_v33  ;;  %v3215_v42 = vmul.f32 1.442695, %v2743_v28  ;;  %v2736_v61 = vsub.f32 %v5939_v54, %v5234_v27  ;;  %v3203_v54 = vmul.f32 1.442695, %v2737_v45 }
 0x2f6   : > { %v4340_v13 = vpop.eup %4339  ;;  %3500 = vmatpush2.msra.mxu0 %v4338_v12  ;;  %v2748_v4 = vsub.f32 %v2414_v32, %v5234_v27  ;;  %v3223_v60 = vmul.f32 1.442695, %v2747_v10  ;;  %v3213_v32 = vmul.f32 1.442695, %v2742_v18  ;;  %v3205_v10 = vmul.f32 1.442695, %v2738_v29 }
 0x2f7   : > { %v4342_v36 = vpop.eup %4341  ;;  %v2418_v47 = vpop.f32.mrf.mxu1  ;;  %3501 = vmatprep.subr.mxu0 %v4340_v13  ;;  %v3211_v13 = vmul.f32 1.442695, %v2741_v49  ;;  %v2731_v23 = vsub.f32 %v5909_v43, %v5231_v33  ;;  %v2728_v43 = vsub.f32 %v5891_v21, %v5234_v27  ;;  %v3193_v28 = vmul.f32 1.442695, %v2732_v48 }
 0x2f8   : > { %v4344_v11 = vpop.eup %4343  ;;  %v2749_v16 = vsub.f32 %v2418_v47, %v5231_v33  ;;  %3502 = vmatpush2.msra.mxu0 %v4342_v36  ;;  %v3225_v50 = vmul.f32 1.442695, %v2748_v4  ;;  %v6311_v47 = vld [vmem:[#allocation10_spill] sm:$0xff]  ;;  %v6312_v4 = vld [vmem:[#allocation16_spill] sm:$0xff]  ;;  %v2725_v49 = vsub.f32 %v5871_v55, %v5231_v33  ;;  %v2722_v29 = vsub.f32 %v5851_v56, %v5234_v27 }
 0x2f9   : > { %v4346_v38 = vpop.eup %4345  ;;  %v2420_v26 = vpop.f32.mrf.mxu1  ;;  %3503 = vmatprep.subr.mxu0 %v4344_v11  ;;  %v3209_v11 = vmul.f32 1.442695, %v2740_v1  ;;  %v2724_v1 = vsub.f32 %v5865_v30, %v5234_v27  ;;  %v2721_v45 = vsub.f32 %v5845_v15, %v5231_v33 }
 0x2fa   : > { %v4348_v52 = vpop.eup %4347  ;;  %v2750_v57 = vsub.f32 %v2420_v26, %v5234_v27  ;;  %3504 = vmatpush2.msra.mxu0 %v4346_v38  ;;  %v3227_v9 = vmul.f32 1.442695, %v2749_v16  ;;  %v3207_v16 = vmul.f32 1.442695, %v2739_v31  ;;  %v2733_v26 = vsub.f32 %v5921_v3, %v5231_v33 }
 0x2fb   : > { %v4350_v6 = vpop.eup %4349  ;;  %v5993_v41 = vpop.f32.mrf.mxu1  ;;  %3505 = vmatprep.subr.mxu0 %v4348_v52  ;;  %v2730_v3 = vsub.f32 %v5903_v37, %v5234_v27  ;;  %v2727_v37 = vsub.f32 %v5885_v62, %v5231_v33 }
 0x2fc   : > { %v4352_v58 = vpop.eup %4351  ;;  %v3229_v35 = vmul.f32 1.442695, %v2750_v57  ;;  %3506 = vmatpush2.msra.mxu0 %v4350_v6  ;;  %v3201_v57 = vmul.f32 1.442695, %v2736_v61  ;;  %v6314_v6 = vld [vmem:[#allocation13_spill] sm:$0xff]  ;;  %v2720_v61 = vsub.f32 %v5839_v46, %v5234_v27 }
 0x2fd   : > { %v4354_v24 = vpop.eup %4353  ;;  %v5999_v17 = vpop.f32.mrf.mxu1  ;;  %3507 = vmatprep.subr.mxu0 %v4352_v58  ;;  %v3197_v58 = vmul.f32 1.442695, %v2734_v22  ;;  %v3183_v31 = vmul.f32 1.442695, %v2727_v37  ;;  %v3173_v22 = vmul.f32 1.442695, %v2722_v29 }
 0x2fe   : > { %v4356_v8 = vpop.eup %4355  ;;  %4363 = vpow2.f32 %v3229_v35  ;;  %3508 = vmatpush2.msra.mxu0 %v4354_v24 }
 0x2ff   : > { %v4358_v40 = vpop.eup %4357  ;;  %4365 = vpow2.f32 %v3227_v9  ;;  %v6005_v7 = vpop.f32.mrf.mxu1  ;;  %3509 = vmatprep.subr.mxu0 %v4356_v8  ;;  %v3191_v8 = vmul.f32 1.442695, %v2731_v23 }
 0x300   : > { %v4360_v59 = vpop.eup %4359  ;;  %4367 = vpow2.f32 %v3225_v50  ;;  %3510 = vmatpush2.msra.mxu0 %v4358_v40  ;;  %v3195_v50 = vmul.f32 1.442695, %v2733_v26  ;;  %v3189_v40 = vmul.f32 1.442695, %v2730_v3  ;;  %v3171_v26 = vmul.f32 1.442695, %v2721_v45 }
 0x301   : > { %v4362_v19 = vpop.eup %4361  ;;  %4369 = vpow2.f32 %v3223_v60  ;;  %v6011_v12 = vpop.f32.mrf.mxu1  ;;  %3511 = vmatprep.subr.mxu0 %v4360_v59 }
 0x302   : > { %4371 = vpow2.f32 %v3221_v39  ;;  %3512 = vmatpush2.msra.mxu0 %v4362_v19  ;;  %v2726_v39 = vsub.f32 %v5879_v14, %v5234_v27  ;;  %v2723_v19 = vsub.f32 %v5857_v53, %v5231_v33 }
 0x303   : > { %4373 = vpow2.f32 %v3219_v51  ;;  %v6017_v36 = vpop.f32.mrf.mxu1  ;;  %3514 = vmatmul.mubr.f32.vlgmr.msra.gmra.mxu0 %v6311_v47  ;;  %v3187_v51 = vmul.f32 1.442695, %v2729_v25 }
 0x304   : > { %4375 = vpow2.f32 %v3217_v34  ;;  %3519 = vmatprep.mubr.f32.mxu0 %v6312_v4  ;;  %v3185_v34 = vmul.f32 1.442695, %v2728_v43  ;;  %v2719_v4 = vsub.f32 %v5833_v44, %v5231_v33  ;;  %v3175_v0 = vmul.f32 1.442695, %v2723_v19 }
 0x305   : > { %4377 = vpow2.f32 %v3215_v42  ;;  %v6025_v38 = vpop.f32.mrf.mxu1 }
 0x306   : > { %4379 = vpow2.f32 %v3213_v32  ;;  %v3181_v32 = vmul.f32 1.442695, %v2726_v39  ;;  %v3167_v48 = vmul.f32 1.442695, %v2719_v4 }
 0x307   : > { %4381 = vpow2.f32 %v3211_v13  ;;  %v6031_v52 = vpop.f32.mrf.mxu1  ;;  %3520 = vmatmul.mubr.f32.gmra.mxu0 %v6313_v63  ;;  %v3179_v13 = vmul.f32 1.442695, %v2725_v49  ;;  %v3169_v63 = vmul.f32 1.442695, %v2720_v61 }
 0x308   : > { %4383 = vpow2.f32 %v3209_v11  ;;  %3590 = vmatprep.mubr.f32.mxu0 %v6314_v6  ;;  %v3177_v11 = vmul.f32 1.442695, %v2724_v1 }
 0x309   : > { %4385 = vpow2.f32 %v3207_v16  ;;  %v6039_v9 = vpop.f32.mrf.mxu1 }
 0x30a   : > { %4387 = vpow2.f32 %v3205_v10 }
 0x30b   : > { %v4364_v20 = vpop.eup %4363  ;;  %4389 = vpow2.f32 %v3203_v54  ;;  %v6045_v35 = vpop.f32.mrf.mxu1 }
 0x30c   : > { %v4366_v24 = vpop.eup %4365  ;;  %4391 = vpow2.f32 %v3201_v57  ;;  %3526 = vmatprep.subr.mxu0 %v4364_v20 }
 0x30d   : > { %v4368_v60 = vpop.eup %4367  ;;  %4393 = vpow2.f32 %v3199_v5  ;;  %v6051_v18 = vpop.f32.mrf.mxu1  ;;  %3527 = vmatpush1.msra.mxu0 %v4366_v24 }
 0x30e   : > { %v4370_v2 = vpop.eup %4369  ;;  %4395 = vpow2.f32 %v3197_v58  ;;  %3528 = vmatprep.subr.mxu0 %v4368_v60 }
 0x30f   : > { %v4372_v21 = vpop.eup %4371  ;;  %4397 = vpow2.f32 %v3195_v50  ;;  %v6057_v59 = vpop.f32.mrf.mxu1  ;;  %3529 = vmatpush1.msra.mxu0 %v4370_v2 }
 0x310   : > { %v4374_v62 = vpop.eup %4373  ;;  %4399 = vpow2.f32 %v3193_v28  ;;  %3530 = vmatprep.subr.mxu0 %v4372_v21 }
 0x311   : > { %v4376_v14 = vpop.eup %4375  ;;  %4401 = vpow2.f32 %v3191_v8  ;;  %v6063_v42 = vpop.f32.mrf.mxu1  ;;  %3531 = vmatpush1.msra.mxu0 %v4374_v62 }
 0x312   : > { %v4378_v55 = vpop.eup %4377  ;;  %4403 = vpow2.f32 %v3189_v40  ;;  %3532 = vmatprep.subr.mxu0 %v4376_v14 }
 0x313   : > { %v4380_v30 = vpop.eup %4379  ;;  %4405 = vpow2.f32 %v3187_v51  ;;  %v6069_v47 = vpop.f32.mrf.mxu1  ;;  %3533 = vmatpush1.msra.mxu0 %v4378_v55 }
 0x314   : > { %v4382_v53 = vpop.eup %4381  ;;  %4407 = vpow2.f32 %v3185_v34  ;;  %3534 = vmatprep.subr.mxu0 %v4380_v30 }
 0x315   : > { %v4384_v56 = vpop.eup %4383  ;;  %4409 = vpow2.f32 %v3183_v31  ;;  %v6075_v16 = vpop.f32.mrf.mxu1  ;;  %3535 = vmatpush1.msra.mxu0 %v4382_v53 }
 0x316   : > { %v4386_v15 = vpop.eup %4385  ;;  %4411 = vpow2.f32 %v3181_v32  ;;  %3536 = vmatprep.subr.mxu0 %v4384_v56 }
 0x317   : > { %v4388_v10 = vpop.eup %4387  ;;  %4413 = vpow2.f32 %v3179_v13  ;;  %v6077_v46 = vpop.f32.mrf.mxu1  ;;  %3537 = vmatpush1.msra.mxu0 %v4386_v15 }
 0x318   : > { %v4390_v54 = vpop.eup %4389  ;;  %4415 = vpow2.f32 %v3177_v11  ;;  %3538 = vmatprep.subr.mxu0 %v4388_v10 }
 0x319   : > { %v4392_v44 = vpop.eup %4391  ;;  %4417 = vpow2.f32 %v3175_v0  ;;  %v6079_v57 = vpop.f32.mrf.mxu1  ;;  %3539 = vmatpush1.msra.mxu0 %v4390_v54 }
 0x31a   : > { %v4394_v6 = vpop.eup %4393  ;;  %4419 = vpow2.f32 %v3173_v22  ;;  %3540 = vmatprep.subr.mxu0 %v4392_v44 }
 0x31b   : > { %v4396_v23 = vpop.eup %4395  ;;  %4421 = vpow2.f32 %v3171_v26  ;;  %v6081_v5 = vpop.f32.mrf.mxu1  ;;  %3541 = vmatpush1.msra.mxu0 %v4394_v6 }
 0x31c   : > { %v4398_v3 = vpop.eup %4397  ;;  %4423 = vpow2.f32 %v3169_v63  ;;  %3542 = vmatprep.subr.mxu0 %v4396_v23 }
 0x31d   : > { %v4400_v58 = vpop.eup %4399  ;;  %4425 = vpow2.f32 %v3167_v48  ;;  %v6083_v20 = vpop.f32.mrf.mxu1  ;;  %3543 = vmatpush1.msra.mxu0 %v4398_v3 }
 0x31e   : > { %v4402_v25 = vpop.eup %4401  ;;  %3544 = vmatprep.subr.mxu0 %v4400_v58 }
 0x31f   : > { %v4404_v50 = vpop.eup %4403  ;;  %v6085_v24 = vpop.f32.mrf.mxu1  ;;  %3545 = vmatpush1.msra.mxu0 %v4402_v25 }
 0x320   : > { %v4406_v43 = vpop.eup %4405  ;;  %3546 = vmatprep.subr.mxu0 %v4404_v50 }
 0x321   : > { %v4408_v28 = vpop.eup %4407  ;;  %v6087_v60 = vpop.f32.mrf.mxu1  ;;  %3547 = vmatpush1.msra.mxu0 %v4406_v43 }
 0x322   : > { %v4410_v37 = vpop.eup %4409  ;;  %3548 = vmatprep.subr.mxu0 %v4408_v28  ;;  %v2770_v28 = vsub.f32 %v6087_v60, %v5234_v27  ;;  %v2766_v60 = vsub.f32 %v6079_v57, %v5234_v27  ;;  %v2762_v57 = vsub.f32 %v6063_v42, %v5234_v27 }
 0x323   : > { %v4412_v8 = vpop.eup %4411  ;;  %v2484_v2 = vpop.f32.mrf.mxu1  ;;  %3549 = vmatpush1.msra.mxu0 %v4410_v37 }
 0x324   : > { %v4414_v39 = vpop.eup %4413  ;;  %3550 = vmatprep.subr.mxu0 %v4412_v8  ;;  %v2771_v50 = vsub.f32 %v2484_v2, %v5231_v33  ;;  %v2769_v8 = vsub.f32 %v6085_v24, %v5231_v33  ;;  %v2767_v2 = vsub.f32 %v6081_v5, %v5231_v33  ;;  %v2765_v24 = vsub.f32 %v6077_v46, %v5231_v33 }
 0x325   : > { %v4416_v40 = vpop.eup %4415  ;;  %v2486_v21 = vpop.f32.mrf.mxu1  ;;  %3551 = vmatpush1.msra.mxu0 %v4414_v39  ;;  %v2763_v5 = vsub.f32 %v6069_v47, %v5231_v33  ;;  %v2761_v46 = vsub.f32 %v6057_v59, %v5231_v33  ;;  %v2758_v59 = vsub.f32 %v6039_v9, %v5234_v27  ;;  %v2755_v9 = vsub.f32 %v6017_v36, %v5231_v33 }
 0x326   : > { %v4418_v49 = vpop.eup %4417  ;;  %3552 = vmatprep.subr.mxu0 %v4416_v40  ;;  %v2772_v58 = vsub.f32 %v2486_v21, %v5234_v27  ;;  %v2768_v40 = vsub.f32 %v6083_v20, %v5234_v27  ;;  %v2764_v20 = vsub.f32 %v6075_v16, %v5234_v27  ;;  %v2760_v16 = vsub.f32 %v6051_v18, %v5234_v27 }
 0x327   : > { %v4420_v51 = vpop.eup %4419  ;;  %v2490_v62 = vpop.f32.mrf.mxu1  ;;  %3553 = vmatpush1.msra.mxu0 %v4418_v49  ;;  %v3271_v49 = vmul.f32 1.442695, %v2771_v50  ;;  %v3255_v42 = vmul.f32 1.442695, %v2763_v5  ;;  %v2757_v18 = vsub.f32 %v6031_v52, %v5231_v33  ;;  %v2754_v52 = vsub.f32 %v6011_v12, %v5234_v27  ;;  %v6317_v5 = vld [vmem:[#allocation15_spill] sm:$0xff] }
 0x328   : > { %v4422_v1 = vpop.eup %4421  ;;  %3554 = vmatprep.subr.mxu0 %v4420_v51  ;;  %v2773_v23 = vsub.f32 %v2490_v62, %v5231_v33  ;;  %v3273_v21 = vmul.f32 1.442695, %v2772_v58  ;;  %v3269_v51 = vmul.f32 1.442695, %v2770_v28  ;;  %v3267_v62 = vmul.f32 1.442695, %v2769_v8 }
 0x329   : > { %v4424_v34 = vpop.eup %4423  ;;  %v2492_v14 = vpop.f32.mrf.mxu1  ;;  %3555 = vmatpush1.msra.mxu0 %v4422_v1  ;;  %v3265_v1 = vmul.f32 1.442695, %v2768_v40  ;;  %v2752_v36 = vsub.f32 %v5999_v17, %v5234_v27  ;;  %v2751_v12 = vsub.f32 %v5993_v41, %v5231_v33 }
 0x32a   : > { %v4426_v19 = vpop.eup %4425  ;;  %3556 = vmatprep.subr.mxu0 %v4424_v34  ;;  %v2774_v48 = vsub.f32 %v2492_v14, %v5234_v27  ;;  %v3275_v39 = vmul.f32 1.442695, %v2773_v23  ;;  %v3263_v34 = vmul.f32 1.442695, %v2767_v2  ;;  %v3261_v14 = vmul.f32 1.442695, %v2766_v60 }
 0x32b   : > { %v2496_v31 = vpop.f32.mrf.mxu1  ;;  %3557 = vmatpush1.msra.mxu0 %v4426_v19  ;;  %v3231_v58 = vmul.f32 1.442695, %v2751_v12 }
 0x32c   : > { %v2775_v63 = vsub.f32 %v2496_v31, %v5231_v33  ;;  %v3277_v37 = vmul.f32 1.442695, %v2774_v48  ;;  %v3259_v31 = vmul.f32 1.442695, %v2765_v24 }
 0x32d   : > { %v2498_v55 = vpop.f32.mrf.mxu1 }
 0x32e   : > { %v2776_v10 = vsub.f32 %v2498_v55, %v5234_v27  ;;  %v3279_v43 = vmul.f32 1.442695, %v2775_v63 }
 0x32f   : > { %v2502_v29 = vpop.f32.mrf.mxu1 }
 0x330   : > { %v2777_v15 = vsub.f32 %v2502_v29, %v5231_v33  ;;  %v3281_v25 = vmul.f32 1.442695, %v2776_v10  ;;  %v3257_v29 = vmul.f32 1.442695, %v2764_v20  ;;  %v3243_v10 = vmul.f32 1.442695, %v2757_v18 }
 0x331   : > { %v2504_v32 = vpop.f32.mrf.mxu1  ;;  %v6315_v20 = vld [vmem:[#allocation11_spill] sm:$0xff] }
 0x332   : > { %v2778_v4 = vsub.f32 %v2504_v32, %v5234_v27  ;;  %v3283_v3 = vmul.f32 1.442695, %v2777_v15  ;;  %v2759_v32 = vsub.f32 %v6045_v35, %v5231_v33  ;;  %v2756_v35 = vsub.f32 %v6025_v38, %v5234_v27 }
 0x333   : > { %v2508_v30 = vpop.f32.mrf.mxu1  ;;  %v3245_v15 = vmul.f32 1.442695, %v2758_v59  ;;  %v2753_v38 = vsub.f32 %v6005_v7, %v5231_v33 }
 0x334   : > { %v2779_v11 = vsub.f32 %v2508_v30, %v5231_v33  ;;  %v3285_v6 = vmul.f32 1.442695, %v2778_v4  ;;  %v3247_v4 = vmul.f32 1.442695, %v2759_v32 }
 0x335   : > { %v2510_v45 = vpop.f32.mrf.mxu1  ;;  %v3235_v23 = vmul.f32 1.442695, %v2753_v38  ;;  %v6318_v38 = vld [vmem:[#allocation18_spill] sm:$0xff] }
 0x336   : > { %v2780_v53 = vsub.f32 %v2510_v45, %v5234_v27  ;;  %v3287_v44 = vmul.f32 1.442695, %v2779_v11  ;;  %v3253_v45 = vmul.f32 1.442695, %v2762_v57  ;;  %v3249_v11 = vmul.f32 1.442695, %v2760_v16 }
 0x337   : > { %v2514_v13 = vpop.f32.mrf.mxu1 }
 0x338   : > { %v2781_v61 = vsub.f32 %v2514_v13, %v5231_v33  ;;  %v3289_v26 = vmul.f32 1.442695, %v2780_v53  ;;  %v3251_v53 = vmul.f32 1.442695, %v2761_v46 }
 0x339   : > { %v2516_v56 = vpop.f32.mrf.mxu1 }
 0x33a   : > { %v2782_v0 = vsub.f32 %v2516_v56, %v5234_v27  ;;  %v3291_v22 = vmul.f32 1.442695, %v2781_v61  ;;  %v3233_v27 = vmul.f32 1.442695, %v2752_v36 }
 0x33c   : > { %v3293_v54 = vmul.f32 1.442695, %v2782_v0 }
 0x33e   : > { %4427 = vpow2.f32 %v3293_v54  ;;  %v3241_v54 = vmul.f32 1.442695, %v2756_v35 }
 0x33f   : > { %4429 = vpow2.f32 %v3291_v22 }
 0x340   : > { %4431 = vpow2.f32 %v3289_v26 }
 0x341   : > { %4433 = vpow2.f32 %v3287_v44  ;;  %v3239_v44 = vmul.f32 1.442695, %v2755_v9 }
 0x342   : > { %4435 = vpow2.f32 %v3285_v6  ;;  %v3237_v6 = vmul.f32 1.442695, %v2754_v52 }
 0x343   : > { %4437 = vpow2.f32 %v3283_v3 }
 0x344   : > { %4439 = vpow2.f32 %v3281_v25 }
 0x345   : > { %4441 = vpow2.f32 %v3279_v43 }
 0x346   : > { %4443 = vpow2.f32 %v3277_v37 }
 0x347   : > { %4445 = vpow2.f32 %v3275_v39 }
 0x348   : > { %4447 = vpow2.f32 %v3273_v21 }
 0x349   : > { %4449 = vpow2.f32 %v3271_v49 }
 0x34a   : > { %4451 = vpow2.f32 %v3269_v51 }
 0x34b   : > { %v4428_v19 = vpop.eup %4427  ;;  %4453 = vpow2.f32 %v3267_v62 }
 0x34c   : > { %v4430_v55 = vpop.eup %4429  ;;  %4455 = vpow2.f32 %v3265_v1  ;;  %3558 = vmatprep.subr.mxu0 %v4428_v19  ;;  %v6316_v1 = vld [vmem:[#allocation17_spill] sm:$0xff] }
 0x34d   : > { %v4432_v47 = vpop.eup %4431  ;;  %4457 = vpow2.f32 %v3263_v34  ;;  %3559 = vmatpush2.msra.mxu0 %v4430_v55  ;;  %v3361_v34 = vpop.f32.mrf.mxu0 }
 0x34e   : > { %v4434_v30 = vpop.eup %4433  ;;  %4459 = vpow2.f32 %v3261_v14  ;;  %3560 = vmatprep.subr.mxu0 %v4432_v47 }
 0x34f   : > { %v4436_v13 = vpop.eup %4435  ;;  %4461 = vpow2.f32 %v3259_v31  ;;  %3561 = vmatpush2.msra.mxu0 %v4434_v30  ;;  %v3363_v57 = vpop.f32.mrf.mxu0 }
 0x350   : > { %v4438_v61 = vpop.eup %4437  ;;  %4463 = vpow2.f32 %v3257_v29  ;;  %3562 = vmatprep.subr.mxu0 %v4436_v13 }
 0x351   : > { %v4440_v56 = vpop.eup %4439  ;;  %4465 = vpow2.f32 %v3255_v42  ;;  %3563 = vmatpush2.msra.mxu0 %v4438_v61  ;;  %v3367_v14 = vpop.f32.mrf.mxu0 }
 0x352   : > { %v4442_v0 = vpop.eup %4441  ;;  %4467 = vpow2.f32 %v3253_v45  ;;  %3564 = vmatprep.subr.mxu0 %v4440_v56 }
 0x353   : > { %v4444_v22 = vpop.eup %4443  ;;  %4469 = vpow2.f32 %v3251_v53  ;;  %3565 = vmatpush2.msra.mxu0 %v4442_v0  ;;  %v3369_v19 = vpop.f32.mrf.mxu0 }
 0x354   : > { %v4446_v26 = vpop.eup %4445  ;;  %4471 = vpow2.f32 %v3249_v11  ;;  %3566 = vmatprep.subr.mxu0 %v4444_v22 }
 0x355   : > { %v4448_v63 = vpop.eup %4447  ;;  %4473 = vpow2.f32 %v3247_v4  ;;  %3567 = vmatpush2.msra.mxu0 %v4446_v26 }
 0x356   : > { %v4450_v48 = vpop.eup %4449  ;;  %4475 = vpow2.f32 %v3245_v15  ;;  %3568 = vmatprep.subr.mxu0 %v4448_v63 }
 0x357   : > { %v4452_v7 = vpop.eup %4451  ;;  %4477 = vpow2.f32 %v3243_v10  ;;  %3569 = vmatpush2.msra.mxu0 %v4450_v48 }
 0x358   : > { %v4454_v3 = vpop.eup %4453  ;;  %4479 = vpow2.f32 %v3241_v54  ;;  %3570 = vmatprep.subr.mxu0 %v4452_v7 }
 0x359   : > { %v4456_v17 = vpop.eup %4455  ;;  %4481 = vpow2.f32 %v3239_v44  ;;  %3571 = vmatpush2.msra.mxu0 %v4454_v3 }
 0x35a   : > { %v4458_v33 = vpop.eup %4457  ;;  %4483 = vpow2.f32 %v3237_v6  ;;  %3572 = vmatprep.subr.mxu0 %v4456_v17 }
 0x35b   : > { %v4460_v41 = vpop.eup %4459  ;;  %4485 = vpow2.f32 %v3235_v23  ;;  %3573 = vmatpush2.msra.mxu0 %v4458_v33 }
 0x35c   : > { %v4462_v25 = vpop.eup %4461  ;;  %4487 = vpow2.f32 %v3233_v27  ;;  %3574 = vmatprep.subr.mxu0 %v4460_v41 }
 0x35d   : > { %v4464_v50 = vpop.eup %4463  ;;  %4489 = vpow2.f32 %v3231_v58  ;;  %3575 = vmatpush2.msra.mxu0 %v4462_v25 }
 0x35e   : > { %v4466_v43 = vpop.eup %4465  ;;  %3576 = vmatprep.subr.mxu0 %v4464_v50 }
 0x35f   : > { %v4468_v28 = vpop.eup %4467  ;;  %3577 = vmatpush2.msra.mxu0 %v4466_v43 }
 0x360   : > { %v4470_v37 = vpop.eup %4469  ;;  %3578 = vmatprep.subr.mxu0 %v4468_v28 }
 0x361   : > { %v4472_v8 = vpop.eup %4471  ;;  %3579 = vmatpush2.msra.mxu0 %v4470_v37 }
 0x362   : > { %v4474_v39 = vpop.eup %4473  ;;  %3580 = vmatprep.subr.mxu0 %v4472_v8 }
 0x363   : > { %v4476_v40 = vpop.eup %4475  ;;  %3581 = vmatpush2.msra.mxu0 %v4474_v39 }
 0x364   : > { %v4478_v21 = vpop.eup %4477  ;;  %3582 = vmatprep.subr.mxu0 %v4476_v40 }
 0x365   : > { %v4480_v2 = vpop.eup %4479  ;;  %3583 = vmatpush2.msra.mxu0 %v4478_v21 }
 0x366   : > { %v4482_v49 = vpop.eup %4481  ;;  %3584 = vmatprep.subr.mxu0 %v4480_v2 }
 0x367   : > { %v4484_v60 = vpop.eup %4483  ;;  %3585 = vmatpush2.msra.mxu0 %v4482_v49 }
 0x368   : > { %v4486_v51 = vpop.eup %4485  ;;  %3586 = vmatprep.subr.mxu0 %v4484_v60 }
 0x369   : > { %v4488_v24 = vpop.eup %4487  ;;  %3587 = vmatpush2.msra.mxu0 %v4486_v51 }
 0x36a   : > { %v4490_v62 = vpop.eup %4489  ;;  %3588 = vmatprep.subr.mxu0 %v4488_v24 }
 0x36b   : > { %3589 = vmatpush2.msra.mxu0 %v4490_v62 }
 0x36c   : > { %3591 = vmatmul.mubr.f32.vlgmr.msra.gmra.mxu0 %v6315_v20 }
 0x36d   : > { %3596 = vmatprep.mubr.f32.mxu0 %v6316_v1 }
 0x370   : > { %3597 = vmatmul.mubr.f32.gmra.mxu0 %v6317_v5 }
 0x383   : > { %v3438_v46 = vpop.f32.mrf.mxu0 }
 0x384   : > { %v3439_v9 = vadd.f32 %v3438_v46, %v3361_v34 }
 0x385   : > { %v3440_v31 = vpop.f32.mrf.mxu0 }
 0x386   : > { %v3441_v4 = vadd.f32 %v3440_v31, %v3363_v57 }
 0x387   : > { %v3444_v55 = vpop.f32.mrf.mxu0 }
 0x388   : > { %v3445_v59 = vadd.f32 %v3444_v55, %v3367_v14 }
 0x389   : > { %v3446_v16 = vpop.f32.mrf.mxu0 }
 0x38a   : > { %v3447_v13 = vadd.f32 %v3446_v16, %v3369_v19 }
 0x3c3   : > { %v3515_v29 = vpop.f32.mrf.mxu0 }
 0x3c4   : > { %v3516_v0 = vadd.f32 %v3515_v29, %v3439_v9 }
 0x3c5   : > { %v3517_v47 = vpop.f32.mrf.mxu0 }
 0x3c6   : > { %v3518_v15 = vadd.f32 %v3517_v47, %v3441_v4 }
 0x3c7   : > { %v3521_v32 = vpop.f32.mrf.mxu0 }
 0x3c8   : > { %v3522_v18 = vadd.f32 %v3521_v32, %v3445_v59 }
 0x3c9   : > { %v3523_v42 = vpop.f32.mrf.mxu0 }
 0x3ca   : > { %v3524_v61 = vadd.f32 %v3523_v42, %v3447_v13 }
 0x42c   : > { %v3592_v30 = vpop.f32.mrf.mxu0 }
 0x42d   : > { %v3593_v22 = vadd.f32 %v3592_v30, %v3516_v0 }
 0x42e   : > { %v3594_v45 = vpop.f32.mrf.mxu0 }
 0x42f   : > { %v3595_v36 = vadd.f32 %v3594_v45, %v3518_v15 }
 0x430   : > { %v3598_v53 = vpop.f32.mrf.mxu0 }
 0x431   : > { %v3599_v35 = vadd.f32 %v3598_v53, %v3522_v18 }
 0x432   : > { %v3600_v11 = vpop.f32.mrf.mxu0 }
 0x433   : > { %4491 = vrcp.f32 %v3599_v35  ;;  %v3601_v56 = vadd.f32 %v3600_v11, %v3524_v61 }
 0x435   : > { %4493 = vrcp.f32 %v3601_v56 }
 0x440   : > { %v4492_v52 = vpop.eup %4491 }
 0x441   : > { %v3608_v10 = vrot.slane %v4492_v52, %v6318_v38 }
 0x442   : > { %v4494_v26 = vpop.eup %4493 }
 0x443   : > { %v3613_v54 = vmul.f32 %v3608_v10, %v3593_v22  ;;  %v3612_v63 = vrot.slane %v4494_v26, %v6318_v38 }
 0x445   : > { %3615 = vst [vmem:[%s371_s24] sm:$0xff] %v3613_v54  ;;  %v3614_v12 = vmul.f32 %v3612_v63, %v3595_v36 }
 0x447   : > { %3616 = vst [vmem:[%s371_s24 + $0x8] sm:$0xff] %v3614_v12 }
 0x448 PF: > { %s17_s30 = sadd.s32 1, %s4549_s30   ;;  %s6319_s24 = smov %s4529_s25 }
 0x449   : > { %p14_p12 = scmp.ge.s32.totalorder %s17_s30, 10   ;;  %s6320_s25 = smov %s4644_s14 }
 0x44a   : > { %s6321_s26 = smov %s4541_s28  ;;  %s6322_s27 = smov %s4545_s29 }
 0x44b   : > { %s6323_s28 = smov %s6326_s8  ;;  %s6324_s29 = smov %s6330_s9 }
 0x44c   :  { %16 = sbr.rel (!%p14_p12) target bundleno = 4 (0x4), region = 112 }

</bundles_post_ra>
